<compile_context>
chip_gen: v7x
topology: tpu7x:2x2x1
jax: 0.10.0
libtpu: 0.0.40
codegen_flags: <defaults>
</compile_context>

<pallas_src>
import math

import jax
import jax.numpy as jnp
import numpy as np
from jax.experimental import pallas as pl
from jax.experimental.pallas import tpu as pltpu

# ---------------- small synthetic shapes ----------------
N = 8            # batch of path increments
INPUT_SIZE = 4   # input_size
CHANNELS = 2     # channels
HIDDEN = 8       # hidden_size (Lie-algebra matrix dim)

TILE = 128       # block-diagonal packing width (native MXU width on v5e)
K_TAYLOR = 12    # Taylor degree on the 2^-s rescaled matrix (1-norm <= 1)
TAYLOR_BF16 = False  # bf16 inputs (f32 accum) for series-stage matmuls

_INV_FACT = [1.0 / math.factorial(i) for i in range(K_TAYLOR + 1)]


# ------------------- complex matmul helpers (Gauss 3-mult) -------------------
def _cmul(ar, ai, br, bi, in_dtype=jnp.float32):
    """(ar + i*ai) @ (br + i*bi) with 3 real matmuls, f32 accumulation."""
    arc, aic = ar.astype(in_dtype), ai.astype(in_dtype)
    brc, bic = br.astype(in_dtype), bi.astype(in_dtype)
    p1 = jnp.dot(arc, brc, preferred_element_type=jnp.float32)
    p2 = jnp.dot(aic, bic, preferred_element_type=jnp.float32)
    p3 = jnp.dot(arc + aic, brc + bic, preferred_element_type=jnp.float32)
    return p1 - p2, p3 - p1 - p2


def _csq(ar, ai, in_dtype=jnp.float32):
    """(ar + i*ai)^2 with 3 real matmuls: {R^2, I^2, (R+I)^2}."""
    arc, aic = ar.astype(in_dtype), ai.astype(in_dtype)
    p1 = jnp.dot(arc, arc, preferred_element_type=jnp.float32)
    p2 = jnp.dot(aic, aic, preferred_element_type=jnp.float32)
    s = arc + aic
    p3 = jnp.dot(s, s, preferred_element_type=jnp.float32)
    return p1 - p2, p3 - p1 - p2


# ------------------- fused projection + expm kernel -------------------
def _fused_proj_expm_kernel(nsq_ref, dxrep_ref, wre_ref, wim_ref,
                            ore_ref, oim_ref):
    # ---- 1. assemble the (already 2^-s pre-scaled) block-diagonal matrix ----
    #   A_bd[r, col] = sum_k dxrep[r, k] * W_bd[k, r, col]   (K cheap VPU MACs)
    k_dim = dxrep_ref.shape[2]
    coefs = dxrep_ref[0]                                # (TILE, K): single load
    a_re = coefs[:, 0:1] * wre_ref[0, 0]
    a_im = coefs[:, 0:1] * wim_ref[0, 0]
    for k in range(1, k_dim):
        c_k = coefs[:, k:k + 1]
        a_re = a_re + c_k * wre_ref[0, k]
        a_im = a_im + c_k * wim_ref[0, k]

    # identity plane (block-diagonal by construction), built once
    row = jax.lax.broadcasted_iota(jnp.int32, (TILE, TILE), 0)
    col = jax.lax.broadcasted_iota(jnp.int32, (TILE, TILE), 1)
    eye = (row == col).astype(jnp.float32)

    f = _INV_FACT
    tdt = jnp.bfloat16 if TAYLOR_BF16 else jnp.float32

    # ---- 2. degree-12 Taylor via Paterson-Stockmeyer / Horner --------------
    # Chunks are built lazily inside the recursion to keep the live-tile set
    # small (a, a2, a3, a4, one temp, eye), instead of materializing B0..B2
    # upfront.
    a2r, a2i = _csq(a_re, a_im, tdt)                    # A^2
    a3r, a3i = _cmul(a2r, a2i, a_re, a_im, tdt)         # A^3
    a4r, a4i = _csq(a2r, a2i, tdt)                      # A^4

    # t = B2 + f12*A^4
    tr = f[8] * eye + f[9] * a_re + f[10] * a2r + f[11] * a3r + f[12] * a4r
    ti = f[9] * a_im + f[10] * a2i + f[11] * a3i + f[12] * a4i
    hr, hi = _cmul(a4r, a4i, tr, ti, tdt)               # A^4 @ t

    # t = B1 + previous
    tr = f[4] * eye + f[5] * a_re + f[6] * a2r + f[7] * a3r + hr
    ti = f[5] * a_im + f[6] * a2i + f[7] * a3i + hi
    hr, hi = _cmul(a4r, a4i, tr, ti, tdt)               # A^4 @ t  (a4 dead now)

    # P = B0 + previous
    pr = f[0] * eye + f[1] * a_re + f[2] * a2r + f[3] * a3r + hr
    pi = f[1] * a_im + f[2] * a2i + f[3] * a3i + hi

    # ---- 3. undo rescaling: exactly nsq squarings, state carried in vregs ----
    nsq = nsq_ref[0]

    def _square(_, carry):
        rr, ri = carry
        return _csq(rr, ri)

    rr, ri = jax.lax.fori_loop(0, nsq, _square, (pr, pi))
    ore_ref[0] = rr
    oim_ref[0] = ri


# ------------------- wrapper (glue in plain JAX) -------------------
@jax.jit
def projection_forward(dX, A):
    """dX: (N, input_size) float32;  A: (input_size, C, H, H) complex64
    returns matrix_exp(einsum('nk,kcij->ncij', dX, frame(A)))  (N,C,H,H) c64."""
    n, k_in = dX.shape
    kk, c, h, _ = A.shape
    assert kk == k_in
    assert TILE % h == 0, "hidden_size must divide 128"  # TODO(synk): pad H for general hidden sizes
    mpt = TILE // h                      # matrices packed per 128-wide tile
    b = n * c                            # total number of (h,h) matrices
    g = -(-b // mpt)                     # number of grid steps (tiles)
    b_pad = g * mpt

    # param_map == unitary.frame: project onto the skew-Hermitian Lie algebra
    A_skew = (A - jnp.conj(jnp.swapaxes(A, -2, -1))) / 2.0
    w_re = jnp.real(A_skew).astype(jnp.float32)          # (K, C, H, H)
    w_im = jnp.imag(A_skew).astype(jnp.float32)

    # ---- uniform scaling exponent from a cheap 1-norm upper bound ----
    #   ||AX[n,c]||_1 <= max_j sum_k |dX[n,k]| * sum_i |A_skew[k,c,i,j]|
    dx_f32 = dX.astype(jnp.float32)
    col_abs = jnp.sum(jnp.abs(A_skew), axis=-2)          # (K, C, H)
    bound = jnp.sum(jnp.abs(dx_f32)[:, :, None, None] * col_abs[None], axis=1)
    nrm_ub = jnp.max(bound)
    s = jnp.ceil(jnp.log2(jnp.maximum(nrm_ub, 1.0)))     # s >= per-matrix s
    nsq = jnp.reshape(s, (1,)).astype(jnp.int32)         # scalar-prefetch arg
    scale = jnp.exp2(-s).astype(jnp.float32)

    q_ids = jnp.arange(b_pad)                            # global matrix index
    n_ids = jnp.clip(q_ids // c, 0, n - 1)
    valid = (q_ids < b).astype(jnp.float32)

    eye_mpt = jnp.eye(mpt, dtype=jnp.float32)

    def blockdiag(w_sel):          # (..., mpt, H, H) -> (..., TILE, TILE)
        lead = w_sel.shape[:-3]
        w6 = jnp.broadcast_to(w_sel[..., :, :, None, :],
                              lead + (mpt, h, mpt, h))
        e = eye_mpt.reshape((1,) * len(lead) + (mpt, 1, mpt, 1))
        return (w6 * e).reshape(lead + (TILE, TILE))

    # ---- block-diagonal weight planes ----
    if mpt % c == 0:
        # channel pattern identical in every tile -> grid-invariant planes,
        # shape (1, K, 128, 128); constant block index => DMA'd into VMEM once.
        ch = jnp.arange(mpt) % c
        wbd_re = blockdiag(w_re[:, ch])[None]            # (1, K, TILE, TILE)
        wbd_im = blockdiag(w_im[:, ch])[None]
        w_index_map = lambda i, nsq_ref: (0, 0, 0, 0)
    else:
        # fallback: channel pattern shifts between tiles -> per-step planes
        c_ids = q_ids % c

        def per_tile(w):
            w_sel = w[:, c_ids].reshape(k_in, g, mpt, h, h)
            return jnp.transpose(blockdiag(w_sel), (1, 0, 2, 3))  # (g,K,T,T)

        wbd_re = per_tile(w_re)
        wbd_im = per_tile(w_im)
        w_index_map = lambda i, nsq_ref: (i, 0, 0, 0)

    # ---- per-row dX replicated over (channel, matrix-row), pre-scaled ----
    rows = dx_f32[n_ids] * (scale * valid)[:, None]      # (b_pad, K)
    dxrep = jnp.repeat(rows, h, axis=0).reshape(g, TILE, k_in)

    grid_spec = pltpu.PrefetchScalarGridSpec(
        num_scalar_prefetch=1,
        grid=(g,),
        in_specs=[
            pl.BlockSpec((1, TILE, k_in), lambda i, nsq_ref: (i, 0, 0)),
            pl.BlockSpec((1, k_in, TILE, TILE), w_index_map),
            pl.BlockSpec((1, k_in, TILE, TILE), w_index_map),
        ],
        out_specs=(
            pl.BlockSpec((1, TILE, TILE), lambda i, nsq_ref: (i, 0, 0)),
            pl.BlockSpec((1, TILE, TILE), lambda i, nsq_ref: (i, 0, 0)),
        ),
    )

    o_re, o_im = pl.pallas_call(
        _fused_proj_expm_kernel,
        out_shape=(jax.ShapeDtypeStruct((g, TILE, TILE), jnp.float32),
                   jax.ShapeDtypeStruct((g, TILE, TILE), jnp.float32)),
        grid_spec=grid_spec,
        compiler_params=pltpu.CompilerParams(
            dimension_semantics=("parallel",)),
    )(nsq, dxrep, wbd_re, wbd_im)

    # ---- extract the diagonal (h,h) blocks and reassemble complex output ----
    def take_blocks(o):
        o4 = o.reshape(g, mpt, h, mpt, h)
        d = jnp.diagonal(o4, axis1=1, axis2=3)           # (g, h, h, mpt)
        return jnp.moveaxis(d, -1, 1).reshape(b_pad, h, h)[:b]

    out = take_blocks(o_re) + 1j * take_blocks(o_im)
    return out.astype(jnp.complex64).reshape(n, c, h, h)


# ------------------- deterministic parameter init -------------------
def init_projection_A(key, input_size, channels, hidden):
    """Deterministic analogue of unitary_lie_init_(A, partial(normal_, std=1)):
    purely-imaginary normal diagonal + (skew-symmetric real + symmetric
    imaginary) strictly-upper-triangular parts, each divided by sqrt(2)."""
    kd, kr, kc = jax.random.split(key, 3)
    ts = (input_size, channels)
    diag = jax.random.normal(kd, ts + (hidden,), dtype=jnp.float32)
    offr = jax.random.normal(kr, ts + (hidden, hidden), dtype=jnp.float32)
    offc = jax.random.normal(kc, ts + (hidden, hidden), dtype=jnp.float32)
    ur = jnp.triu(offr, 1)
    uc = jnp.triu(offc, 1)
    real_part = (ur - jnp.swapaxes(ur, -2, -1)) / jnp.sqrt(2.0)
    imag_sym = (uc + jnp.swapaxes(uc, -2, -1)) / jnp.sqrt(2.0)
    diag_embed = diag[..., :, None] * jnp.eye(hidden, dtype=jnp.float32)
    A = real_part.astype(jnp.complex64) + 1j * (imag_sym + diag_embed).astype(jnp.complex64)
    return A  # skew-Hermitian, i.e. in the unitary Lie algebra


if __name__ == "__main__":
    key = jax.random.PRNGKey(0)
    k_a, k_x = jax.random.split(key)
    A = init_projection_A(k_a, INPUT_SIZE, CHANNELS, HIDDEN)
    dX = jax.random.normal(k_x, (N, INPUT_SIZE), dtype=jnp.float32)

    out = jax.block_until_ready(projection_forward(dX, A))

    # pure-JAX reference (rescaled_matrix_exp(matrix_exp, X) == matrix_exp(X))
    A_skew = (A - jnp.conj(jnp.swapaxes(A, -2, -1))) / 2.0
    AX = jnp.einsum('nk,kcij->ncij', dX.astype(jnp.complex64), A_skew)
    ref = jax.scipy.linalg.expm(AX)

    assert out.shape == (N, CHANNELS, HIDDEN, HIDDEN)
    assert out.dtype == jnp.complex64
    np.testing.assert_allclose(np.asarray(out), np.asarray(ref), atol=2e-3, rtol=2e-3)
    print("KERNEL_OK")
</pallas_src>

<mosaic_0001>
module attributes {stable_mosaic.version = 11 : i64} {
  func.func @_fused_proj_expm_kernel(%arg0: i32, %arg1: memref<1xi32, #tpu.memory_space<smem>>, %arg2: memref<1x128x4xf32, #tpu.memory_space<vmem>>, %arg3: memref<1x4x128x128xf32, #tpu.memory_space<vmem>>, %arg4: memref<1x4x128x128xf32, #tpu.memory_space<vmem>>, %arg5: memref<1x128x128xf32, #tpu.memory_space<vmem>>, %arg6: memref<1x128x128xf32, #tpu.memory_space<vmem>>) attributes {dimension_semantics = [#tpu.dimension_semantics<parallel>], iteration_bounds = array<i64: 1>, scalar_prefetch = 1 : i64, scratch_operands = 0 : i64, tpu.core_type = #tpu.core_type<tc>, window_params = [{transform_indices = @transform_0, window_bounds = array<i64: 1, 128, 4>}, {pipeline_mode = #tpu.pipeline_mode<synchronous>, transform_indices = @transform_1, window_bounds = array<i64: 1, 4, 128, 128>}, {pipeline_mode = #tpu.pipeline_mode<synchronous>, transform_indices = @transform_2, window_bounds = array<i64: 1, 4, 128, 128>}, {transform_indices = @transform_3, window_bounds = array<i64: 1, 128, 128>}, {transform_indices = @transform_4, window_bounds = array<i64: 1, 128, 128>}]} {
    %c0 = arith.constant 0 : index
    %c0_0 = arith.constant 0 : index
    %c0_1 = arith.constant 0 : index
    %0 = vector.load %arg2[%c0, %c0_0, %c0_1] : memref<1x128x4xf32, #tpu.memory_space<vmem>>, vector<1x128x4xf32>
    %1 = vector.shape_cast %0 : vector<1x128x4xf32> to vector<128x4xf32>
    %2 = vector.extract_strided_slice %1 {offsets = [0, 0], sizes = [128, 1], strides = [1, 1]} : vector<128x4xf32> to vector<128x1xf32>
    %c0_2 = arith.constant 0 : index
    %c0_3 = arith.constant 0 : index
    %c0_4 = arith.constant 0 : index
    %c0_5 = arith.constant 0 : index
    %3 = vector.load %arg3[%c0_2, %c0_3, %c0_4, %c0_5] : memref<1x4x128x128xf32, #tpu.memory_space<vmem>>, vector<1x1x128x128xf32>
    %4 = vector.shape_cast %3 : vector<1x1x128x128xf32> to vector<128x128xf32>
    %5 = vector.broadcast %2 : vector<128x1xf32> to vector<128x128xf32>
    %6 = arith.mulf %5, %4 : vector<128x128xf32>
    %7 = vector.extract_strided_slice %1 {offsets = [0, 0], sizes = [128, 1], strides = [1, 1]} : vector<128x4xf32> to vector<128x1xf32>
    %c0_6 = arith.constant 0 : index
    %c0_7 = arith.constant 0 : index
    %c0_8 = arith.constant 0 : index
    %c0_9 = arith.constant 0 : index
    %8 = vector.load %arg4[%c0_6, %c0_7, %c0_8, %c0_9] : memref<1x4x128x128xf32, #tpu.memory_space<vmem>>, vector<1x1x128x128xf32>
    %9 = vector.shape_cast %8 : vector<1x1x128x128xf32> to vector<128x128xf32>
    %10 = vector.broadcast %7 : vector<128x1xf32> to vector<128x128xf32>
    %11 = arith.mulf %10, %9 : vector<128x128xf32>
    %12 = vector.extract_strided_slice %1 {offsets = [0, 1], sizes = [128, 1], strides = [1, 1]} : vector<128x4xf32> to vector<128x1xf32>
    %c0_10 = arith.constant 0 : index
    %c1 = arith.constant 1 : index
    %c0_11 = arith.constant 0 : index
    %c0_12 = arith.constant 0 : index
    %13 = vector.load %arg3[%c0_10, %c1, %c0_11, %c0_12] : memref<1x4x128x128xf32, #tpu.memory_space<vmem>>, vector<1x1x128x128xf32>
    %14 = vector.shape_cast %13 : vector<1x1x128x128xf32> to vector<128x128xf32>
    %15 = vector.broadcast %12 : vector<128x1xf32> to vector<128x128xf32>
    %16 = arith.mulf %15, %14 : vector<128x128xf32>
    %17 = arith.addf %6, %16 : vector<128x128xf32>
    %c0_13 = arith.constant 0 : index
    %c1_14 = arith.constant 1 : index
    %c0_15 = arith.constant 0 : index
    %c0_16 = arith.constant 0 : index
    %18 = vector.load %arg4[%c0_13, %c1_14, %c0_15, %c0_16] : memref<1x4x128x128xf32, #tpu.memory_space<vmem>>, vector<1x1x128x128xf32>
    %19 = vector.shape_cast %18 : vector<1x1x128x128xf32> to vector<128x128xf32>
    %20 = vector.broadcast %12 : vector<128x1xf32> to vector<128x128xf32>
    %21 = arith.mulf %20, %19 : vector<128x128xf32>
    %22 = arith.addf %11, %21 : vector<128x128xf32>
    %23 = vector.extract_strided_slice %1 {offsets = [0, 2], sizes = [128, 1], strides = [1, 1]} : vector<128x4xf32> to vector<128x1xf32>
    %c0_17 = arith.constant 0 : index
    %c2 = arith.constant 2 : index
    %c0_18 = arith.constant 0 : index
    %c0_19 = arith.constant 0 : index
    %24 = vector.load %arg3[%c0_17, %c2, %c0_18, %c0_19] : memref<1x4x128x128xf32, #tpu.memory_space<vmem>>, vector<1x1x128x128xf32>
    %25 = vector.shape_cast %24 : vector<1x1x128x128xf32> to vector<128x128xf32>
    %26 = vector.broadcast %23 : vector<128x1xf32> to vector<128x128xf32>
    %27 = arith.mulf %26, %25 : vector<128x128xf32>
    %28 = arith.addf %17, %27 : vector<128x128xf32>
    %c0_20 = arith.constant 0 : index
    %c2_21 = arith.constant 2 : index
    %c0_22 = arith.constant 0 : index
    %c0_23 = arith.constant 0 : index
    %29 = vector.load %arg4[%c0_20, %c2_21, %c0_22, %c0_23] : memref<1x4x128x128xf32, #tpu.memory_space<vmem>>, vector<1x1x128x128xf32>
    %30 = vector.shape_cast %29 : vector<1x1x128x128xf32> to vector<128x128xf32>
    %31 = vector.broadcast %23 : vector<128x1xf32> to vector<128x128xf32>
    %32 = arith.mulf %31, %30 : vector<128x128xf32>
    %33 = arith.addf %22, %32 : vector<128x128xf32>
    %34 = vector.extract_strided_slice %1 {offsets = [0, 3], sizes = [128, 1], strides = [1, 1]} : vector<128x4xf32> to vector<128x1xf32>
    %c0_24 = arith.constant 0 : index
    %c3 = arith.constant 3 : index
    %c0_25 = arith.constant 0 : index
    %c0_26 = arith.constant 0 : index
    %35 = vector.load %arg3[%c0_24, %c3, %c0_25, %c0_26] : memref<1x4x128x128xf32, #tpu.memory_space<vmem>>, vector<1x1x128x128xf32>
    %36 = vector.shape_cast %35 : vector<1x1x128x128xf32> to vector<128x128xf32>
    %37 = vector.broadcast %34 : vector<128x1xf32> to vector<128x128xf32>
    %38 = arith.mulf %37, %36 : vector<128x128xf32>
    %39 = arith.addf %28, %38 : vector<128x128xf32>
    %c0_27 = arith.constant 0 : index
    %c3_28 = arith.constant 3 : index
    %c0_29 = arith.constant 0 : index
    %c0_30 = arith.constant 0 : index
    %40 = vector.load %arg4[%c0_27, %c3_28, %c0_29, %c0_30] : memref<1x4x128x128xf32, #tpu.memory_space<vmem>>, vector<1x1x128x128xf32>
    %41 = vector.shape_cast %40 : vector<1x1x128x128xf32> to vector<128x128xf32>
    %42 = vector.broadcast %34 : vector<128x1xf32> to vector<128x128xf32>
    %43 = arith.mulf %42, %41 : vector<128x128xf32>
    %44 = arith.addf %33, %43 : vector<128x128xf32>
    %45 = tpu.iota {dimensions = array<i32: 0>} : vector<128x128xi32>
    %46 = tpu.iota {dimensions = array<i32: 1>} : vector<128x128xi32>
    %47 = arith.cmpi eq, %45, %46 : vector<128x128xi32>
    %48 = arith.extui %47 : vector<128x128xi1> to vector<128x128xi32>
    %49 = arith.sitofp %48 : vector<128x128xi32> to vector<128x128xf32>
    %cst = arith.constant dense<0.000000e+00> : vector<128x128xf32>
    %50 = tpu.matmul %39, %39, %cst {dimension_numbers = #tpu.dot_dimension_numbers<[1], [0], [0], [1], [0, 0, 1, 1], [], []>} : vector<128x128xf32>, vector<128x128xf32>, vector<128x128xf32> -> vector<128x128xf32>
    %cst_31 = arith.constant dense<0.000000e+00> : vector<128x128xf32>
    %51 = tpu.matmul %44, %44, %cst_31 {dimension_numbers = #tpu.dot_dimension_numbers<[1], [0], [0], [1], [0, 0, 1, 1], [], []>} : vector<128x128xf32>, vector<128x128xf32>, vector<128x128xf32> -> vector<128x128xf32>
    %52 = arith.addf %39, %44 : vector<128x128xf32>
    %cst_32 = arith.constant dense<0.000000e+00> : vector<128x128xf32>
    %53 = tpu.matmul %52, %52, %cst_32 {dimension_numbers = #tpu.dot_dimension_numbers<[1], [0], [0], [1], [0, 0, 1, 1], [], []>} : vector<128x128xf32>, vector<128x128xf32>, vector<128x128xf32> -> vector<128x128xf32>
    %54 = arith.subf %50, %51 : vector<128x128xf32>
    %55 = arith.subf %53, %50 : vector<128x128xf32>
    %56 = arith.subf %55, %51 : vector<128x128xf32>
    %cst_33 = arith.constant dense<0.000000e+00> : vector<128x128xf32>
    %57 = tpu.matmul %54, %39, %cst_33 {dimension_numbers = #tpu.dot_dimension_numbers<[1], [0], [0], [1], [0, 0, 1, 1], [], []>} : vector<128x128xf32>, vector<128x128xf32>, vector<128x128xf32> -> vector<128x128xf32>
    %cst_34 = arith.constant dense<0.000000e+00> : vector<128x128xf32>
    %58 = tpu.matmul %56, %44, %cst_34 {dimension_numbers = #tpu.dot_dimension_numbers<[1], [0], [0], [1], [0, 0, 1, 1], [], []>} : vector<128x128xf32>, vector<128x128xf32>, vector<128x128xf32> -> vector<128x128xf32>
    %59 = arith.addf %54, %56 : vector<128x128xf32>
    %60 = arith.addf %39, %44 : vector<128x128xf32>
    %cst_35 = arith.constant dense<0.000000e+00> : vector<128x128xf32>
    %61 = tpu.matmul %59, %60, %cst_35 {dimension_numbers = #tpu.dot_dimension_numbers<[1], [0], [0], [1], [0, 0, 1, 1], [], []>} : vector<128x128xf32>, vector<128x128xf32>, vector<128x128xf32> -> vector<128x128xf32>
    %62 = arith.subf %57, %58 : vector<128x128xf32>
    %63 = arith.subf %61, %57 : vector<128x128xf32>
    %64 = arith.subf %63, %58 : vector<128x128xf32>
    %cst_36 = arith.constant dense<0.000000e+00> : vector<128x128xf32>
    %65 = tpu.matmul %54, %54, %cst_36 {dimension_numbers = #tpu.dot_dimension_numbers<[1], [0], [0], [1], [0, 0, 1, 1], [], []>} : vector<128x128xf32>, vector<128x128xf32>, vector<128x128xf32> -> vector<128x128xf32>
    %cst_37 = arith.constant dense<0.000000e+00> : vector<128x128xf32>
    %66 = tpu.matmul %56, %56, %cst_37 {dimension_numbers = #tpu.dot_dimension_numbers<[1], [0], [0], [1], [0, 0, 1, 1], [], []>} : vector<128x128xf32>, vector<128x128xf32>, vector<128x128xf32> -> vector<128x128xf32>
    %67 = arith.addf %54, %56 : vector<128x128xf32>
    %cst_38 = arith.constant dense<0.000000e+00> : vector<128x128xf32>
    %68 = tpu.matmul %67, %67, %cst_38 {dimension_numbers = #tpu.dot_dimension_numbers<[1], [0], [0], [1], [0, 0, 1, 1], [], []>} : vector<128x128xf32>, vector<128x128xf32>, vector<128x128xf32> -> vector<128x128xf32>
    %69 = arith.subf %65, %66 : vector<128x128xf32>
    %70 = arith.subf %68, %65 : vector<128x128xf32>
    %71 = arith.subf %70, %66 : vector<128x128xf32>
    %cst_39 = arith.constant 2.48015876E-5 : f32
    %72 = vector.broadcast %cst_39 : f32 to vector<128x128xf32>
    %73 = arith.mulf %72, %49 : vector<128x128xf32>
    %cst_40 = arith.constant 2.75573188E-6 : f32
    %74 = vector.broadcast %cst_40 : f32 to vector<128x128xf32>
    %75 = arith.mulf %74, %39 : vector<128x128xf32>
    %76 = arith.addf %73, %75 : vector<128x128xf32>
    %cst_41 = arith.constant 2.755732E-7 : f32
    %77 = vector.broadcast %cst_41 : f32 to vector<128x128xf32>
    %78 = arith.mulf %77, %54 : vector<128x128xf32>
    %79 = arith.addf %76, %78 : vector<128x128xf32>
    %cst_42 = arith.constant 2.50521079E-8 : f32
    %80 = vector.broadcast %cst_42 : f32 to vector<128x128xf32>
    %81 = arith.mulf %80, %62 : vector<128x128xf32>
    %82 = arith.addf %79, %81 : vector<128x128xf32>
    %cst_43 = arith.constant 2.08767559E-9 : f32
    %83 = vector.broadcast %cst_43 : f32 to vector<128x128xf32>
    %84 = arith.mulf %83, %69 : vector<128x128xf32>
    %85 = arith.addf %82, %84 : vector<128x128xf32>
    %cst_44 = arith.constant 2.75573188E-6 : f32
    %86 = vector.broadcast %cst_44 : f32 to vector<128x128xf32>
    %87 = arith.mulf %86, %44 : vector<128x128xf32>
    %cst_45 = arith.constant 2.755732E-7 : f32
    %88 = vector.broadcast %cst_45 : f32 to vector<128x128xf32>
    %89 = arith.mulf %88, %56 : vector<128x128xf32>
    %90 = arith.addf %87, %89 : vector<128x128xf32>
    %cst_46 = arith.constant 2.50521079E-8 : f32
    %91 = vector.broadcast %cst_46 : f32 to vector<128x128xf32>
    %92 = arith.mulf %91, %64 : vector<128x128xf32>
    %93 = arith.addf %90, %92 : vector<128x128xf32>
    %cst_47 = arith.constant 2.08767559E-9 : f32
    %94 = vector.broadcast %cst_47 : f32 to vector<128x128xf32>
    %95 = arith.mulf %94, %71 : vector<128x128xf32>
    %96 = arith.addf %93, %95 : vector<128x128xf32>
    %cst_48 = arith.constant dense<0.000000e+00> : vector<128x128xf32>
    %97 = tpu.matmul %69, %85, %cst_48 {dimension_numbers = #tpu.dot_dimension_numbers<[1], [0], [0], [1], [0, 0, 1, 1], [], []>} : vector<128x128xf32>, vector<128x128xf32>, vector<128x128xf32> -> vector<128x128xf32>
    %cst_49 = arith.constant dense<0.000000e+00> : vector<128x128xf32>
    %98 = tpu.matmul %71, %96, %cst_49 {dimension_numbers = #tpu.dot_dimension_numbers<[1], [0], [0], [1], [0, 0, 1, 1], [], []>} : vector<128x128xf32>, vector<128x128xf32>, vector<128x128xf32> -> vector<128x128xf32>
    %99 = arith.addf %69, %71 : vector<128x128xf32>
    %100 = arith.addf %85, %96 : vector<128x128xf32>
    %cst_50 = arith.constant dense<0.000000e+00> : vector<128x128xf32>
    %101 = tpu.matmul %99, %100, %cst_50 {dimension_numbers = #tpu.dot_dimension_numbers<[1], [0], [0], [1], [0, 0, 1, 1], [], []>} : vector<128x128xf32>, vector<128x128xf32>, vector<128x128xf32> -> vector<128x128xf32>
    %102 = arith.subf %97, %98 : vector<128x128xf32>
    %103 = arith.subf %101, %97 : vector<128x128xf32>
    %104 = arith.subf %103, %98 : vector<128x128xf32>
    %cst_51 = arith.constant 0.0416666679 : f32
    %105 = vector.broadcast %cst_51 : f32 to vector<128x128xf32>
    %106 = arith.mulf %105, %49 : vector<128x128xf32>
    %cst_52 = arith.constant 0.00833333377 : f32
    %107 = vector.broadcast %cst_52 : f32 to vector<128x128xf32>
    %108 = arith.mulf %107, %39 : vector<128x128xf32>
    %109 = arith.addf %106, %108 : vector<128x128xf32>
    %cst_53 = arith.constant 0.00138888892 : f32
    %110 = vector.broadcast %cst_53 : f32 to vector<128x128xf32>
    %111 = arith.mulf %110, %54 : vector<128x128xf32>
    %112 = arith.addf %109, %111 : vector<128x128xf32>
    %cst_54 = arith.constant 1.98412701E-4 : f32
    %113 = vector.broadcast %cst_54 : f32 to vector<128x128xf32>
    %114 = arith.mulf %113, %62 : vector<128x128xf32>
    %115 = arith.addf %112, %114 : vector<128x128xf32>
    %116 = arith.addf %115, %102 : vector<128x128xf32>
    %cst_55 = arith.constant 0.00833333377 : f32
    %117 = vector.broadcast %cst_55 : f32 to vector<128x128xf32>
    %118 = arith.mulf %117, %44 : vector<128x128xf32>
    %cst_56 = arith.constant 0.00138888892 : f32
    %119 = vector.broadcast %cst_56 : f32 to vector<128x128xf32>
    %120 = arith.mulf %119, %56 : vector<128x128xf32>
    %121 = arith.addf %118, %120 : vector<128x128xf32>
    %cst_57 = arith.constant 1.98412701E-4 : f32
    %122 = vector.broadcast %cst_57 : f32 to vector<128x128xf32>
    %123 = arith.mulf %122, %64 : vector<128x128xf32>
    %124 = arith.addf %121, %123 : vector<128x128xf32>
    %125 = arith.addf %124, %104 : vector<128x128xf32>
    %cst_58 = arith.constant dense<0.000000e+00> : vector<128x128xf32>
    %126 = tpu.matmul %69, %116, %cst_58 {dimension_numbers = #tpu.dot_dimension_numbers<[1], [0], [0], [1], [0, 0, 1, 1], [], []>} : vector<128x128xf32>, vector<128x128xf32>, vector<128x128xf32> -> vector<128x128xf32>
    %cst_59 = arith.constant dense<0.000000e+00> : vector<128x128xf32>
    %127 = tpu.matmul %71, %125, %cst_59 {dimension_numbers = #tpu.dot_dimension_numbers<[1], [0], [0], [1], [0, 0, 1, 1], [], []>} : vector<128x128xf32>, vector<128x128xf32>, vector<128x128xf32> -> vector<128x128xf32>
    %128 = arith.addf %69, %71 : vector<128x128xf32>
    %129 = arith.addf %116, %125 : vector<128x128xf32>
    %cst_60 = arith.constant dense<0.000000e+00> : vector<128x128xf32>
    %130 = tpu.matmul %128, %129, %cst_60 {dimension_numbers = #tpu.dot_dimension_numbers<[1], [0], [0], [1], [0, 0, 1, 1], [], []>} : vector<128x128xf32>, vector<128x128xf32>, vector<128x128xf32> -> vector<128x128xf32>
    %131 = arith.subf %126, %127 : vector<128x128xf32>
    %132 = arith.subf %130, %126 : vector<128x128xf32>
    %133 = arith.subf %132, %127 : vector<128x128xf32>
    %cst_61 = arith.constant 1.000000e+00 : f32
    %134 = vector.broadcast %cst_61 : f32 to vector<128x128xf32>
    %135 = arith.mulf %134, %49 : vector<128x128xf32>
    %cst_62 = arith.constant 1.000000e+00 : f32
    %136 = vector.broadcast %cst_62 : f32 to vector<128x128xf32>
    %137 = arith.mulf %136, %39 : vector<128x128xf32>
    %138 = arith.addf %135, %137 : vector<128x128xf32>
    %cst_63 = arith.constant 5.000000e-01 : f32
    %139 = vector.broadcast %cst_63 : f32 to vector<128x128xf32>
    %140 = arith.mulf %139, %54 : vector<128x128xf32>
    %141 = arith.addf %138, %140 : vector<128x128xf32>
    %cst_64 = arith.constant 0.166666672 : f32
    %142 = vector.broadcast %cst_64 : f32 to vector<128x128xf32>
    %143 = arith.mulf %142, %62 : vector<128x128xf32>
    %144 = arith.addf %141, %143 : vector<128x128xf32>
    %145 = arith.addf %144, %131 : vector<128x128xf32>
    %cst_65 = arith.constant 1.000000e+00 : f32
    %146 = vector.broadcast %cst_65 : f32 to vector<128x128xf32>
    %147 = arith.mulf %146, %44 : vector<128x128xf32>
    %cst_66 = arith.constant 5.000000e-01 : f32
    %148 = vector.broadcast %cst_66 : f32 to vector<128x128xf32>
    %149 = arith.mulf %148, %56 : vector<128x128xf32>
    %150 = arith.addf %147, %149 : vector<128x128xf32>
    %cst_67 = arith.constant 0.166666672 : f32
    %151 = vector.broadcast %cst_67 : f32 to vector<128x128xf32>
    %152 = arith.mulf %151, %64 : vector<128x128xf32>
    %153 = arith.addf %150, %152 : vector<128x128xf32>
    %154 = arith.addf %153, %133 : vector<128x128xf32>
    %c0_68 = arith.constant 0 : index
    %155 = memref.load %arg1[%c0_68] : memref<1xi32, #tpu.memory_space<smem>>
    %c0_i32 = arith.constant 0 : i32
    %156 = arith.subi %155, %c0_i32 : i32
    %157 = arith.addi %c0_i32, %156 : i32
    %c1_i32 = arith.constant 1 : i32
    %158:2 = scf.for %arg7 = %c0_i32 to %157 step %c1_i32 iter_args(%arg8 = %145, %arg9 = %154) -> (vector<128x128xf32>, vector<128x128xf32>)  : i32 {
      %cst_75 = arith.constant dense<0.000000e+00> : vector<128x128xf32>
      %165 = tpu.matmul %arg8, %arg8, %cst_75 {dimension_numbers = #tpu.dot_dimension_numbers<[1], [0], [0], [1], [0, 0, 1, 1], [], []>} : vector<128x128xf32>, vector<128x128xf32>, vector<128x128xf32> -> vector<128x128xf32>
      %cst_76 = arith.constant dense<0.000000e+00> : vector<128x128xf32>
      %166 = tpu.matmul %arg9, %arg9, %cst_76 {dimension_numbers = #tpu.dot_dimension_numbers<[1], [0], [0], [1], [0, 0, 1, 1], [], []>} : vector<128x128xf32>, vector<128x128xf32>, vector<128x128xf32> -> vector<128x128xf32>
      %167 = arith.addf %arg8, %arg9 : vector<128x128xf32>
      %cst_77 = arith.constant dense<0.000000e+00> : vector<128x128xf32>
      %168 = tpu.matmul %167, %167, %cst_77 {dimension_numbers = #tpu.dot_dimension_numbers<[1], [0], [0], [1], [0, 0, 1, 1], [], []>} : vector<128x128xf32>, vector<128x128xf32>, vector<128x128xf32> -> vector<128x128xf32>
      %169 = arith.subf %165, %166 : vector<128x128xf32>
      %170 = arith.subf %168, %165 : vector<128x128xf32>
      %171 = arith.subf %170, %166 : vector<128x128xf32>
      scf.yield %169, %171 : vector<128x128xf32>, vector<128x128xf32>
    }
    %c0_69 = arith.constant 0 : index
    %c0_70 = arith.constant 0 : index
    %c0_71 = arith.constant 0 : index
    %159 = vector.load %arg5[%c0_69, %c0_70, %c0_71] : memref<1x128x128xf32, #tpu.memory_space<vmem>>, vector<1x128x128xf32>
    %160 = vector.shape_cast %159 : vector<1x128x128xf32> to vector<128x128xf32>
    %161 = vector.shape_cast %158#0 : vector<128x128xf32> to vector<1x128x128xf32>
    tpu.vector_store %arg5[%c0_69, %c0_70, %c0_71], %161 {strides = array<i32>} : memref<1x128x128xf32, #tpu.memory_space<vmem>>, vector<1x128x128xf32>,
    %c0_72 = arith.constant 0 : index
    %c0_73 = arith.constant 0 : index
    %c0_74 = arith.constant 0 : index
    %162 = vector.load %arg6[%c0_72, %c0_73, %c0_74] : memref<1x128x128xf32, #tpu.memory_space<vmem>>, vector<1x128x128xf32>
    %163 = vector.shape_cast %162 : vector<1x128x128xf32> to vector<128x128xf32>
    %164 = vector.shape_cast %158#1 : vector<128x128xf32> to vector<1x128x128xf32>
    tpu.vector_store %arg6[%c0_72, %c0_73, %c0_74], %164 {strides = array<i32>} : memref<1x128x128xf32, #tpu.memory_space<vmem>>, vector<1x128x128xf32>,
    return
  }
  func.func @transform_0(%arg0: i32, %arg1: memref<1xi32, #tpu.memory_space<smem>>) -> (i32, i32, i32) {
    %c0_i32 = arith.constant 0 : i32
    %c0_i32_0 = arith.constant 0 : i32
    %c0_i32_1 = arith.constant 0 : i32
    return %arg0, %c0_i32, %c0_i32_0 : i32, i32, i32
  }
  func.func @transform_1(%arg0: i32, %arg1: memref<1xi32, #tpu.memory_space<smem>>) -> (i32, i32, i32, i32) {
    %c0_i32 = arith.constant 0 : i32
    %c0_i32_0 = arith.constant 0 : i32
    %c0_i32_1 = arith.constant 0 : i32
    %c0_i32_2 = arith.constant 0 : i32
    %c0_i32_3 = arith.constant 0 : i32
    return %c0_i32, %c0_i32_0, %c0_i32_1, %c0_i32_2 : i32, i32, i32, i32
  }
  func.func @transform_2(%arg0: i32, %arg1: memref<1xi32, #tpu.memory_space<smem>>) -> (i32, i32, i32, i32) {
    %c0_i32 = arith.constant 0 : i32
    %c0_i32_0 = arith.constant 0 : i32
    %c0_i32_1 = arith.constant 0 : i32
    %c0_i32_2 = arith.constant 0 : i32
    %c0_i32_3 = arith.constant 0 : i32
    return %c0_i32, %c0_i32_0, %c0_i32_1, %c0_i32_2 : i32, i32, i32, i32
  }
  func.func @transform_3(%arg0: i32, %arg1: memref<1xi32, #tpu.memory_space<smem>>) -> (i32, i32, i32) {
    %c0_i32 = arith.constant 0 : i32
    %c0_i32_0 = arith.constant 0 : i32
    %c0_i32_1 = arith.constant 0 : i32
    return %arg0, %c0_i32, %c0_i32_0 : i32, i32, i32
  }
  func.func @transform_4(%arg0: i32, %arg1: memref<1xi32, #tpu.memory_space<smem>>) -> (i32, i32, i32) {
    %c0_i32 = arith.constant 0 : i32
    %c0_i32_0 = arith.constant 0 : i32
    %c0_i32_1 = arith.constant 0 : i32
    return %arg0, %c0_i32, %c0_i32_0 : i32, i32, i32
  }
}

</mosaic_0001>

<bundles_post_ra>
// kernel: custom-call.1
= control target key start
LH: loop header
LB: loop body
LE: loop exit
PB: predicated region body
PF: predicated region fallthrough
CT: control target
= control target key end

     0   :  { %s59_s0 = inlined_call_operand.hbm [shape: c64[4,2,8,8], index: 0, kind: input, shape index: {}]   ;;  %s60_s1 = inlined_call_operand.vmem [shape: f32[4,2,8,8], index: 1, kind: output, shape index: {}]  }
   0x1   :  { %s2_s8 = scalar_lea.hbm %s59_s0, 1024 }
   0x2   :  { %3 = vsyncpa [#allocation0], 0  ;;  %s4_s11 = sshll.u32 %s60_s1, 4  ;;  %s34_s14 = scalar_lea.hbm %s59_s0, 2048  ;;  %s5_s11 = int_to_ptr.vmem [resolvable:$true] %s4_s11 }
   0x3   :  { %p11_p0 = scmp.ne.s32.totalorder %s2_s8, %s34_s14  ;;  %p13_p1 = scmp.lt.u32.totalorder %s2_s8, %s59_s0 }
   0x4   :  { %p14_p2 = scmp.lt.u32.totalorder %s34_s14, %s34_s14  ;;  %p16_p4 = scmp.lt.u32.totalorder %s34_s14, %s2_s8 }
   0x6   :  { %p15_p3 = por %p14_p2, %p13_p1 }
   0x8   :  { %p17_p5 = por %p16_p4, %p15_p3 }
   0xa   :  { %p18_p6 = pnand %p17_p5, %p11_p0 }
   0xc   :  { %21 = shalt.err (!%p18_p6)  }
   0xd   :  { %s22_s17 = scalar_lea.vmem %s5_s11, 1024  ;;  %p27_p8 = scmp.lt.s32.totalorder %s5_s11, %s5_s11 }
   0xe   :  { %p23_p7 = scmp.ne.s32.totalorder %s5_s11, %s22_s17  ;;  %p28_p9 = scmp.lt.s32.totalorder %s22_s17, %s22_s17 }
  0x10   :  { %p29_p10 = por %p28_p9, %p27_p8 }
  0x12   :  { %p30_p11 = pnand %p29_p10, %p23_p7 }
  0x14   :  { %33 = shalt.err (!%p30_p11)  }
  0x15   :  { %7 = dma.hbm_to_vmem [thread:$0]  %s2_s8, 1024, %s5_s11, [#allocation0] }
  0x16   :  { %35 = dma.done.wait [#allocation0], 1024  }
  0x17   :  { %36 = vsyncadd [#allocation0], 4294966272 }
  0x18   :  { %9 = vsyncpa [#allocation0], 1 }

// kernel: custom-call
= control target key start
LH: loop header
LB: loop body
LE: loop exit
PB: predicated region body
PF: predicated region fallthrough
CT: control target
= control target key end

     0   :  { %2 = vsyncpa [#allocation0], 0  ;;  %s61_s0 = inlined_call_operand.hbm [shape: c64[4,2,8,8], index: 0, kind: input, shape index: {}]   ;;  %s62_s1 = inlined_call_operand.vmem [shape: f32[4,2,8,8], index: 1, kind: output, shape index: {}]  }
   0x1   :  { %s3_s8 = sshll.u32 %s62_s1, 4  ;;  %s9_s11 = scalar_lea.hbm %s61_s0, 1024  ;;  %s4_s8 = int_to_ptr.vmem [resolvable:$true] %s3_s8 }
   0x2   :  { %p10_p0 = scmp.ne.s32.totalorder %s61_s0, %s9_s11  ;;  %s11_s16 = scalar_lea.hbm %s61_s0, 2048 }
   0x3   :  { %p12_p1 = scmp.lt.u32.totalorder %s11_s16, %s9_s11  ;;  %p13_p2 = scmp.lt.u32.totalorder %s9_s11, %s61_s0 }
   0x5   :  { %p14_p3 = por %p13_p2, %p12_p1 }
   0x7   :  { %p15_p4 = pnand %p14_p3, %p10_p0 }
   0x9   :  { %18 = shalt.err (!%p15_p4)  }
   0xa   :  { %s19_s1 = scalar_lea.vmem %s4_s8, 1024  ;;  %p24_p6 = scmp.lt.s32.totalorder %s4_s8, %s4_s8 }
   0xb   :  { %p20_p5 = scmp.ne.s32.totalorder %s4_s8, %s19_s1  ;;  %p25_p7 = scmp.lt.s32.totalorder %s19_s1, %s19_s1 }
   0xd   :  { %p26_p8 = por %p25_p7, %p24_p6 }
   0xf   :  { %p27_p9 = pnand %p26_p8, %p20_p5 }
  0x11   :  { %30 = shalt.err (!%p27_p9)  }
  0x12   :  { %6 = dma.hbm_to_vmem [thread:$0]  %s61_s0, 1024, %s4_s8, [#allocation0] }
  0x13   :  { %31 = dma.done.wait [#allocation0], 1024  }
  0x14   :  { %32 = vsyncadd [#allocation0], 4294966272 }
  0x15   :  { %8 = vsyncpa [#allocation0], 1 }

// kernel: custom-call.2
= control target key start
LH: loop header
LB: loop body
LE: loop exit
PB: predicated region body
PF: predicated region fallthrough
CT: control target
= control target key end

     0   :  { %s126_s0 = inlined_call_operand.vmem [shape: f32[8,2,8,8], index: 0, kind: input, shape index: {}]   ;;  %s127_s1 = inlined_call_operand.vmem [shape: f32[8,2,8,8], index: 1, kind: input, shape index: {}]   ;;  %s128_s2 = inlined_call_operand.hbm [shape: c64[8,2,8,8], index: 2, kind: output, shape index: {}]  }
   0x1   :  { %s87_s11 = scalar_lea.hbm %s128_s2, 2048 }
   0x2   :  { %4 = vsyncpa [#allocation0], 0  ;;  %s5_s14 = sshll.u32 %s126_s0, 4  ;;  %s6_s14 = int_to_ptr.vmem [resolvable:$true] %s5_s14 }
   0x3   :  { %s18_s15 = scalar_lea.vmem %s6_s14, 2048  ;;  %p23_p1 = scmp.lt.s32.totalorder %s6_s14, %s6_s14 }
   0x4   :  { %p19_p0 = scmp.ne.s32.totalorder %s6_s14, %s18_s15  ;;  %p24_p2 = scmp.lt.s32.totalorder %s18_s15, %s18_s15 }
   0x6   :  { %p25_p3 = por %p24_p2, %p23_p1 }
   0x8   :  { %p26_p4 = pnand %p25_p3, %p19_p0 }
   0xa   :  { %29 = shalt.err (!%p26_p4)  }
   0xb   :  { %p31_p5 = scmp.ne.s32.totalorder %s128_s2, %s87_s11  ;;  %s32_s0 = scalar_lea.hbm %s128_s2, 4096 }
   0xc   :  { %p33_p6 = scmp.lt.u32.totalorder %s32_s0, %s87_s11  ;;  %p34_p7 = scmp.lt.u32.totalorder %s87_s11, %s128_s2 }
   0xe   :  { %p35_p8 = por %p34_p7, %p33_p6 }
  0x10   :  { %p36_p9 = pnand %p35_p8, %p31_p5 }
  0x12   :  { %39 = shalt.err (!%p36_p9)  }
  0x13   :  { %8 = dma.vmem_to_hbm [thread:$0]  %s6_s14, 2048, %s128_s2, [#allocation0] }
  0x14   :  { %65 = dma.done.wait [#allocation0], 2048  }
  0x15   :  { %66 = vsyncadd [#allocation0], 4294965248 }
  0x16   :  { %10 = vsyncpa [#allocation0], 1 }
  0x17   :  { %11 = vsyncpa [#allocation1], 0  ;;  %s12_s28 = sshll.u32 %s127_s1, 4  ;;  %s13_s28 = int_to_ptr.vmem [resolvable:$true] %s12_s28 }
  0x18   :  { %s40_s29 = scalar_lea.vmem %s13_s28, 2048  ;;  %p45_p11 = scmp.lt.s32.totalorder %s13_s28, %s13_s28 }
  0x19   :  { %p41_p10 = scmp.ne.s32.totalorder %s13_s28, %s40_s29  ;;  %p46_p12 = scmp.lt.s32.totalorder %s40_s29, %s40_s29 }
  0x1b   :  { %p47_p13 = por %p46_p12, %p45_p11 }
  0x1d   :  { %p48_p0 = pnand %p47_p13, %p41_p10 }
  0x1f   :  { %51 = shalt.err (!%p48_p0)  }
  0x20   :  { %p53_p1 = scmp.ne.s32.totalorder %s87_s11, %s32_s0  ;;  %p56_p2 = scmp.lt.u32.totalorder %s32_s0, %s32_s0 }
  0x22   :  { %p57_p3 = por %p56_p2, %p34_p7 }
  0x24   :  { %p59_p4 = por %p57_p3, %p33_p6 }
  0x26   :  { %p60_p5 = pnand %p59_p4, %p53_p1 }
  0x28   :  { %63 = shalt.err (!%p60_p5)  }
  0x29   :  { %15 = dma.vmem_to_hbm [thread:$0]  %s13_s28, 2048, %s87_s11, [#allocation1] }
  0x2a   :  { %67 = dma.done.wait [#allocation1], 2048  }
  0x2b   :  { %68 = vsyncadd [#allocation1], 4294965248 }
  0x2c   :  { %17 = vsyncpa [#allocation1], 1 }

// kernel: projection_forward.1
= control target key start
LH: loop header
LB: loop body
LE: loop exit
PB: predicated region body
PF: predicated region fallthrough
CT: control target
= control target key end

     0   :  { %v7948_v0 = vmov 2   ;;  %v7949_v1 = vmov 1   ;;  %v7950_v8 = vmov 0   ;;  %v7951_v13 = vmov 3   ;;  %s12288_s1 = inlined_call_operand.vmem [shape: f32[1,128,4], index: 1, kind: input, shape index: {}]   ;;  %s12289_s0 = inlined_call_operand.<no memory space> [shape: s32[1], index: 0, kind: input, shape index: {}]   ;;  %s12290_s4 = inlined_call_operand.vmem [shape: f32[1,128,128], index: 4, kind: output, shape index: {0}]   ;;  %s12291_s5 = inlined_call_operand.vmem [shape: f32[1,128,128], index: 5, kind: output, shape index: {1}]   ;;  %s12292_s2 = inlined_call_operand.vmem [shape: f32[1,4,128,128], index: 2, kind: input, shape index: {}]   ;;  %s12293_s3 = inlined_call_operand.vmem [shape: f32[1,4,128,128], index: 3, kind: input, shape index: {}]  }
   0x1   :  { %7392 = vset.pattern.permute.xlu0 %v7948_v0  ;;  %7391 = vset.pattern.permute.xlu1 %v7949_v1  ;;  %v18_v2 = vld [vmem:[%s12288_s1] sm:$0xff]  ;;  %v21_v3 = vld [vmem:[%s12288_s1 + $0x18] sm:$0xff]  ;;  %v19_v4 = vld [vmem:[%s12288_s1 + $0x8] sm:$0xff]  ;;  %p4673_p0 = scmp.le.s32.totalorder %s12289_s0, 0 }
   0x2   :  { %358 = vperm.xlu0 %7392, %v18_v2   ;;  %196 = vperm.xlu1 %7391, %v18_v2   ;;  %v24_v5 = vld [vmem:[%s12288_s1 + $0x30] sm:$0xff]  ;;  %v8001_v6 = vld [vmem:[%s12288_s1 + $0x48] sm:$0xff]  ;;  %v22_v9 = vld [vmem:[%s12288_s1 + $0x20] sm:$0xff] }
   0x3   :  { %v20_v7 = vld [vmem:[%s12288_s1 + $0x10] sm:$0xff]  ;;  %v25_v10 = vld [vmem:[%s12288_s1 + $0x38] sm:$0xff]  ;;  %v8025_v12 = vld [vmem:[%s12288_s1 + $0x68] sm:$0xff] }
   0x4   :  { %v8019_v11 = vld [vmem:[%s12288_s1 + $0x50] sm:$0xff]  ;;  %v23_v14 = vld [vmem:[%s12288_s1 + $0x28] sm:$0xff]  ;;  %v8041_v15 = vld [vmem:[%s12288_s1 + $0x60] sm:$0xff] }
   0x5   :  { %v8047_v16 = vld [vmem:[%s12288_s1 + $0x78] sm:$0xff]  ;;  %v26_v17 = vld [vmem:[%s12288_s1 + $0x40] sm:$0xff]  ;;  %v8122_v36 = vld [vmem:[%s12288_s1 + $0x70] sm:$0xff] }
   0x6   :  { %370 = vperm.xlu0 %7392, %v21_v3   ;;  %200 = vperm.xlu1 %7391, %v19_v4   ;;  %v29_v18 = vld [vmem:[%s12288_s1 + $0x58] sm:$0xff]  ;;  %v35_v43 = vld [vmem:[%s12292_s2 + $0x8] sm:$0xff]  ;;  %v4561_v45 = vld [vmem:[%s12292_s2 + $0x80] sm:$0xff] }
   0x7   :  { %v4562_v46 = vld [vmem:[%s12292_s2 + $0x88] sm:$0xff]  ;;  %v4577_v49 = vld [vmem:[%s12293_s3 + $0x80] sm:$0xff]  ;;  %v4596_v58 = vld [vmem:[%s12292_s2 + $0x118] sm:$0xff] }
   0x8   :  { %v147_v47 = vld [vmem:[%s12293_s3 + $0x8] sm:$0xff]  ;;  %v34_v50 = vld [vmem:[%s12292_s2] sm:$0xff]  ;;  %v4563_v60 = vld [vmem:[%s12292_s2 + $0x90] sm:$0xff] }
   0x9   :  { %v146_v51 = vld [vmem:[%s12293_s3] sm:$0xff]  ;;  %v4578_v55 = vld [vmem:[%s12293_s3 + $0x88] sm:$0xff] }
   0xa   :  { %382 = vperm.xlu0 %7392, %v24_v5   ;;  %7393 = vset.pattern.permute.xlu1 %v7948_v0  ;;  %v4593_v53 = vld [vmem:[%s12292_s2 + $0x100] sm:$0xff]  ;;  %v4594_v59 = vld [vmem:[%s12292_s2 + $0x108] sm:$0xff] }
   0xb   :  { %362 = vperm.xlu1 %7393, %v19_v4   ;;  %v4609_v54 = vld [vmem:[%s12293_s3 + $0x100] sm:$0xff]  ;;  %v4610_v63 = vld [vmem:[%s12293_s3 + $0x108] sm:$0xff] }
   0xe   :  { %394 = vperm.xlu0 %7392, %v8001_v6  }
   0xf   :  { %7394 = vset.pattern.permute.xlu1 %v7950_v8 }
  0x10   :  { %62 = vperm.xlu1 %7394, %v20_v7  }
  0x12   :  { %7410 = vset.pattern.permute.xlu0 %v7949_v1 }
  0x13   :  { %212 = vperm.xlu0 %7410, %v22_v9  }
  0x14   :  { %7395 = vset.pattern.permute.xlu1 %v7949_v1 }
  0x15   :  { %204 = vperm.xlu1 %7395, %v20_v7  }
  0x17   :  { %224 = vperm.xlu0 %7410, %v25_v10  }
  0x19   :  { %208 = vperm.xlu1 %7395, %v21_v3  }
  0x1b   :  { %236 = vperm.xlu0 %7410, %v8019_v11  }
  0x1d   :  { %7396 = vset.pattern.permute.xlu1 %v7951_v13 }
  0x1e   :  { %524 = vperm.xlu1 %7396, %v19_v4  }
  0x1f   :  { %248 = vperm.xlu0 %7410, %v8025_v12  }
  0x22   :  { %7397 = vset.pattern.permute.xlu1 %v7948_v0 }
  0x23   :  { %7417 = vset.pattern.permute.xlu0 %v7950_v8  ;;  %366 = vperm.xlu1 %7397, %v20_v7  }
  0x24   :  { %52 = vperm.xlu0 %7417, %v18_v2  }
  0x27   :  { %7398 = vset.pattern.permute.xlu1 %v7950_v8 }
  0x28   :  { %57 = vperm.xlu0 %7417, %v19_v4   ;;  %72 = vperm.xlu1 %7398, %v22_v9   ;;  %v149_v4 = vld [vmem:[%s12293_s3 + $0x18] sm:$0xff] }
  0x2c   :  { %67 = vperm.xlu0 %7417, %v21_v3   ;;  %77 = vperm.xlu1 %7398, %v23_v14  }
  0x30   :  { %82 = vperm.xlu0 %7417, %v24_v5   ;;  %7399 = vset.pattern.permute.xlu1 %v7949_v1 }
  0x31   :  { %216 = vperm.xlu1 %7399, %v23_v14  }
  0x34   :  { %97 = vperm.xlu0 %7417, %v8001_v6  }
  0x35   :  { %7400 = vset.pattern.permute.xlu1 %v7951_v13 }
  0x36   :  { %528 = vperm.xlu1 %7400, %v20_v7  }
  0x38   :  { %112 = vperm.xlu0 %7417, %v8041_v15  }
  0x3a   :  { %7401 = vset.pattern.permute.xlu1 %v7948_v0 }
  0x3b   :  { %374 = vperm.xlu1 %7401, %v22_v9  }
  0x3c   :  { %127 = vperm.xlu0 %7417, %v8047_v16  }
  0x3f   :  { %378 = vperm.xlu1 %7401, %v23_v14  }
  0x40   :  { %7421 = vset.pattern.permute.xlu0 %v7951_v13 }
  0x41   :  { %520 = vperm.xlu0 %7421, %v18_v2  }
  0x43   :  { %7402 = vset.pattern.permute.xlu1 %v7950_v8 }
  0x44   :  { %87 = vperm.xlu1 %7402, %v25_v10  }
  0x45   :  { %532 = vperm.xlu0 %7421, %v21_v3   ;;  %v37_v3 = vld [vmem:[%s12292_s2 + $0x18] sm:$0xff] }
  0x48   :  { %7403 = vset.pattern.permute.xlu1 %v7949_v1 }
  0x49   :  { %220 = vperm.xlu1 %7403, %v24_v5   ;;  %544 = vperm.xlu0 %7421, %v24_v5  }
  0x4d   :  { %7404 = vset.pattern.permute.xlu1 %v7951_v13  ;;  %556 = vperm.xlu0 %7421, %v8001_v6  }
  0x4e   :  { %536 = vperm.xlu1 %7404, %v22_v9   ;;  %v4579_v9 = vld [vmem:[%s12293_s3 + $0x90] sm:$0xff] }
  0x51   :  { %568 = vperm.xlu0 %7421, %v8041_v15  }
  0x52   :  { %540 = vperm.xlu1 %7404, %v23_v14  }
  0x55   :  { %7423 = vset.pattern.permute.xlu0 %v7948_v0 }
  0x56   :  { %7405 = vset.pattern.permute.xlu1 %v7948_v0  ;;  %406 = vperm.xlu0 %7423, %v8041_v15  }
  0x57   :  { %386 = vperm.xlu1 %7405, %v25_v10  }
  0x5a   :  { %418 = vperm.xlu0 %7423, %v8047_v16  }
  0x5b   :  { %7406 = vset.pattern.permute.xlu1 %v7950_v8 }
  0x5c   :  { %92 = vperm.xlu1 %7406, %v26_v17  }
  0x5e   :  { %7427 = vset.pattern.permute.xlu0 %v7951_v13 }
  0x60   :  { %7407 = vset.pattern.permute.xlu1 %v7949_v1 }
  0x61   :  { %228 = vperm.xlu1 %7407, %v26_v17  }
  0x65   :  { %232 = vperm.xlu1 %7407, %v8001_v6  }
  0x69   :  { %7408 = vset.pattern.permute.xlu1 %v7951_v13 }
  0x6a   :  { %548 = vperm.xlu1 %7408, %v25_v10  }
  0x6e   :  { %7409 = vset.pattern.permute.xlu1 %v7948_v0 }
  0x6f   :  { %390 = vperm.xlu1 %7409, %v26_v17  }
  0x73   :  { %7411 = vset.pattern.permute.xlu1 %v7950_v8 }
  0x74   :  { %102 = vperm.xlu1 %7411, %v8019_v11  }
  0x78   :  { %107 = vperm.xlu1 %7411, %v29_v18  }
  0x7c   :  { %7412 = vset.pattern.permute.xlu1 %v7949_v1 }
  0x7d   :  { %240 = vperm.xlu1 %7412, %v29_v18  }
  0x81   :  { %7413 = vset.pattern.permute.xlu1 %v7951_v13  ;;  %v8077_v19 = vpop.permute.xlu1 %196  ;;  %v8079_v20 = vpop.permute.xlu0 %358 }
  0x82   :  { %552 = vperm.xlu1 %7413, %v26_v17   ;;  %v259_v62 = vmul.f32 %v4561_v45, %v8077_v19  ;;  %v308_v5 = vmul.f32 %v4577_v49, %v8077_v19  ;;  %v421_v6 = vmul.f32 %v4593_v53, %v8079_v20  ;;  %v4580_v19 = vld [vmem:[%s12293_s3 + $0x98] sm:$0xff] }
  0x85   :  { %v8081_v21 = vpop.permute.xlu1 %200  ;;  %v8083_v22 = vpop.permute.xlu0 %370 }
  0x86   :  { %7414 = vset.pattern.permute.xlu1 %v7948_v0  ;;  %v260_v57 = vmul.f32 %v4562_v46, %v8081_v21  ;;  %v309_v7 = vmul.f32 %v4578_v55, %v8081_v21  ;;  %v424_v14 = vmul.f32 %v4596_v58, %v8083_v22  ;;  %v4612_v21 = vld [vmem:[%s12293_s3 + $0x118] sm:$0xff] }
  0x87   :  { %398 = vperm.xlu1 %7414, %v8019_v11  }
  0x89   :  { %v8087_v23 = vpop.permute.xlu0 %382 }
  0x8a   :  { %v8089_v24 = vpop.permute.xlu1 %362 }
  0x8b   :  { %402 = vperm.xlu1 %7414, %v29_v18  }
  0x8d   :  { %v8091_v25 = vpop.permute.xlu0 %394 }
  0x8f   :  { %7415 = vset.pattern.permute.xlu1 %v7950_v8  ;;  %v8094_v26 = vpop.permute.xlu1 %62 }
  0x90   :  { %117 = vperm.xlu1 %7415, %v8025_v12  }
  0x92   :  { %v8097_v27 = vpop.permute.xlu0 %212 }
  0x94   :  { %7416 = vset.pattern.permute.xlu1 %v7949_v1  ;;  %v8100_v28 = vpop.permute.xlu1 %204 }
  0x95   :  { %244 = vperm.xlu1 %7416, %v8041_v15   ;;  %v422_v15 = vmul.f32 %v4594_v59, %v8089_v24  ;;  %v261_v17 = vmul.f32 %v4563_v60, %v8100_v28  ;;  %v473_v59 = vmul.f32 %v4612_v21, %v8083_v22  ;;  %v4627_v22 = vld [vmem:[%s12292_s2 + $0x190] sm:$0xff] }
  0x96   :  { %v8103_v29 = vpop.permute.xlu0 %224 }
  0x98   :  { %v8105_v30 = vpop.permute.xlu1 %208 }
  0x99   :  { %7418 = vset.pattern.permute.xlu1 %v7951_v13 }
  0x9a   :  { %560 = vperm.xlu1 %7418, %v8019_v11   ;;  %v8109_v31 = vpop.permute.xlu0 %236 }
  0x9d   :  { %v8111_v32 = vpop.permute.xlu1 %524 }
  0x9e   :  { %564 = vperm.xlu1 %7418, %v29_v18   ;;  %v8113_v33 = vpop.permute.xlu0 %248  ;;  %v4564_v18 = vld [vmem:[%s12292_s2 + $0x98] sm:$0xff] }
  0x9f   :  { %v262_v53 = vmul.f32 %v4564_v18, %v8105_v30  ;;  %v4644_v18 = vld [vmem:[%s12293_s3 + $0x198] sm:$0xff] }
  0xa2   :  { %7419 = vset.pattern.permute.xlu1 %v7948_v0  ;;  %v8116_v34 = vpop.permute.xlu1 %366 }
  0xa3   :  { %v53_v35 = vpop.permute.xlu0 %52  ;;  %410 = vperm.xlu1 %7419, %v8025_v12  }
  0xa4   :  { %v162_v2 = vmul.f32 %v146_v51, %v53_v35  ;;  %v4611_v51 = vld [vmem:[%s12293_s3 + $0x110] sm:$0xff] }
  0xa7   :  { %v58_v37 = vpop.permute.xlu0 %57  ;;  %7420 = vset.pattern.permute.xlu1 %v7950_v8  ;;  %v8125_v38 = vpop.permute.xlu1 %72  ;;  %v36_v8 = vld [vmem:[%s12292_s2 + $0x10] sm:$0xff] }
  0xa8   :  { %122 = vperm.xlu1 %7420, %v8122_v36   ;;  %v131_v52 = vmul.f32 %v58_v37, %v35_v43  ;;  %v163_v61 = vmul.f32 %v147_v47, %v58_v37  ;;  %v148_v37 = vld [vmem:[%s12293_s3 + $0x10] sm:$0xff]  ;;  %v4626_v43 = vld [vmem:[%s12292_s2 + $0x188] sm:$0xff]  ;;  %v132_v49 = vmul.f32 %v8094_v26, %v36_v8 }
  0xa9   :  { %v164_v60 = vmul.f32 %v148_v37, %v8094_v26  ;;  %v4643_v26 = vld [vmem:[%s12293_s3 + $0x190] sm:$0xff] }
  0xaa   :  { %v276_v10 = vadd.f32 %v260_v57, %v131_v52  ;;  %v325_v45 = vadd.f32 %v309_v7, %v163_v61  ;;  %v324_v52 = vadd.f32 %v308_v5, %v162_v2  ;;  %v277_v61 = vadd.f32 %v261_v17, %v132_v49  ;;  %v4628_v17 = vld [vmem:[%s12292_s2 + $0x198] sm:$0xff] }
  0xab   :  { %v68_v39 = vpop.permute.xlu0 %67  ;;  %v8128_v40 = vpop.permute.xlu1 %77 }
  0xac   :  { %7422 = vset.pattern.permute.xlu1 %v7949_v1  ;;  %v130_v1 = vmul.f32 %v53_v35, %v34_v50  ;;  %v471_v35 = vmul.f32 %v4610_v63, %v8089_v24  ;;  %v133_v46 = vmul.f32 %v68_v39, %v37_v3  ;;  %v165_v47 = vmul.f32 %v149_v4, %v68_v39  ;;  %v4625_v39 = vld [vmem:[%s12292_s2 + $0x180] sm:$0xff] }
  0xad   :  { %252 = vperm.xlu1 %7422, %v8122_v36   ;;  %v310_v50 = vmul.f32 %v4579_v9, %v8100_v28  ;;  %v438_v57 = vadd.f32 %v422_v15, %v276_v10  ;;  %v4641_v28 = vld [vmem:[%s12293_s3 + $0x180] sm:$0xff]  ;;  %v472_v63 = vmul.f32 %v4611_v51, %v8116_v34 }
  0xae   :  { %v275_v24 = vadd.f32 %v259_v62, %v130_v1  ;;  %v584_v62 = vmul.f32 %v4626_v43, %v8111_v32  ;;  %v487_v1 = vadd.f32 %v471_v35, %v325_v45  ;;  %v278_v2 = vadd.f32 %v262_v53, %v133_v46  ;;  %v150_v53 = vld [vmem:[%s12293_s3 + $0x20] sm:$0xff] }
  0xaf   :  { %v8132_v41 = vpop.permute.xlu0 %82  ;;  %v326_v9 = vadd.f32 %v310_v50, %v164_v60  ;;  %v39_v60 = vld [vmem:[%s12292_s2 + $0x28] sm:$0xff] }
  0xb0   :  { %v8134_v42 = vpop.permute.xlu1 %216  ;;  %v437_v5 = vadd.f32 %v421_v6, %v275_v24  ;;  %v8265_v15 = vadd.f32 %v584_v62, %v438_v57  ;;  %v440_v37 = vadd.f32 %v424_v14, %v278_v2  ;;  %v4565_v14 = vld [vmem:[%s12292_s2 + $0xa0] sm:$0xff]  ;;  %v4582_v57 = vld [vmem:[%s12293_s3 + $0xa8] sm:$0xff] }
  0xb1   :  { %256 = vperm.xlu1 %7422, %v8047_v16   ;;  %v4581_v24 = vld [vmem:[%s12293_s3 + $0xa0] sm:$0xff]  ;;  %v151_v2 = vld [vmem:[%s12293_s3 + $0x28] sm:$0xff] }
  0xb2   :  { %12611 = vst [vmem:[#allocation4_spill] sm:$0xff] %v8265_v15  ;;  %v312_v62 = vmul.f32 %v4581_v24, %v8097_v27 }
  0xb3   :  { %v8140_v44 = vpop.permute.xlu0 %97 }
  0xb5   :  { %7424 = vset.pattern.permute.xlu1 %v7951_v13  ;;  %v8152_v48 = vpop.permute.xlu1 %528 }
  0xb6   :  { %572 = vperm.xlu1 %7424, %v8025_v12   ;;  %v470_v12 = vmul.f32 %v4609_v54, %v8079_v20  ;;  %v311_v54 = vmul.f32 %v4580_v19, %v8105_v30  ;;  %v4642_v30 = vld [vmem:[%s12293_s3 + $0x188] sm:$0xff]  ;;  %v634_v6 = vmul.f32 %v4643_v26, %v8152_v48 }
  0xb7   :  { %v8173_v56 = vpop.permute.xlu0 %112 }
  0xb8   :  { %v327_v3 = vadd.f32 %v311_v54, %v165_v47  ;;  %v486_v7 = vadd.f32 %v470_v12, %v324_v52  ;;  %v38_v52 = vld [vmem:[%s12292_s2 + $0x20] sm:$0xff] }
  0xba   :  { %7425 = vset.pattern.permute.xlu1 %v7948_v0  ;;  %v8205_v11 = vpop.permute.xlu1 %374  ;;  %v4595_v0 = vld [vmem:[%s12292_s2 + $0x110] sm:$0xff]  ;;  %v489_v43 = vadd.f32 %v473_v59, %v327_v3  ;;  %v263_v59 = vmul.f32 %v4565_v14, %v8097_v27  ;;  %v4598_v3 = vld [vmem:[%s12292_s2 + $0x128] sm:$0xff] }
  0xbb   :  { %414 = vperm.xlu1 %7425, %v8122_v36   ;;  %v8221_v20 = vpop.permute.xlu0 %127  ;;  %v423_v55 = vmul.f32 %v4595_v0, %v8116_v34  ;;  %v633_v34 = vmul.f32 %v4642_v30, %v8111_v32  ;;  %v488_v0 = vadd.f32 %v472_v63, %v326_v9  ;;  %v4613_v30 = vld [vmem:[%s12293_s3 + $0x120] sm:$0xff]  ;;  %v134_v63 = vmul.f32 %v8125_v38, %v38_v52 }
  0xbd   :  { %v439_v10 = vadd.f32 %v423_v55, %v277_v61  ;;  %v8281_v21 = vadd.f32 %v633_v34, %v487_v1  ;;  %v4566_v55 = vld [vmem:[%s12292_s2 + $0xa8] sm:$0xff]  ;;  %v4597_v61 = vld [vmem:[%s12292_s2 + $0x120] sm:$0xff]  ;;  %v166_v1 = vmul.f32 %v150_v53, %v8125_v38  ;;  %v313_v38 = vmul.f32 %v4582_v57, %v8134_v42 }
  0xbe   :  { %v8241_v58 = vpop.permute.xlu1 %378  ;;  %v264_v27 = vmul.f32 %v4566_v55, %v8134_v42  ;;  %v425_v26 = vmul.f32 %v4597_v61, %v8205_v11  ;;  %v167_v42 = vmul.f32 %v151_v2, %v8128_v40  ;;  %v4568_v2 = vld [vmem:[%s12292_s2 + $0xb8] sm:$0xff] }
  0xbf   :  { %7426 = vset.pattern.permute.xlu1 %v7951_v13  ;;  %12614 = vst [vmem:[#allocation7_spill] sm:$0xff] %v8281_v21  ;;  %v426_v9 = vmul.f32 %v4598_v3, %v8241_v58  ;;  %v4584_v3 = vld [vmem:[%s12293_s3 + $0xb8] sm:$0xff] }
  0xc0   :  { %v521_v4 = vpop.permute.xlu0 %520  ;;  %576 = vperm.xlu1 %7426, %v8122_v36   ;;  %v585_v36 = vmul.f32 %v4627_v22, %v8152_v48  ;;  %v4614_v22 = vld [vmem:[%s12293_s3 + $0x128] sm:$0xff] }
  0xc1   :  { %v583_v8 = vmul.f32 %v4625_v39, %v521_v4  ;;  %v632_v13 = vmul.f32 %v4641_v28, %v521_v4  ;;  %v474_v4 = vmul.f32 %v4613_v30, %v8205_v11  ;;  %v475_v34 = vmul.f32 %v4614_v22, %v8241_v58  ;;  %v40_v30 = vld [vmem:[%s12292_s2 + $0x30] sm:$0xff]  ;;  %v43_v22 = vld [vmem:[%s12292_s2 + $0x48] sm:$0xff] }
  0xc2   :  { %v8297_v49 = vadd.f32 %v585_v36, %v439_v10  ;;  %v279_v11 = vadd.f32 %v263_v59, %v134_v63  ;;  %v328_v10 = vadd.f32 %v312_v62, %v166_v1  ;;  %v152_v62 = vld [vmem:[%s12293_s3 + $0x30] sm:$0xff] }
  0xc3   :  { %v8275_v12 = vadd.f32 %v583_v8, %v437_v5  ;;  %v8277_v19 = vadd.f32 %v632_v13, %v486_v7  ;;  %v8279_v32 = vpop.permute.xlu1 %87  ;;  %v4629_v5 = vld [vmem:[%s12292_s2 + $0x1a0] sm:$0xff]  ;;  %v135_v13 = vmul.f32 %v8128_v40, %v39_v60  ;;  %v4567_v63 = vld [vmem:[%s12292_s2 + $0xb0] sm:$0xff] }
  0xc4   :  { %v533_v35 = vpop.permute.xlu0 %532  ;;  %580 = vperm.xlu1 %7426, %v8047_v16   ;;  %12616 = vst [vmem:[#allocation9_spill] sm:$0xff] %v8297_v49  ;;  %v8299_v16 = vadd.f32 %v634_v6, %v488_v0  ;;  %v4645_v7 = vld [vmem:[%s12293_s3 + $0x1a0] sm:$0xff]  ;;  %v329_v6 = vadd.f32 %v313_v38, %v167_v42  ;;  %v490_v40 = vadd.f32 %v474_v4, %v328_v10  ;;  %v4583_v1 = vld [vmem:[%s12293_s3 + $0xb0] sm:$0xff]  ;;  %v41_v4 = vld [vmem:[%s12292_s2 + $0x38] sm:$0xff] }
  0xc5   :  { %12612 = vst [vmem:[#allocation5_spill] sm:$0xff] %v8275_v12  ;;  %12613 = vst [vmem:[#allocation6_spill] sm:$0xff] %v8277_v19  ;;  %v586_v45 = vmul.f32 %v4628_v17, %v533_v35  ;;  %v635_v46 = vmul.f32 %v4644_v18, %v533_v35  ;;  %5282 = vmatprep.mubr.f32.mxu0 %v8275_v12  ;;  %5338 = vmatprep.mubr.f32.mxu1 %v8277_v19  ;;  %v4630_v17 = vld [vmem:[%s12292_s2 + $0x1a8] sm:$0xff]  ;;  %v4615_v42 = vld [vmem:[%s12293_s3 + $0x130] sm:$0xff] }
  0xc6   :  { %v8288_v48 = vpack.c.bf16 %v8265_v15, %v8275_v12  ;;  %v8292_v47 = vpack.c.bf16 %v8281_v21, %v8277_v19  ;;  %12617 = vst [vmem:[#allocation10_spill] sm:$0xff] %v8299_v16  ;;  %v4646_v18 = vld [vmem:[%s12293_s3 + $0x1a8] sm:$0xff]  ;;  %v280_v36 = vadd.f32 %v264_v27, %v135_v13  ;;  %v136_v27 = vmul.f32 %v8132_v41, %v40_v30 }
  0xc7   :  { %v8301_v50 = vadd.f32 %v586_v45, %v440_v37  ;;  %v8303_v51 = vadd.f32 %v635_v46, %v489_v43  ;;  %v441_v37 = vadd.f32 %v425_v26, %v279_v11  ;;  %v491_v46 = vadd.f32 %v475_v34, %v329_v6  ;;  %v155_v26 = vld [vmem:[%s12293_s3 + $0x48] sm:$0xff] }
  0xc8   :  { %12615 = vst [vmem:[#allocation8_spill] sm:$0xff] %v8292_v47  ;;  %6259 = vmatprep.subr.bf16.mxu0 %v8288_v48  ;;  %6291 = vmatprep.subr.bf16.mxu1 %v8292_v47  ;;  %v8317_v54 = vpop.permute.xlu1 %220  ;;  %v442_v45 = vadd.f32 %v426_v9, %v280_v36  ;;  %v168_v38 = vmul.f32 %v152_v62, %v8132_v41  ;;  %v4599_v41 = vld [vmem:[%s12292_s2 + $0x130] sm:$0xff]  ;;  %v4602_v9 = vld [vmem:[%s12292_s2 + $0x148] sm:$0xff]  ;;  %v545_v30 = vpop.permute.xlu0 %544 }
  0xc9   :  { %12618 = vst [vmem:[#allocation11_spill] sm:$0xff] %v8301_v50  ;;  %12619 = vst [vmem:[#allocation12_spill] sm:$0xff] %v8303_v51  ;;  %6261 = vmatpush3.bf16.msra.mxu0 %v8288_v48  ;;  %6293 = vmatpush3.bf16.msra.mxu1 %v8292_v47  ;;  %v8328_v39 = vpack.c.bf16 %v8301_v50, %v8297_v49  ;;  %v8332_v28 = vpack.c.bf16 %v8303_v51, %v8299_v16  ;;  %v4618_v34 = vld [vmem:[%s12293_s3 + $0x148] sm:$0xff] }
  0xca   :  { %v315_v11 = vmul.f32 %v4584_v3, %v8103_v29  ;;  %v4570_v10 = vld [vmem:[%s12292_s2 + $0xc8] sm:$0xff]  ;;  %v171_v36 = vmul.f32 %v155_v26, %v8140_v44  ;;  %v137_v6 = vmul.f32 %v8279_v32, %v41_v4 }
  0xcb   :  { %12620 = vst [vmem:[#allocation13_spill] sm:$0xff] %v8332_v28  ;;  %6263 = vmatprep.subr.bf16.mxu0 %v8328_v39  ;;  %6295 = vmatprep.subr.bf16.mxu1 %v8332_v28 }
  0xcd   :  { %6265 = vmatpush3.bf16.msra.mxu0 %v8328_v39  ;;  %6297 = vmatpush3.bf16.msra.mxu1 %v8332_v28  ;;  %v537_v8 = vpop.permute.xlu1 %536 }
  0xce   :  { %v587_v0 = vmul.f32 %v4629_v5, %v537_v8  ;;  %v636_v35 = vmul.f32 %v4645_v7, %v537_v8  ;;  %v153_v5 = vld [vmem:[%s12293_s3 + $0x38] sm:$0xff]  ;;  %v265_v7 = vmul.f32 %v4567_v63, %v8317_v54  ;;  %v314_v8 = vmul.f32 %v4583_v1, %v8317_v54 }
  0xcf   :  { %v266_v54 = vmul.f32 %v4568_v2, %v8103_v29  ;;  %v4600_v29 = vld [vmem:[%s12292_s2 + $0x138] sm:$0xff] }
  0xd0   :  { %v8380_v24 = vadd.f32 %v587_v0, %v441_v37  ;;  %v8382_v52 = vadd.f32 %v636_v35, %v490_v40  ;;  %v169_v0 = vmul.f32 %v153_v5, %v8279_v32  ;;  %v4616_v35 = vld [vmem:[%s12293_s3 + $0x138] sm:$0xff]  ;;  %v427_v37 = vmul.f32 %v4599_v41, %v8087_v23  ;;  %v4631_v32 = vld [vmem:[%s12292_s2 + $0x1b0] sm:$0xff] }
  0xd1   :  { %v541_v43 = vpop.permute.xlu1 %540  ;;  %v476_v40 = vmul.f32 %v4615_v42, %v8087_v23  ;;  %v282_v2 = vadd.f32 %v266_v54, %v137_v6  ;;  %v589_v5 = vmul.f32 %v4631_v32, %v545_v30 }
  0xd2   :  { %v588_v58 = vmul.f32 %v4630_v17, %v541_v43  ;;  %v637_v14 = vmul.f32 %v4646_v18, %v541_v43  ;;  %12621 = vst [vmem:[#allocation14_spill] sm:$0xff] %v8380_v24  ;;  %12622 = vst [vmem:[#allocation15_spill] sm:$0xff] %v8382_v52  ;;  %v4586_v17 = vld [vmem:[%s12293_s3 + $0xc8] sm:$0xff]  ;;  %v139_v18 = vmul.f32 %v8140_v44, %v43_v22 }
  0xd3   :  { %v281_v43 = vadd.f32 %v265_v7, %v136_v27  ;;  %v430_v44 = vmul.f32 %v4602_v9, %v8091_v25  ;;  %v331_v3 = vadd.f32 %v315_v11, %v169_v0 }
  0xd4   :  { %v8384_v53 = vadd.f32 %v588_v58, %v442_v45  ;;  %v8386_v55 = vadd.f32 %v637_v14, %v491_v46  ;;  %v330_v45 = vadd.f32 %v314_v8, %v168_v38  ;;  %v479_v58 = vmul.f32 %v4618_v34, %v8091_v25  ;;  %v4647_v14 = vld [vmem:[%s12293_s3 + $0x1b0] sm:$0xff]  ;;  %v4632_v25 = vld [vmem:[%s12292_s2 + $0x1b8] sm:$0xff] }
  0xd5   :  { %v4648_v38 = vld [vmem:[%s12293_s3 + $0x1b8] sm:$0xff]  ;;  %v443_v26 = vadd.f32 %v427_v37, %v281_v43  ;;  %v638_v7 = vmul.f32 %v4647_v14, %v545_v30  ;;  %v4569_v37 = vld [vmem:[%s12292_s2 + $0xc0] sm:$0xff]  ;;  %v4634_v30 = vld [vmem:[%s12292_s2 + $0x1c8] sm:$0xff] }
  0xd6   :  { %12623 = vst [vmem:[#allocation16_spill] sm:$0xff] %v8384_v53  ;;  %12624 = vst [vmem:[#allocation17_spill] sm:$0xff] %v8386_v55  ;;  %v387_v57 = vpop.permute.xlu1 %386  ;;  %v8390_v59 = vpack.c.bf16 %v8384_v53, %v8380_v24  ;;  %v8394_v60 = vpack.c.bf16 %v8386_v55, %v8382_v52  ;;  %v492_v4 = vadd.f32 %v476_v40, %v330_v45  ;;  %v4585_v40 = vld [vmem:[%s12293_s3 + $0xc0] sm:$0xff] }
  0xd7   :  { %v428_v1 = vmul.f32 %v4600_v29, %v387_v57  ;;  %v477_v23 = vmul.f32 %v4616_v35, %v387_v57  ;;  %v8484_v11 = vadd.f32 %v589_v5, %v443_v26  ;;  %v42_v43 = vld [vmem:[%s12292_s2 + $0x40] sm:$0xff] }
  0xd8   :  { %12625 = vst [vmem:[#allocation18_spill] sm:$0xff] %v8394_v60  ;;  %6267 = vmatprep.subr.bf16.mxu0 %v8390_v59  ;;  %6299 = vmatprep.subr.bf16.mxu1 %v8394_v60  ;;  %v154_v45 = vld [vmem:[%s12293_s3 + $0x40] sm:$0xff] }
  0xd9   :  { %6269 = vmatpush3.bf16.msra.mxu0 %v8390_v59  ;;  %6301 = vmatpush3.bf16.msra.mxu1 %v8394_v60  ;;  %v444_v57 = vadd.f32 %v428_v1, %v282_v2  ;;  %v493_v9 = vadd.f32 %v477_v23, %v331_v3  ;;  %12626 = vst [vmem:[#allocation19_spill] sm:$0xff] %v8484_v11 }
  0xdb   :  { %v8400_v61 = vpop.permute.xlu1 %92 }
  0xdc   :  { %v138_v1 = vmul.f32 %v8400_v61, %v42_v43  ;;  %v170_v23 = vmul.f32 %v154_v45, %v8400_v61  ;;  %v4571_v43 = vld [vmem:[%s12292_s2 + $0xd0] sm:$0xff] }
  0xdd   :  { %v4587_v45 = vld [vmem:[%s12293_s3 + $0xd0] sm:$0xff] }
  0xe0   :  { %v8436_v13 = vpop.permute.xlu1 %228 }
  0xe1   :  { %v316_v32 = vmul.f32 %v4585_v40, %v8436_v13 }
  0xe4   :  { %v233_v46 = vpop.permute.xlu1 %232 }
  0xe5   :  { %v268_v62 = vmul.f32 %v4570_v10, %v233_v46  ;;  %v317_v63 = vmul.f32 %v4586_v17, %v233_v46  ;;  %v8486_v10 = vadd.f32 %v638_v7, %v492_v4  ;;  %v4601_v46 = vld [vmem:[%s12292_s2 + $0x140] sm:$0xff] }
  0xe7   :  { %v284_v22 = vadd.f32 %v268_v62, %v139_v18  ;;  %v333_v27 = vadd.f32 %v317_v63, %v171_v36  ;;  %12627 = vst [vmem:[#allocation20_spill] sm:$0xff] %v8486_v10  ;;  %v4650_v62 = vld [vmem:[%s12293_s3 + $0x1c8] sm:$0xff]  ;;  %v557_v63 = vpop.permute.xlu0 %556 }
  0xe8   :  { %v641_v26 = vmul.f32 %v4650_v62, %v557_v63  ;;  %v45_v62 = vld [vmem:[%s12292_s2 + $0x58] sm:$0xff] }
  0xe9   :  { %v446_v8 = vadd.f32 %v430_v44, %v284_v22  ;;  %v495_v41 = vadd.f32 %v479_v58, %v333_v27  ;;  %v549_v42 = vpop.permute.xlu1 %548  ;;  %v4617_v44 = vld [vmem:[%s12293_s3 + $0x140] sm:$0xff]  ;;  %v267_v58 = vmul.f32 %v4569_v37, %v8436_v13 }
  0xea   :  { %v590_v34 = vmul.f32 %v4632_v25, %v549_v42  ;;  %v639_v54 = vmul.f32 %v4648_v38, %v549_v42  ;;  %v4633_v13 = vld [vmem:[%s12292_s2 + $0x1c0] sm:$0xff]  ;;  %v332_v25 = vadd.f32 %v316_v32, %v170_v23  ;;  %v592_v38 = vmul.f32 %v4634_v30, %v557_v63  ;;  %v4572_v32 = vld [vmem:[%s12292_s2 + $0xd8] sm:$0xff]  ;;  %v4603_v63 = vld [vmem:[%s12292_s2 + $0x150] sm:$0xff] }
  0xeb   :  { %v4649_v22 = vld [vmem:[%s12293_s3 + $0x1c0] sm:$0xff]  ;;  %v283_v27 = vadd.f32 %v267_v58, %v138_v1  ;;  %v4588_v30 = vld [vmem:[%s12293_s3 + $0xd8] sm:$0xff]  ;;  %v4619_v1 = vld [vmem:[%s12293_s3 + $0x150] sm:$0xff]  ;;  %v269_v23 = vmul.f32 %v4571_v43, %v8109_v31 }
  0xec   :  { %v8488_v17 = vadd.f32 %v590_v34, %v444_v57  ;;  %v8490_v18 = vadd.f32 %v639_v54, %v493_v9  ;;  %v8540_v61 = vadd.f32 %v592_v38, %v446_v8  ;;  %v8542_v9 = vadd.f32 %v641_v26, %v495_v41 }
  0xee   :  { %12628 = vst [vmem:[#allocation21_spill] sm:$0xff] %v8488_v17  ;;  %12629 = vst [vmem:[#allocation22_spill] sm:$0xff] %v8490_v18  ;;  %v391_v36 = vpop.permute.xlu1 %390  ;;  %v8494_v6 = vpack.c.bf16 %v8488_v17, %v8484_v11  ;;  %v8498_v0 = vpack.c.bf16 %v8490_v18, %v8486_v10 }
  0xef   :  { %v429_v2 = vmul.f32 %v4601_v46, %v391_v36  ;;  %v478_v3 = vmul.f32 %v4617_v44, %v391_v36  ;;  %12631 = vst [vmem:[#allocation24_spill] sm:$0xff] %v8540_v61  ;;  %12632 = vst [vmem:[#allocation25_spill] sm:$0xff] %v8542_v9  ;;  %v44_v46 = vld [vmem:[%s12292_s2 + $0x50] sm:$0xff] }
  0xf0   :  { %12630 = vst [vmem:[#allocation23_spill] sm:$0xff] %v8498_v0  ;;  %6271 = vmatprep.subr.bf16.mxu0 %v8494_v6  ;;  %6303 = vmatprep.subr.bf16.mxu1 %v8498_v0  ;;  %v156_v44 = vld [vmem:[%s12293_s3 + $0x50] sm:$0xff] }
  0xf1   :  { %6273 = vmatpush3.bf16.msra.mxu0 %v8494_v6  ;;  %6305 = vmatpush3.bf16.msra.mxu1 %v8498_v0  ;;  %v445_v5 = vadd.f32 %v429_v2, %v283_v27  ;;  %v494_v7 = vadd.f32 %v478_v3, %v332_v25  ;;  %v318_v2 = vmul.f32 %v4587_v45, %v8109_v31  ;;  %v4604_v27 = vld [vmem:[%s12292_s2 + $0x158] sm:$0xff]  ;;  %v4635_v31 = vld [vmem:[%s12292_s2 + $0x1d0] sm:$0xff] }
  0xf2   :  { %v4620_v25 = vld [vmem:[%s12293_s3 + $0x158] sm:$0xff] }
  0xf3   :  { %v103_v29 = vpop.permute.xlu1 %102 }
  0xf4   :  { %v140_v3 = vmul.f32 %v103_v29, %v44_v46 }
  0xf6   :  { %v285_v46 = vadd.f32 %v269_v23, %v140_v3 }
  0xf7   :  { %v8504_v35 = vpop.permute.xlu1 %107 }
  0xfc   :  { %v241_v14 = vpop.permute.xlu1 %240 }
  0xfd   :  { %v270_v38 = vmul.f32 %v4572_v32, %v241_v14  ;;  %v319_v26 = vmul.f32 %v4588_v30, %v241_v14  ;;  %v4636_v14 = vld [vmem:[%s12292_s2 + $0x1d8] sm:$0xff] }
 0x101   :  { %v553_v4 = vpop.permute.xlu1 %552 }
 0x102   :  { %v591_v42 = vmul.f32 %v4633_v13, %v553_v4  ;;  %v640_v57 = vmul.f32 %v4649_v22, %v553_v4  ;;  %v172_v13 = vmul.f32 %v156_v44, %v103_v29  ;;  %v157_v22 = vld [vmem:[%s12293_s3 + $0x58] sm:$0xff]  ;;  %v4651_v29 = vld [vmem:[%s12293_s3 + $0x1d0] sm:$0xff] }
 0x104   :  { %v8544_v34 = vadd.f32 %v591_v42, %v445_v5  ;;  %v8546_v54 = vadd.f32 %v640_v57, %v494_v7  ;;  %v141_v42 = vmul.f32 %v8504_v35, %v45_v62  ;;  %v173_v57 = vmul.f32 %v157_v22, %v8504_v35 }
 0x105   :  { %v334_v44 = vadd.f32 %v318_v2, %v172_v13 }
 0x106   :  { %12633 = vst [vmem:[#allocation26_spill] sm:$0xff] %v8544_v34  ;;  %12634 = vst [vmem:[#allocation27_spill] sm:$0xff] %v8546_v54  ;;  %v399_v36 = vpop.permute.xlu1 %398  ;;  %v8550_v37 = vpack.c.bf16 %v8540_v61, %v8544_v34  ;;  %v8554_v40 = vpack.c.bf16 %v8542_v9, %v8546_v54  ;;  %v286_v32 = vadd.f32 %v270_v38, %v141_v42 }
 0x107   :  { %v431_v4 = vmul.f32 %v4603_v63, %v399_v36  ;;  %v480_v5 = vmul.f32 %v4619_v1, %v399_v36  ;;  %v4652_v36 = vld [vmem:[%s12293_s3 + $0x1d8] sm:$0xff]  ;;  %v335_v30 = vadd.f32 %v319_v26, %v173_v57  ;;  %v4605_v57 = vld [vmem:[%s12292_s2 + $0x160] sm:$0xff] }
 0x108   :  { %12635 = vst [vmem:[#allocation28_spill] sm:$0xff] %v8554_v40  ;;  %6275 = vmatprep.subr.bf16.mxu0 %v8550_v37  ;;  %6307 = vmatprep.subr.bf16.mxu1 %v8554_v40 }
 0x109   :  { %6277 = vmatpush3.bf16.msra.mxu0 %v8550_v37  ;;  %6309 = vmatpush3.bf16.msra.mxu1 %v8554_v40  ;;  %v447_v40 = vadd.f32 %v431_v4, %v285_v46  ;;  %v496_v62 = vadd.f32 %v480_v5, %v334_v44  ;;  %v4573_v4 = vld [vmem:[%s12292_s2 + $0xe0] sm:$0xff]  ;;  %v47_v44 = vld [vmem:[%s12292_s2 + $0x68] sm:$0xff] }
 0x10a   :  { %v403_v8 = vpop.permute.xlu1 %402  ;;  %v4589_v5 = vld [vmem:[%s12293_s3 + $0xe0] sm:$0xff] }
 0x10b   :  { %v432_v43 = vmul.f32 %v4604_v27, %v403_v8  ;;  %v481_v45 = vmul.f32 %v4620_v25, %v403_v8 }
 0x10d   :  { %v448_v35 = vadd.f32 %v432_v43, %v286_v32  ;;  %v497_v22 = vadd.f32 %v481_v45, %v335_v30  ;;  %v4621_v43 = vld [vmem:[%s12293_s3 + $0x160] sm:$0xff]  ;;  %v4590_v30 = vld [vmem:[%s12293_s3 + $0xe8] sm:$0xff] }
 0x10f   :  { %v8560_v41 = vpop.permute.xlu1 %117 }
 0x114   :  { %v245_v58 = vpop.permute.xlu1 %244 }
 0x115   :  { %v320_v42 = vmul.f32 %v4589_v5, %v245_v58 }
 0x119   :  { %v561_v7 = vpop.permute.xlu1 %560 }
 0x11a   :  { %v593_v63 = vmul.f32 %v4635_v31, %v561_v7  ;;  %v642_v1 = vmul.f32 %v4651_v29, %v561_v7  ;;  %v46_v31 = vld [vmem:[%s12292_s2 + $0x60] sm:$0xff]  ;;  %v271_v7 = vmul.f32 %v4573_v4, %v245_v58  ;;  %v4574_v58 = vld [vmem:[%s12292_s2 + $0xe8] sm:$0xff] }
 0x11b   :  { %v158_v29 = vld [vmem:[%s12293_s3 + $0x60] sm:$0xff] }
 0x11c   :  { %v8614_v2 = vadd.f32 %v593_v63, %v447_v40  ;;  %v8616_v3 = vadd.f32 %v642_v1, %v496_v62  ;;  %v174_v32 = vmul.f32 %v158_v29, %v8173_v56  ;;  %v4606_v62 = vld [vmem:[%s12292_s2 + $0x168] sm:$0xff]  ;;  %v272_v29 = vmul.f32 %v4574_v58, %v8113_v33 }
 0x11d   :  { %v565_v0 = vpop.permute.xlu1 %564 }
 0x11e   :  { %v594_v8 = vmul.f32 %v4636_v14, %v565_v0  ;;  %v643_v23 = vmul.f32 %v4652_v36, %v565_v0  ;;  %12636 = vst [vmem:[#allocation29_spill] sm:$0xff] %v8614_v2  ;;  %12637 = vst [vmem:[#allocation30_spill] sm:$0xff] %v8616_v3  ;;  %v569_v0 = vpop.permute.xlu0 %568  ;;  %v159_v14 = vld [vmem:[%s12293_s3 + $0x68] sm:$0xff]  ;;  %v142_v36 = vmul.f32 %v8173_v56, %v46_v31  ;;  %v4637_v56 = vld [vmem:[%s12292_s2 + $0x1e0] sm:$0xff] }
 0x11f   :  { %v336_v5 = vadd.f32 %v320_v42, %v174_v32 }
 0x120   :  { %v8618_v13 = vadd.f32 %v594_v8, %v448_v35  ;;  %v8620_v27 = vadd.f32 %v643_v23, %v497_v22  ;;  %v4622_v35 = vld [vmem:[%s12293_s3 + $0x168] sm:$0xff]  ;;  %v143_v22 = vmul.f32 %v8560_v41, %v47_v44  ;;  %v175_v8 = vmul.f32 %v159_v14, %v8560_v41  ;;  %v4653_v23 = vld [vmem:[%s12293_s3 + $0x1e0] sm:$0xff] }
 0x121   :  { %v287_v4 = vadd.f32 %v271_v7, %v142_v36  ;;  %v595_v44 = vmul.f32 %v4637_v56, %v569_v0  ;;  %v4638_v41 = vld [vmem:[%s12292_s2 + $0x1e8] sm:$0xff] }
 0x122   :  { %12638 = vst [vmem:[#allocation31_spill] sm:$0xff] %v8618_v13  ;;  %12639 = vst [vmem:[#allocation32_spill] sm:$0xff] %v8620_v27  ;;  %v411_v25 = vpop.permute.xlu1 %410  ;;  %v8624_v38 = vpack.c.bf16 %v8618_v13, %v8614_v2  ;;  %v8628_v26 = vpack.c.bf16 %v8620_v27, %v8616_v3  ;;  %v407_v45 = vpop.permute.xlu0 %406  ;;  %v4654_v14 = vld [vmem:[%s12293_s3 + $0x1e8] sm:$0xff]  ;;  %v288_v60 = vadd.f32 %v272_v29, %v143_v22  ;;  %v48_v29 = vld [vmem:[%s12292_s2 + $0x70] sm:$0xff] }
 0x123   :  { %v433_v63 = vmul.f32 %v4605_v57, %v407_v45  ;;  %v482_v1 = vmul.f32 %v4621_v43, %v407_v45  ;;  %v321_v57 = vmul.f32 %v4590_v30, %v8113_v33  ;;  %v434_v43 = vmul.f32 %v4606_v62, %v411_v25  ;;  %v4576_v62 = vld [vmem:[%s12292_s2 + $0xf8] sm:$0xff] }
 0x124   :  { %12640 = vst [vmem:[#allocation33_spill] sm:$0xff] %v8628_v26  ;;  %6279 = vmatprep.subr.bf16.mxu0 %v8624_v38  ;;  %6311 = vmatprep.subr.bf16.mxu1 %v8628_v26  ;;  %v483_v45 = vmul.f32 %v4622_v35, %v411_v25  ;;  %v4592_v35 = vld [vmem:[%s12293_s3 + $0xf8] sm:$0xff] }
 0x125   :  { %6281 = vmatpush3.bf16.msra.mxu0 %v8624_v38  ;;  %6313 = vmatpush3.bf16.msra.mxu1 %v8628_v26  ;;  %v644_v26 = vmul.f32 %v4653_v23, %v569_v0  ;;  %v337_v7 = vadd.f32 %v321_v57, %v175_v8  ;;  %v449_v42 = vadd.f32 %v433_v63, %v287_v4  ;;  %v4591_v23 = vld [vmem:[%s12293_s3 + $0xf0] sm:$0xff]  ;;  %v4608_v57 = vld [vmem:[%s12292_s2 + $0x178] sm:$0xff] }
 0x126   :  { %v498_v36 = vadd.f32 %v482_v1, %v336_v5  ;;  %v450_v58 = vadd.f32 %v434_v43, %v288_v60  ;;  %v49_v60 = vld [vmem:[%s12292_s2 + $0x78] sm:$0xff] }
 0x127   :  { %v8634_v40 = vpop.permute.xlu1 %122  ;;  %v499_v28 = vadd.f32 %v483_v45, %v337_v7  ;;  %v8692_v25 = vadd.f32 %v595_v44, %v449_v42  ;;  %v4624_v43 = vld [vmem:[%s12293_s3 + $0x178] sm:$0xff]  ;;  %v419_v45 = vpop.permute.xlu0 %418  ;;  %v145_v44 = vmul.f32 %v8221_v20, %v49_v60  ;;  %v4623_v7 = vld [vmem:[%s12293_s3 + $0x170] sm:$0xff] }
 0x128   :  { %v8694_v0 = vadd.f32 %v644_v26, %v498_v36  ;;  %v161_v26 = vld [vmem:[%s12293_s3 + $0x78] sm:$0xff]  ;;  %v144_v60 = vmul.f32 %v8634_v40, %v48_v29 }
 0x129   :  { %12641 = vst [vmem:[#allocation34_spill] sm:$0xff] %v8692_v25 }
 0x12a   :  { %12642 = vst [vmem:[#allocation35_spill] sm:$0xff] %v8694_v0 }
 0x12c   :  { %v8654_v46 = vpop.permute.xlu1 %252 }
 0x130   :  { %v257_v31 = vpop.permute.xlu1 %256 }
 0x131   :  { %v274_v4 = vmul.f32 %v4576_v62, %v257_v31  ;;  %v323_v5 = vmul.f32 %v4592_v35, %v257_v31  ;;  %v177_v31 = vmul.f32 %v161_v26, %v8221_v20  ;;  %v322_v20 = vmul.f32 %v4591_v23, %v8654_v46  ;;  %v4655_v62 = vld [vmem:[%s12293_s3 + $0x1f0] sm:$0xff]  ;;  %v4656_v23 = vld [vmem:[%s12293_s3 + $0x1f8] sm:$0xff] }
 0x133   :  { %v290_v36 = vadd.f32 %v274_v4, %v145_v44 }
 0x135   :  { %v573_v32 = vpop.permute.xlu1 %572 }
 0x136   :  { %v596_v33 = vmul.f32 %v4638_v41, %v573_v32  ;;  %v645_v30 = vmul.f32 %v4654_v14, %v573_v32  ;;  %v160_v41 = vld [vmem:[%s12293_s3 + $0x70] sm:$0xff]  ;;  %v339_v32 = vadd.f32 %v323_v5, %v177_v31 }
 0x137   :  { %v4607_v14 = vld [vmem:[%s12292_s2 + $0x170] sm:$0xff]  ;;  %v176_v26 = vmul.f32 %v160_v41, %v8634_v40 }
 0x138   :  { %v8702_v22 = vadd.f32 %v596_v33, %v450_v58  ;;  %v8704_v63 = vadd.f32 %v645_v30, %v499_v28  ;;  %v4575_v28 = vld [vmem:[%s12292_s2 + $0xf0] sm:$0xff]  ;;  %v436_v58 = vmul.f32 %v4608_v57, %v419_v45  ;;  %v485_v33 = vmul.f32 %v4624_v43, %v419_v45 }
 0x139   :  { %v273_v42 = vmul.f32 %v4575_v28, %v8654_v46  ;;  %v4639_v30 = vld [vmem:[%s12292_s2 + $0x1f0] sm:$0xff]  ;;  %v4640_v46 = vld [vmem:[%s12292_s2 + $0x1f8] sm:$0xff]  ;;  %v338_v5 = vadd.f32 %v322_v20, %v176_v26 }
 0x13a   :  { %12643 = vst [vmem:[#allocation36_spill] sm:$0xff] %v8702_v22  ;;  %12644 = vst [vmem:[#allocation37_spill] sm:$0xff] %v8704_v63  ;;  %v415_v1 = vpop.permute.xlu1 %414  ;;  %v8714_v8 = vpack.c.bf16 %v8702_v22, %v8692_v25  ;;  %v8718_v56 = vpack.c.bf16 %v8704_v63, %v8694_v0  ;;  %v452_v45 = vadd.f32 %v436_v58, %v290_v36 }
 0x13b   :  { %v435_v28 = vmul.f32 %v4607_v14, %v415_v1  ;;  %v289_v4 = vadd.f32 %v273_v42, %v144_v60  ;;  %v501_v44 = vadd.f32 %v485_v33, %v339_v32  ;;  %v8788_v36 = vadd.f32 %v8281_v21, %v8265_v15 }
 0x13c   :  { %12645 = vst [vmem:[#allocation38_spill] sm:$0xff] %v8714_v8  ;;  %12646 = vst [vmem:[#allocation39_spill] sm:$0xff] %v8718_v56  ;;  %6283 = vmatprep.subr.bf16.mxu0 %v8714_v8  ;;  %6315 = vmatprep.subr.bf16.mxu1 %v8718_v56  ;;  %v8800_v32 = vadd.f32 %v8303_v51, %v8301_v50  ;;  %v8806_v58 = vadd.f32 %v8299_v16, %v8297_v49 }
 0x13d   :  { %6285 = vmatpush3.bf16.msra.mxu0 %v8714_v8  ;;  %6317 = vmatpush3.bf16.msra.mxu1 %v8718_v56  ;;  %v484_v56 = vmul.f32 %v4623_v7, %v415_v1  ;;  %v451_v29 = vadd.f32 %v435_v28, %v289_v4  ;;  %v8768_v1 = vadd.f32 %v8277_v19, %v8275_v12 }
 0x13e   :  { %v8814_v33 = vpack.c.bf16 %v8800_v32, %v8806_v58  ;;  %v8846_v60 = vadd.f32 %v8486_v10, %v8484_v11  ;;  %v8866_v28 = vadd.f32 %v8542_v9, %v8540_v61 }
 0x13f   :  { %v577_v35 = vpop.permute.xlu1 %576  ;;  %v500_v47 = vadd.f32 %v484_v56, %v338_v5  ;;  %v1033_v5 = vadd.f32 %v8694_v0, %v8692_v25 }
 0x140   :  { %v597_v57 = vmul.f32 %v4639_v30, %v577_v35  ;;  %v646_v43 = vmul.f32 %v4655_v62, %v577_v35  ;;  %v8818_v30 = vadd.f32 %v8386_v55, %v8384_v53  ;;  %v8826_v62 = vadd.f32 %v8382_v52, %v8380_v24 }
 0x142   :  { %v8770_v14 = vadd.f32 %v597_v57, %v451_v29  ;;  %v8772_v7 = vadd.f32 %v646_v43, %v500_v47  ;;  %v8794_v47 = vpack.c.bf16 %v8788_v36, %v8768_v1  ;;  %v8834_v35 = vpack.c.bf16 %v8818_v30, %v8826_v62  ;;  %v12654_v29 = vld [vmem:[#allocation18_spill] sm:$0xff] }
 0x143   :  { %v581_v31 = vpop.permute.xlu1 %580  ;;  %v12651_v43 = vld [vmem:[#allocation38_spill] sm:$0xff] }
 0x144   :  { %v598_v40 = vmul.f32 %v4640_v46, %v581_v31  ;;  %v647_v41 = vmul.f32 %v4656_v23, %v581_v31  ;;  %12647 = vst [vmem:[#allocation40_spill] sm:$0xff] %v8770_v14  ;;  %12648 = vst [vmem:[#allocation41_spill] sm:$0xff] %v8772_v7  ;;  %v1031_v23 = vadd.f32 %v8616_v3, %v8614_v2  ;;  %v12653_v31 = vld [vmem:[#allocation13_spill] sm:$0xff] }
 0x146   :  { %v8774_v8 = vadd.f32 %v598_v40, %v452_v45  ;;  %v8776_v42 = vadd.f32 %v647_v41, %v501_v44  ;;  %v1035_v45 = vadd.f32 %v8772_v7, %v8770_v14  ;;  %v12655_v40 = vld [vmem:[#allocation23_spill] sm:$0xff]  ;;  %v12656_v41 = vld [vmem:[#allocation28_spill] sm:$0xff] }
 0x148   :  { %12649 = vst [vmem:[#allocation42_spill] sm:$0xff] %v8774_v8  ;;  %12650 = vst [vmem:[#allocation43_spill] sm:$0xff] %v8776_v42  ;;  %v8780_v20 = vpack.c.bf16 %v8774_v8, %v8770_v14  ;;  %v8784_v56 = vpack.c.bf16 %v8776_v42, %v8772_v7 }
 0x14a   :  { %6287 = vmatprep.subr.bf16.mxu0 %v8780_v20  ;;  %6319 = vmatprep.subr.bf16.mxu1 %v8784_v56 }
 0x14b   :  { %6289 = vmatpush3.bf16.msra.mxu0 %v8780_v20  ;;  %6321 = vmatpush3.bf16.msra.mxu1 %v8784_v56 }
 0x14c   :  { %6323 = vmatprep.subr.bf16.mxu0 %v8794_v47  ;;  %6355 = vmatprep.subr.bf16.mxu1 %v8288_v48 }
 0x14e   :  { %5283 = vmatmul.mubr.f32.vlgmr.msra.gmra.mrb[0].mxu0 %v8265_v15  ;;  %5339 = vmatmul.mubr.f32.vlgmr.msra.gmra.mrb[0].mxu1 %v8281_v21 }
 0x14f   :  { %5285 = vmatprep.mubr.f32.mxu0 %v8297_v49  ;;  %5341 = vmatprep.mubr.f32.mxu1 %v8299_v16 }
 0x150   :  { %6325 = vmatpush3.bf16.msra.mxu0 %v8794_v47  ;;  %6357 = vmatpush3.bf16.msra.mxu1 %v8288_v48  ;;  %v8838_v48 = vadd.f32 %v8490_v18, %v8488_v17 }
 0x151   :  { %6327 = vmatprep.subr.bf16.mxu0 %v8814_v33  ;;  %6359 = vmatprep.subr.bf16.mxu1 %v8328_v39 }
 0x152   :  { %5286 = vmatmul.mubr.f32.gmra.mrb[2].mxu0 %v8301_v50  ;;  %5342 = vmatmul.mubr.f32.gmra.mrb[2].mxu1 %v8303_v51  ;;  %v8854_v26 = vpack.c.bf16 %v8838_v48, %v8846_v60 }
 0x153   :  { %5288 = vmatprep.mubr.f32.mxu0 %v8380_v24  ;;  %5344 = vmatprep.mubr.f32.mxu1 %v8382_v52 }
 0x154   :  { %6329 = vmatpush3.bf16.msra.mxu0 %v8814_v33  ;;  %6361 = vmatpush3.bf16.msra.mxu1 %v8328_v39  ;;  %v8858_v39 = vadd.f32 %v8546_v54, %v8544_v34 }
 0x155   :  { %6331 = vmatprep.subr.bf16.mxu0 %v8834_v35  ;;  %6363 = vmatprep.subr.bf16.mxu1 %v8390_v59 }
 0x156   :  { %5289 = vmatmul.mubr.f32.gmra.mrb[4].mxu0 %v8384_v53  ;;  %5345 = vmatmul.mubr.f32.gmra.mrb[4].mxu1 %v8386_v55  ;;  %v8874_v46 = vpack.c.bf16 %v8866_v28, %v8858_v39 }
 0x157   :  { %5291 = vmatprep.mubr.f32.mxu0 %v8484_v11  ;;  %5347 = vmatprep.mubr.f32.mxu1 %v8486_v10 }
 0x158   :  { %6333 = vmatpush3.bf16.msra.mxu0 %v8834_v35  ;;  %6365 = vmatpush3.bf16.msra.mxu1 %v8390_v59  ;;  %v8878_v59 = vadd.f32 %v8620_v27, %v8618_v13 }
 0x159   :  { %6335 = vmatprep.subr.bf16.mxu0 %v8854_v26  ;;  %6367 = vmatprep.subr.bf16.mxu1 %v8494_v6 }
 0x15a   :  { %5292 = vmatmul.mubr.f32.gmra.mrb[6].mxu0 %v8488_v17  ;;  %5348 = vmatmul.mubr.f32.gmra.mrb[6].mxu1 %v8490_v18  ;;  %v8891_v4 = vpack.c.bf16 %v8878_v59, %v1031_v23 }
 0x15b   :  { %5294 = vmatprep.mubr.f32.mxu0 %v8544_v34  ;;  %5350 = vmatprep.mubr.f32.mxu1 %v8546_v54 }
 0x15c   :  { %6337 = vmatpush3.bf16.msra.mxu0 %v8854_v26  ;;  %6369 = vmatpush3.bf16.msra.mxu1 %v8494_v6  ;;  %v1034_v6 = vadd.f32 %v8704_v63, %v8702_v22 }
 0x15d   :  { %6339 = vmatprep.subr.bf16.mxu0 %v8874_v46  ;;  %6371 = vmatprep.subr.bf16.mxu1 %v8550_v37 }
 0x15e   :  { %5295 = vmatmul.mubr.f32.gmra.mrb[8].mxu0 %v8540_v61  ;;  %5351 = vmatmul.mubr.f32.gmra.mrb[8].mxu1 %v8542_v9  ;;  %v8905_v57 = vpack.c.bf16 %v1034_v6, %v1033_v5 }
 0x15f   :  { %5297 = vmatprep.mubr.f32.mxu0 %v8614_v2  ;;  %5353 = vmatprep.mubr.f32.mxu1 %v8616_v3 }
 0x160   :  { %6341 = vmatpush3.bf16.msra.mxu0 %v8874_v46  ;;  %6373 = vmatpush3.bf16.msra.mxu1 %v8550_v37  ;;  %v1036_v37 = vadd.f32 %v8776_v42, %v8774_v8 }
 0x161   :  { %6343 = vmatprep.subr.bf16.mxu0 %v8891_v4  ;;  %6375 = vmatprep.subr.bf16.mxu1 %v8624_v38 }
 0x162   :  { %5298 = vmatmul.mubr.f32.gmra.mrb[10].mxu0 %v8618_v13  ;;  %5354 = vmatmul.mubr.f32.gmra.mrb[10].mxu1 %v8620_v27  ;;  %v8919_v44 = vpack.c.bf16 %v1036_v37, %v1035_v45 }
 0x163   :  { %5300 = vmatprep.mubr.f32.mxu0 %v8692_v25  ;;  %5356 = vmatprep.mubr.f32.mxu1 %v8694_v0 }
 0x164   :  { %6345 = vmatpush3.bf16.msra.mxu0 %v8891_v4  ;;  %6377 = vmatpush3.bf16.msra.mxu1 %v8624_v38  ;;  %v12652_v38 = vld [vmem:[#allocation8_spill] sm:$0xff] }
 0x165   :  { %6347 = vmatprep.subr.bf16.mxu0 %v8905_v57  ;;  %6379 = vmatprep.subr.bf16.mxu1 %v12651_v43 }
 0x166   :  { %5301 = vmatmul.mubr.f32.gmra.mrb[12].mxu0 %v8702_v22  ;;  %5357 = vmatmul.mubr.f32.gmra.mrb[12].mxu1 %v8704_v63 }
 0x167   :  { %5303 = vmatprep.mubr.f32.mxu0 %v8770_v14  ;;  %5359 = vmatprep.mubr.f32.mxu1 %v8772_v7 }
 0x168   :  { %6349 = vmatpush3.bf16.msra.mxu0 %v8905_v57  ;;  %6381 = vmatpush3.bf16.msra.mxu1 %v12651_v43 }
 0x169   :  { %6351 = vmatprep.subr.bf16.mxu0 %v8919_v44  ;;  %6383 = vmatprep.subr.bf16.mxu1 %v8780_v20 }
 0x16a   :  { %5304 = vmatmul.mubr.f32.gmra.mrb[14].mxu0 %v8774_v8  ;;  %5360 = vmatmul.mubr.f32.gmra.mrb[14].mxu1 %v8776_v42 }
 0x16b   :  { %5394 = vmatprep.mubr.f32.mxu0 %v8768_v1  ;;  %v12657_v1 = vld [vmem:[#allocation33_spill] sm:$0xff] }
 0x16c   :  { %6353 = vmatpush3.bf16.msra.mxu0 %v8919_v44  ;;  %6385 = vmatpush3.bf16.msra.mxu1 %v8780_v20  ;;  %v12658_v20 = vld [vmem:[#allocation39_spill] sm:$0xff] }
 0x16d   :  { %6387 = vmatprep.subr.bf16.mxu0 %v12652_v38  ;;  %6419 = vmatprep.subr.bf16.mxu1 %v8794_v47 }
 0x16f   :  { %5395 = vmatmul.mubr.f32.vlgmr.msra.gmra.mrb[16].mxu0 %v8788_v36 }
 0x170   :  { %5397 = vmatprep.mubr.f32.mxu0 %v8806_v58  ;;  %6389 = vmatpush3.bf16.msra.mxu0 %v12652_v38 }
 0x171   :  { %6391 = vmatprep.subr.bf16.mxu0 %v12653_v31 }
 0x173   :  { %5398 = vmatmul.mubr.f32.gmra.mrb[18].mxu0 %v8800_v32 }
 0x174   :  { %5400 = vmatprep.mubr.f32.mxu0 %v8826_v62  ;;  %6393 = vmatpush3.bf16.msra.mxu0 %v12653_v31 }
 0x175   :  { %6395 = vmatprep.subr.bf16.mxu0 %v12654_v29 }
 0x177   :  { %5401 = vmatmul.mubr.f32.gmra.mrb[20].mxu0 %v8818_v30 }
 0x178   :  { %5403 = vmatprep.mubr.f32.mxu0 %v8846_v60  ;;  %6397 = vmatpush3.bf16.msra.mxu0 %v12654_v29 }
 0x179   :  { %6399 = vmatprep.subr.bf16.mxu0 %v12655_v40 }
 0x17b   :  { %5404 = vmatmul.mubr.f32.gmra.mrb[22].mxu0 %v8838_v48 }
 0x17c   :  { %5406 = vmatprep.mubr.f32.mxu0 %v8858_v39  ;;  %6401 = vmatpush3.bf16.msra.mxu0 %v12655_v40 }
 0x17d   :  { %6403 = vmatprep.subr.bf16.mxu0 %v12656_v41 }
 0x17f   :  { %5407 = vmatmul.mubr.f32.gmra.mrb[24].mxu0 %v8866_v28 }
 0x180   :  { %5409 = vmatprep.mubr.f32.mxu0 %v1031_v23  ;;  %6405 = vmatpush3.bf16.msra.mxu0 %v12656_v41 }
 0x181   :  { %6407 = vmatprep.subr.bf16.mxu0 %v12657_v1 }
 0x183   :  { %5410 = vmatmul.mubr.f32.gmra.mrb[26].mxu0 %v8878_v59 }
 0x184   :  { %5412 = vmatprep.mubr.f32.mxu0 %v1033_v5  ;;  %6409 = vmatpush3.bf16.msra.mxu0 %v12657_v1 }
 0x185   :  { %6411 = vmatprep.subr.bf16.mxu0 %v12658_v20 }
 0x187   :  { %5413 = vmatmul.mubr.f32.gmra.mrb[28].mxu0 %v1034_v6 }
 0x188   :  { %5415 = vmatprep.mubr.f32.mxu0 %v1035_v45  ;;  %6413 = vmatpush3.bf16.msra.mxu0 %v12658_v20 }
 0x189   :  { %6415 = vmatprep.subr.bf16.mxu0 %v8784_v56 }
 0x18b   :  { %5416 = vmatmul.mubr.f32.gmra.mrb[30].mxu0 %v1036_v37 }
 0x18c   :  { %6417 = vmatpush3.bf16.msra.mxu0 %v8784_v56 }
 0x221   :  { %v8957_v36 = vpop.f32.mrb[0].mxu0  ;;  %v8959_v32 = vpop.f32.mrb[0].mxu1 }
 0x222   :  { %v8963_v58 = vsub.f32 %v8957_v36, %v8959_v32  ;;  %v8965_v30 = vpop.f32.mrb[1].mxu0  ;;  %v8967_v62 = vpop.f32.mrb[1].mxu1 }
 0x223   :  { %v8971_v48 = vsub.f32 %v8965_v30, %v8967_v62 }
 0x224   :  { %12659 = vst [vmem:[#allocation38_spill] sm:$0xff] %v8963_v58 }
 0x225   :  { %v8973_v60 = vpop.f32.mrb[2].mxu0  ;;  %v8975_v39 = vpop.f32.mrb[2].mxu1  ;;  %5450 = vmatprep.mubr.f32.mxu1 %v8971_v48  ;;  %v8980_v56 = vpack.c.bf16 %v8963_v58, %v8971_v48 }
 0x226   :  { %v8984_v28 = vsub.f32 %v8973_v60, %v8975_v39  ;;  %v8986_v59 = vpop.f32.mrb[3].mxu0  ;;  %v8988_v23 = vpop.f32.mrb[3].mxu1  ;;  %5451 = vmatmul.mubr.f32.vlgmr.msra.gmra.mrb[16].mxu1 %v8963_v58 }
 0x227   :  { %v8993_v6 = vsub.f32 %v8986_v59, %v8988_v23  ;;  %6421 = vmatpush3.bf16.msra.mxu1 %v8794_v47  ;;  %6451 = vmatprep.subr.bf16.mxu0 %v8980_v56 }
 0x228   :  { %12660 = vst [vmem:[#allocation8_spill] sm:$0xff] %v8984_v28  ;;  %6423 = vmatprep.subr.bf16.mxu1 %v8814_v33 }
 0x229   :  { %12661 = vst [vmem:[#allocation13_spill] sm:$0xff] %v8993_v6  ;;  %v8998_v5 = vpop.f32.mrb[4].mxu0  ;;  %v9000_v37 = vpop.f32.mrb[4].mxu1  ;;  %5453 = vmatprep.mubr.f32.mxu1 %v8993_v6 }
 0x22a   :  { %v9005_v43 = vsub.f32 %v8998_v5, %v9000_v37  ;;  %v9007_v45 = vpop.f32.mrb[5].mxu0  ;;  %v9009_v38 = vpop.f32.mrb[5].mxu1  ;;  %5454 = vmatmul.mubr.f32.gmra.mrb[18].mxu1 %v8984_v28 }
 0x22b   :  { %v9014_v47 = vsub.f32 %v9007_v45, %v9009_v38  ;;  %6425 = vmatpush3.bf16.msra.mxu1 %v8814_v33 }
 0x22c   :  { %12662 = vst [vmem:[#allocation18_spill] sm:$0xff] %v9005_v43  ;;  %6427 = vmatprep.subr.bf16.mxu1 %v8834_v35 }
 0x22d   :  { %12663 = vst [vmem:[#allocation23_spill] sm:$0xff] %v9014_v47  ;;  %v9018_v31 = vpop.f32.mrb[6].mxu0  ;;  %v9020_v29 = vpop.f32.mrb[6].mxu1  ;;  %5456 = vmatprep.mubr.f32.mxu1 %v9014_v47 }
 0x22e   :  { %v9025_v40 = vsub.f32 %v9018_v31, %v9020_v29  ;;  %v9027_v41 = vpop.f32.mrb[7].mxu0  ;;  %v9029_v1 = vpop.f32.mrb[7].mxu1  ;;  %5457 = vmatmul.mubr.f32.gmra.mrb[20].mxu1 %v9005_v43 }
 0x22f   :  { %v9034_v33 = vsub.f32 %v9027_v41, %v9029_v1  ;;  %6429 = vmatpush3.bf16.msra.mxu1 %v8834_v35 }
 0x230   :  { %12664 = vst [vmem:[#allocation28_spill] sm:$0xff] %v9025_v40  ;;  %6431 = vmatprep.subr.bf16.mxu1 %v8854_v26 }
 0x231   :  { %12665 = vst [vmem:[#allocation33_spill] sm:$0xff] %v9034_v33  ;;  %v9038_v20 = vpop.f32.mrb[8].mxu0  ;;  %v9040_v42 = vpop.f32.mrb[8].mxu1  ;;  %5459 = vmatprep.mubr.f32.mxu1 %v9034_v33 }
 0x232   :  { %v9045_v8 = vsub.f32 %v9038_v20, %v9040_v42  ;;  %v9047_v7 = vpop.f32.mrb[9].mxu0  ;;  %v9049_v14 = vpop.f32.mrb[9].mxu1  ;;  %5460 = vmatmul.mubr.f32.gmra.mrb[22].mxu1 %v9025_v40 }
 0x233   :  { %v9054_v35 = vsub.f32 %v9047_v7, %v9049_v14  ;;  %6433 = vmatpush3.bf16.msra.mxu1 %v8854_v26 }
 0x234   :  { %12666 = vst [vmem:[#allocation39_spill] sm:$0xff] %v9045_v8  ;;  %6435 = vmatprep.subr.bf16.mxu1 %v8874_v46 }
 0x235   :  { %12667 = vst [vmem:[#allocation44_spill] sm:$0xff] %v9054_v35  ;;  %v9058_v63 = vpop.f32.mrb[10].mxu0  ;;  %v9060_v27 = vpop.f32.mrb[10].mxu1  ;;  %5462 = vmatprep.mubr.f32.mxu1 %v9054_v35 }
 0x236   :  { %v9065_v3 = vsub.f32 %v9058_v63, %v9060_v27  ;;  %v9067_v22 = vpop.f32.mrb[11].mxu0  ;;  %v9069_v0 = vpop.f32.mrb[11].mxu1  ;;  %5463 = vmatmul.mubr.f32.gmra.mrb[24].mxu1 %v9045_v8 }
 0x237   :  { %v9074_v26 = vsub.f32 %v9067_v22, %v9069_v0  ;;  %6437 = vmatpush3.bf16.msra.mxu1 %v8874_v46 }
 0x238   :  { %6439 = vmatprep.subr.bf16.mxu1 %v8891_v4 }
 0x239   :  { %12668 = vst [vmem:[#allocation45_spill] sm:$0xff] %v9074_v26  ;;  %v9078_v13 = vpop.f32.mrb[12].mxu0  ;;  %v9080_v2 = vpop.f32.mrb[12].mxu1  ;;  %5465 = vmatprep.mubr.f32.mxu1 %v9074_v26 }
 0x23a   :  { %v9085_v54 = vsub.f32 %v9078_v13, %v9080_v2  ;;  %v9087_v25 = vpop.f32.mrb[13].mxu0  ;;  %v9089_v34 = vpop.f32.mrb[13].mxu1  ;;  %5466 = vmatmul.mubr.f32.gmra.mrb[26].mxu1 %v9065_v3 }
 0x23b   :  { %v9094_v46 = vsub.f32 %v9087_v25, %v9089_v34  ;;  %6441 = vmatpush3.bf16.msra.mxu1 %v8891_v4 }
 0x23c   :  { %6443 = vmatprep.subr.bf16.mxu1 %v8905_v57 }
 0x23d   :  { %12669 = vst [vmem:[#allocation46_spill] sm:$0xff] %v9094_v46  ;;  %v9098_v18 = vpop.f32.mrb[14].mxu0  ;;  %v9100_v17 = vpop.f32.mrb[14].mxu1  ;;  %5468 = vmatprep.mubr.f32.mxu1 %v9094_v46 }
 0x23e   :  { %v9105_v9 = vsub.f32 %v9098_v18, %v9100_v17  ;;  %v9107_v61 = vpop.f32.mrb[15].mxu0  ;;  %v9109_v55 = vpop.f32.mrb[15].mxu1  ;;  %5469 = vmatmul.mubr.f32.gmra.mrb[28].mxu1 %v9085_v54 }
 0x23f   :  { %v9114_v4 = vsub.f32 %v9107_v61, %v9109_v55  ;;  %6445 = vmatpush3.bf16.msra.mxu1 %v8905_v57 }
 0x240   :  { %6447 = vmatprep.subr.bf16.mxu1 %v8919_v44 }
 0x241   :  { %5471 = vmatprep.mubr.f32.mxu1 %v9114_v4 }
 0x242   :  { %v5396_v53 = vpop.f32.mrb[16].mxu0  ;;  %5472 = vmatmul.mubr.f32.gmra.mrb[30].mxu1 %v9105_v9 }
 0x243   :  { %v1199_v10 = vsub.f32 %v5396_v53, %v8957_v36  ;;  %v1103_v52 = vpop.f32.mrb[17].mxu0  ;;  %6449 = vmatpush3.bf16.msra.mxu1 %v8919_v44  ;;  %v6454_v44 = vpack.c.bf16 %v8984_v28, %v8993_v6 }
 0x244   :  { %v1198_v11 = vsub.f32 %v1103_v52, %v8965_v30 }
 0x245   :  { %v9124_v24 = vsub.f32 %v1199_v10, %v8959_v32 }
 0x246   :  { %v9127_v51 = vsub.f32 %v1198_v11, %v8967_v62  ;;  %v5399_v57 = vpop.f32.mrb[18].mxu0 }
 0x247   :  { %v1201_v50 = vsub.f32 %v5399_v57, %v8973_v60  ;;  %v1113_v19 = vpop.f32.mrb[19].mxu0  ;;  %v9132_v12 = vadd.f32 %v9124_v24, %v8963_v58 }
 0x248   :  { %12670 = vst [vmem:[#allocation47_spill] sm:$0xff] %v9127_v51  ;;  %v1200_v53 = vsub.f32 %v1113_v19, %v8986_v59  ;;  %5506 = vmatprep.mubr.f32.mxu0 %v9127_v51  ;;  %v9138_v52 = vadd.f32 %v9127_v51, %v8971_v48  ;;  %v6482_v11 = vpack.c.bf16 %v9124_v24, %v9127_v51 }
 0x249   :  { %v9143_v10 = vsub.f32 %v1201_v50, %v8975_v39  ;;  %5507 = vmatmul.mubr.f32.vlgmr.msra.gmra.mrb[32].mxu0 %v9124_v24 }
 0x24a   :  { %v9149_v36 = vsub.f32 %v1200_v53, %v8988_v23  ;;  %6453 = vmatpush3.bf16.msra.mxu0 %v8980_v56  ;;  %v5402_v19 = vpop.f32.mrb[20].mxu0  ;;  %5562 = vmatprep.mubr.f32.mxu1 %v9138_v52  ;;  %v9155_v32 = vpack.c.bf16 %v9132_v12, %v9138_v52  ;;  %v6458_v23 = vpack.c.bf16 %v9005_v43, %v9014_v47 }
 0x24b   :  { %12671 = vst [vmem:[#allocation48_spill] sm:$0xff] %v9143_v10  ;;  %v1203_v50 = vsub.f32 %v5402_v19, %v8998_v5  ;;  %6455 = vmatprep.subr.bf16.mxu0 %v6454_v44  ;;  %6483 = vmatprep.subr.bf16.mxu1 %v6482_v11  ;;  %v1123_v30 = vpop.f32.mrb[21].mxu0  ;;  %v9160_v62 = vadd.f32 %v9143_v10, %v8984_v28 }
 0x24c   :  { %12672 = vst [vmem:[#allocation49_spill] sm:$0xff] %v9149_v36  ;;  %v1202_v60 = vsub.f32 %v1123_v30, %v9007_v45  ;;  %5563 = vmatmul.mubr.f32.vlgmr.msra.gmra.mrb[32].mxu1 %v9132_v12  ;;  %5509 = vmatprep.mubr.f32.mxu0 %v9149_v36  ;;  %v9167_v39 = vadd.f32 %v9149_v36, %v8993_v6 }
 0x24d   :  { %v6486_v56 = vpack.c.bf16 %v9143_v10, %v9149_v36  ;;  %v9172_v59 = vsub.f32 %v1203_v50, %v9000_v37  ;;  %6485 = vmatpush3.bf16.msra.mxu1 %v6482_v11  ;;  %5510 = vmatmul.mubr.f32.gmra.mrb[34].mxu0 %v9143_v10 }
 0x24e   :  { %v9178_v5 = vsub.f32 %v1202_v60, %v9009_v38  ;;  %6457 = vmatpush3.bf16.msra.mxu0 %v6454_v44  ;;  %v5405_v45 = vpop.f32.mrb[22].mxu0  ;;  %5565 = vmatprep.mubr.f32.mxu1 %v9167_v39  ;;  %v9183_v57 = vpack.c.bf16 %v9160_v62, %v9167_v39 }
 0x24f   :  { %12673 = vst [vmem:[#allocation50_spill] sm:$0xff] %v9172_v59  ;;  %v1205_v37 = vsub.f32 %v5405_v45, %v9018_v31  ;;  %6459 = vmatprep.subr.bf16.mxu0 %v6458_v23  ;;  %6487 = vmatprep.subr.bf16.mxu1 %v6486_v56  ;;  %v1133_v53 = vpop.f32.mrb[23].mxu0  ;;  %v9188_v11 = vadd.f32 %v9172_v59, %v9005_v43 }
 0x250   :  { %12674 = vst [vmem:[#allocation51_spill] sm:$0xff] %v9178_v5  ;;  %v1204_v38 = vsub.f32 %v1133_v53, %v9027_v41  ;;  %5566 = vmatmul.mubr.f32.gmra.mrb[34].mxu1 %v9160_v62  ;;  %5512 = vmatprep.mubr.f32.mxu0 %v9178_v5  ;;  %v9195_v44 = vadd.f32 %v9178_v5, %v9014_v47 }
 0x251   :  { %v6490_v31 = vpack.c.bf16 %v9172_v59, %v9178_v5  ;;  %v9200_v19 = vsub.f32 %v1205_v37, %v9020_v29  ;;  %6489 = vmatpush3.bf16.msra.mxu1 %v6486_v56  ;;  %5513 = vmatmul.mubr.f32.gmra.mrb[36].mxu0 %v9172_v59  ;;  %v6462_v41 = vpack.c.bf16 %v9025_v40, %v9034_v33 }
 0x252   :  { %v9206_v50 = vsub.f32 %v1204_v38, %v9029_v1  ;;  %6461 = vmatpush3.bf16.msra.mxu0 %v6458_v23  ;;  %v5408_v30 = vpop.f32.mrb[24].mxu0  ;;  %5568 = vmatprep.mubr.f32.mxu1 %v9195_v44  ;;  %v9211_v60 = vpack.c.bf16 %v9188_v11, %v9195_v44 }
 0x253   :  { %12675 = vst [vmem:[#allocation52_spill] sm:$0xff] %v9200_v19  ;;  %v1207_v29 = vsub.f32 %v5408_v30, %v9038_v20  ;;  %6463 = vmatprep.subr.bf16.mxu0 %v6462_v41  ;;  %6491 = vmatprep.subr.bf16.mxu1 %v6490_v31  ;;  %v1143_v56 = vpop.f32.mrb[25].mxu0  ;;  %v9216_v45 = vadd.f32 %v9200_v19, %v9025_v40 }
 0x254   :  { %12676 = vst [vmem:[#allocation53_spill] sm:$0xff] %v9206_v50  ;;  %v1206_v1 = vsub.f32 %v1143_v56, %v9047_v7  ;;  %5569 = vmatmul.mubr.f32.gmra.mrb[36].mxu1 %v9188_v11  ;;  %5515 = vmatprep.mubr.f32.mxu0 %v9206_v50  ;;  %v9223_v23 = vadd.f32 %v9206_v50, %v9034_v33 }
 0x255   :  { %v6494_v20 = vpack.c.bf16 %v9200_v19, %v9206_v50  ;;  %v9228_v37 = vsub.f32 %v1207_v29, %v9040_v42  ;;  %6493 = vmatpush3.bf16.msra.mxu1 %v6490_v31  ;;  %5516 = vmatmul.mubr.f32.gmra.mrb[38].mxu0 %v9200_v19  ;;  %v6466_v7 = vpack.c.bf16 %v9045_v8, %v9054_v35 }
 0x256   :  { %v9234_v53 = vsub.f32 %v1206_v1, %v9049_v14  ;;  %6465 = vmatpush3.bf16.msra.mxu0 %v6462_v41  ;;  %v5411_v38 = vpop.f32.mrb[26].mxu0  ;;  %5571 = vmatprep.mubr.f32.mxu1 %v9223_v23  ;;  %v9239_v30 = vpack.c.bf16 %v9216_v45, %v9223_v23 }
 0x257   :  { %12677 = vst [vmem:[#allocation54_spill] sm:$0xff] %v9228_v37  ;;  %v1209_v42 = vsub.f32 %v5411_v38, %v9058_v63  ;;  %6467 = vmatprep.subr.bf16.mxu0 %v6466_v7  ;;  %6495 = vmatprep.subr.bf16.mxu1 %v6494_v20  ;;  %v1153_v31 = vpop.f32.mrb[27].mxu0  ;;  %v9244_v29 = vadd.f32 %v9228_v37, %v9045_v8 }
 0x258   :  { %12678 = vst [vmem:[#allocation55_spill] sm:$0xff] %v9234_v53  ;;  %v1208_v14 = vsub.f32 %v1153_v31, %v9067_v22  ;;  %5572 = vmatmul.mubr.f32.gmra.mrb[38].mxu1 %v9216_v45  ;;  %5518 = vmatprep.mubr.f32.mxu0 %v9234_v53  ;;  %v9251_v41 = vadd.f32 %v9234_v53, %v9054_v35 }
 0x259   :  { %v6498_v63 = vpack.c.bf16 %v9228_v37, %v9234_v53  ;;  %v9256_v56 = vsub.f32 %v1209_v42, %v9060_v27  ;;  %6497 = vmatpush3.bf16.msra.mxu1 %v6494_v20  ;;  %5519 = vmatmul.mubr.f32.gmra.mrb[40].mxu0 %v9228_v37  ;;  %v6470_v22 = vpack.c.bf16 %v9065_v3, %v9074_v26 }
 0x25a   :  { %v9262_v1 = vsub.f32 %v1208_v14, %v9069_v0  ;;  %6469 = vmatpush3.bf16.msra.mxu0 %v6466_v7  ;;  %v5414_v38 = vpop.f32.mrb[28].mxu0  ;;  %5574 = vmatprep.mubr.f32.mxu1 %v9251_v41  ;;  %v9267_v31 = vpack.c.bf16 %v9244_v29, %v9251_v41 }
 0x25b   :  { %12679 = vst [vmem:[#allocation56_spill] sm:$0xff] %v9256_v56  ;;  %v1211_v27 = vsub.f32 %v5414_v38, %v9078_v13  ;;  %6471 = vmatprep.subr.bf16.mxu0 %v6470_v22  ;;  %6499 = vmatprep.subr.bf16.mxu1 %v6498_v63  ;;  %v1163_v20 = vpop.f32.mrb[29].mxu0  ;;  %v9272_v42 = vadd.f32 %v9256_v56, %v9065_v3 }
 0x25c   :  { %12680 = vst [vmem:[#allocation57_spill] sm:$0xff] %v9262_v1  ;;  %v1210_v0 = vsub.f32 %v1163_v20, %v9087_v25  ;;  %5575 = vmatmul.mubr.f32.gmra.mrb[40].mxu1 %v9244_v29  ;;  %5521 = vmatprep.mubr.f32.mxu0 %v9262_v1  ;;  %v9279_v7 = vadd.f32 %v9262_v1, %v9074_v26 }
 0x25d   :  { %v6502_v13 = vpack.c.bf16 %v9256_v56, %v9262_v1  ;;  %v9284_v14 = vsub.f32 %v1211_v27, %v9080_v2  ;;  %6501 = vmatpush3.bf16.msra.mxu1 %v6498_v63  ;;  %5522 = vmatmul.mubr.f32.gmra.mrb[42].mxu0 %v9256_v56  ;;  %v6474_v25 = vpack.c.bf16 %v9085_v54, %v9094_v46 }
 0x25e   :  { %v9290_v38 = vsub.f32 %v1210_v0, %v9089_v34  ;;  %6473 = vmatpush3.bf16.msra.mxu0 %v6470_v22  ;;  %v5417_v20 = vpop.f32.mrb[30].mxu0  ;;  %5577 = vmatprep.mubr.f32.mxu1 %v9279_v7  ;;  %v9295_v16 = vpack.c.bf16 %v9272_v42, %v9279_v7 }
 0x25f   :  { %12681 = vst [vmem:[#allocation58_spill] sm:$0xff] %v9284_v14  ;;  %v1213_v2 = vsub.f32 %v5417_v20, %v9098_v18  ;;  %6475 = vmatprep.subr.bf16.mxu0 %v6474_v25  ;;  %6503 = vmatprep.subr.bf16.mxu1 %v6502_v13  ;;  %v1173_v63 = vpop.f32.mrb[31].mxu0  ;;  %v9300_v27 = vadd.f32 %v9284_v14, %v9085_v54 }
 0x260   :  { %12682 = vst [vmem:[#allocation59_spill] sm:$0xff] %v9290_v38  ;;  %v1212_v34 = vsub.f32 %v1173_v63, %v9107_v61  ;;  %5578 = vmatmul.mubr.f32.gmra.mrb[42].mxu1 %v9272_v42  ;;  %5524 = vmatprep.mubr.f32.mxu0 %v9290_v38  ;;  %v9307_v22 = vadd.f32 %v9290_v38, %v9094_v46 }
 0x261   :  { %v6506_v18 = vpack.c.bf16 %v9284_v14, %v9290_v38  ;;  %v9312_v0 = vsub.f32 %v1213_v2, %v9100_v17  ;;  %6505 = vmatpush3.bf16.msra.mxu1 %v6502_v13  ;;  %5525 = vmatmul.mubr.f32.gmra.mrb[44].mxu0 %v9284_v14  ;;  %v6478_v61 = vpack.c.bf16 %v9105_v9, %v9114_v4 }
 0x262   :  { %v9318_v20 = vsub.f32 %v1212_v34, %v9109_v55  ;;  %6477 = vmatpush3.bf16.msra.mxu0 %v6474_v25  ;;  %5580 = vmatprep.mubr.f32.mxu1 %v9307_v22  ;;  %v6538_v63 = vpack.c.bf16 %v9300_v27, %v9307_v22 }
 0x263   :  { %12683 = vst [vmem:[#allocation60_spill] sm:$0xff] %v9312_v0  ;;  %6479 = vmatprep.subr.bf16.mxu0 %v6478_v61  ;;  %6507 = vmatprep.subr.bf16.mxu1 %v6506_v18  ;;  %v9325_v17 = vadd.f32 %v9312_v0, %v9105_v9 }
 0x264   :  { %12684 = vst [vmem:[#allocation61_spill] sm:$0xff] %v9318_v20  ;;  %5581 = vmatmul.mubr.f32.gmra.mrb[44].mxu1 %v9300_v27  ;;  %5527 = vmatprep.mubr.f32.mxu0 %v9318_v20  ;;  %v9331_v55 = vadd.f32 %v9318_v20, %v9114_v4  ;;  %v6510_v13 = vpack.c.bf16 %v9312_v0, %v9318_v20 }
 0x265   :  { %6509 = vmatpush3.bf16.msra.mxu1 %v6506_v18  ;;  %5528 = vmatmul.mubr.f32.gmra.mrb[46].mxu0 %v9312_v0 }
 0x266   :  { %6481 = vmatpush3.bf16.msra.mxu0 %v6478_v61  ;;  %5583 = vmatprep.mubr.f32.mxu1 %v9331_v55  ;;  %v6542_v25 = vpack.c.bf16 %v9325_v17, %v9331_v55 }
 0x267   :  { %5618 = vmatprep.mubr.f32.mxu0 %v8971_v48  ;;  %6511 = vmatprep.subr.bf16.mxu1 %v6510_v13 }
 0x268   :  { %6515 = vmatprep.subr.bf16.mxu0 %v9155_v32  ;;  %5584 = vmatmul.mubr.f32.gmra.mrb[46].mxu1 %v9325_v17 }
 0x269   :  { %6513 = vmatpush3.bf16.msra.mxu1 %v6510_v13  ;;  %5674 = vmatprep.mubr.f32.mxu1 %v9127_v51 }
 0x26a   :  { %5619 = vmatmul.mubr.f32.vlgmr.msra.gmra.mrb[48].mxu0 %v8963_v58 }
 0x26b   :  { %6517 = vmatpush3.bf16.msra.mxu0 %v9155_v32  ;;  %5621 = vmatprep.mubr.f32.mxu0 %v8993_v6 }
 0x26c   :  { %6519 = vmatprep.subr.bf16.mxu0 %v9183_v57  ;;  %5675 = vmatmul.mubr.f32.vlgmr.msra.gmra.mrb[48].mxu1 %v9124_v24 }
 0x26d   :  { %5677 = vmatprep.mubr.f32.mxu1 %v9149_v36  ;;  %v12729_v36 = vld [vmem:[#allocation22_spill] sm:$0xff] }
 0x26e   :  { %5622 = vmatmul.mubr.f32.gmra.mrb[50].mxu0 %v8984_v28  ;;  %v9600_v51 = vmul.f32 2.7557319e-06, %v12729_v36 }
 0x26f   :  { %6521 = vmatpush3.bf16.msra.mxu0 %v9183_v57  ;;  %5624 = vmatprep.mubr.f32.mxu0 %v9014_v47 }
 0x270   :  { %6523 = vmatprep.subr.bf16.mxu0 %v9211_v60  ;;  %5678 = vmatmul.mubr.f32.gmra.mrb[50].mxu1 %v9143_v10 }
 0x271   :  { %5680 = vmatprep.mubr.f32.mxu1 %v9178_v5 }
 0x272   :  { %5625 = vmatmul.mubr.f32.gmra.mrb[52].mxu0 %v9005_v43 }
 0x273   :  { %6525 = vmatpush3.bf16.msra.mxu0 %v9211_v60  ;;  %5627 = vmatprep.mubr.f32.mxu0 %v9034_v33  ;;  %v12378_v60 = vmov 0.0  }
 0x274   :  { %6527 = vmatprep.subr.bf16.mxu0 %v9239_v30  ;;  %5681 = vmatmul.mubr.f32.gmra.mrb[52].mxu1 %v9172_v59 }
 0x275   :  { %5683 = vmatprep.mubr.f32.mxu1 %v9206_v50  ;;  %v12710_v50 = vld [vmem:[#allocation19_spill] sm:$0xff] }
 0x276   :  { %5628 = vmatmul.mubr.f32.gmra.mrb[54].mxu0 %v9025_v40 }
 0x277   :  { %6529 = vmatpush3.bf16.msra.mxu0 %v9239_v30  ;;  %5630 = vmatprep.mubr.f32.mxu0 %v9054_v35 }
 0x278   :  { %6531 = vmatprep.subr.bf16.mxu0 %v9267_v31  ;;  %5684 = vmatmul.mubr.f32.gmra.mrb[54].mxu1 %v9200_v19  ;;  %v2234_v19 = vmul.f32 2.7557319e-06, %v12710_v50 }
 0x279   :  { %5686 = vmatprep.mubr.f32.mxu1 %v9234_v53  ;;  %v12709_v53 = vld [vmem:[#allocation14_spill] sm:$0xff] }
 0x27a   :  { %5631 = vmatmul.mubr.f32.gmra.mrb[56].mxu0 %v9045_v8 }
 0x27b   :  { %6533 = vmatpush3.bf16.msra.mxu0 %v9267_v31  ;;  %5633 = vmatprep.mubr.f32.mxu0 %v9074_v26 }
 0x27c   :  { %6535 = vmatprep.subr.bf16.mxu0 %v9295_v16  ;;  %5687 = vmatmul.mubr.f32.gmra.mrb[56].mxu1 %v9228_v37 }
 0x27d   :  { %5689 = vmatprep.mubr.f32.mxu1 %v9262_v1  ;;  %v12707_v1 = vld [vmem:[#allocation12_spill] sm:$0xff] }
 0x27e   :  { %5634 = vmatmul.mubr.f32.gmra.mrb[58].mxu0 %v9065_v3  ;;  %v9530_v37 = vmul.f32 2.7557319e-06, %v12707_v1 }
 0x27f   :  { %6537 = vmatpush3.bf16.msra.mxu0 %v9295_v16  ;;  %5636 = vmatprep.mubr.f32.mxu0 %v9094_v46 }
 0x280   :  { %6539 = vmatprep.subr.bf16.mxu0 %v6538_v63  ;;  %5690 = vmatmul.mubr.f32.gmra.mrb[58].mxu1 %v9256_v56  ;;  %12708 = vst [vmem:[#allocation78_spill] sm:$0xff] %v9530_v37 }
 0x281   :  { %5692 = vmatprep.mubr.f32.mxu1 %v9290_v38 }
 0x282   :  { %5637 = vmatmul.mubr.f32.gmra.mrb[60].mxu0 %v9085_v54 }
 0x283   :  { %6541 = vmatpush3.bf16.msra.mxu0 %v6538_v63  ;;  %5639 = vmatprep.mubr.f32.mxu0 %v9114_v4 }
 0x284   :  { %6543 = vmatprep.subr.bf16.mxu0 %v6542_v25  ;;  %5693 = vmatmul.mubr.f32.gmra.mrb[60].mxu1 %v9284_v14  ;;  %v12706_v14 = vld [vmem:[#allocation11_spill] sm:$0xff] }
 0x285   :  { %5695 = vmatprep.mubr.f32.mxu1 %v9318_v20  ;;  %v12703_v20 = vld [vmem:[#allocation6_spill] sm:$0xff] }
 0x286   :  { %5640 = vmatmul.mubr.f32.gmra.mrb[62].mxu0 %v9105_v9  ;;  %v9523_v38 = vmul.f32 0.008333334, %v12703_v20 }
 0x287   :  { %6545 = vmatpush3.bf16.msra.mxu0 %v6542_v25  ;;  %5730 = vmatprep.mubr.f32.mxu0 %v9138_v52 }
 0x288   :  { %5696 = vmatmul.mubr.f32.gmra.mrb[62].mxu1 %v9312_v0  ;;  %v9514_v0 = vmul.f32 2.7557319e-06, %v12703_v20  ;;  %12705 = vst [vmem:[#allocation77_spill] sm:$0xff] %v9523_v38 }
 0x28a   :  { %5731 = vmatmul.mubr.f32.vlgmr.msra.gmra.mrb[64].mxu0 %v9132_v12  ;;  %v664_v12 = vlaneseq }
 0x28b   :  { %5733 = vmatprep.mubr.f32.mxu0 %v9167_v39 }
 0x28c   :  { %v665_v16 = vshrl.u32 %v664_v12, 7  ;;  %v9400_v32 = vand.u32 127, %v664_v12 }
 0x28e   :  { %5734 = vmatmul.mubr.f32.gmra.mrb[66].mxu0 %v9160_v62  ;;  %v666_v52 = vadd.s32 8, %v665_v16  ;;  %v667_v62 = vadd.s32 16, %v665_v16  ;;  %vm683_vm1 = vcmp.eq.s32.totalorder %v665_v16, %v9400_v32  ;;  %v668_v39 = vadd.s32 24, %v665_v16 }
 0x28f   :  { %5736 = vmatprep.mubr.f32.mxu0 %v9195_v44  ;;  %v671_v57 = vadd.s32 48, %v665_v16  ;;  %v670_v44 = vadd.s32 40, %v665_v16  ;;  %v674_v30 = vadd.s32 72, %v665_v16  ;;  %v673_v31 = vadd.s32 64, %v665_v16 }
 0x290   :  { %vm684_vm0 = vcmp.eq.s32.totalorder %v666_v52, %v9400_v32  ;;  %vm685_vm2 = vcmp.eq.s32.totalorder %v667_v62, %v9400_v32  ;;  %vm686_vm3 = vcmp.eq.s32.totalorder %v668_v39, %v9400_v32  ;;  %v678_v12 = vadd.s32 104, %v665_v16 }
 0x291   :  { %vm689_vm4 = vcmp.eq.s32.totalorder %v671_v57, %v9400_v32  ;;  %vm688_vm6 = vcmp.eq.s32.totalorder %v670_v44, %v9400_v32  ;;  %vm692_vm8 = vcmp.eq.s32.totalorder %v674_v30, %v9400_v32  ;;  %v9430_v18 = vsel %vm686_vm3, 1.0, %v12378_v60 }
 0x292   :  { %5737 = vmatmul.mubr.f32.gmra.mrb[68].mxu0 %v9188_v11  ;;  %v669_v11 = vadd.s32 32, %v665_v16  ;;  %12687 = vst [vmem:[#allocation64_spill] sm:$0xff] %v9430_v18  ;;  %v9433_v61 = vsel %vm689_vm4, 1.0, %v12378_v60  ;;  %vm691_vm9 = vcmp.eq.s32.totalorder %v673_v31, %v9400_v32  ;;  %v9451_v25 = vsel %vm692_vm8, 1.0, %v12378_v60 }
 0x293   :  { %5739 = vmatprep.mubr.f32.mxu0 %v9223_v23  ;;  %v672_v23 = vadd.s32 56, %v665_v16  ;;  %12688 = vst [vmem:[#allocation65_spill] sm:$0xff] %v9433_v61  ;;  %12692 = vst [vmem:[#allocation69_spill] sm:$0xff] %v9451_v25  ;;  %v2215_v52 = vmul.f32 2.4801588e-05, %v9430_v18  ;;  %v9459_v39 = vsel %vm691_vm9, 1.0, %v12378_v60  ;;  %vm696_vm13 = vcmp.eq.s32.totalorder %v678_v12, %v9400_v32 }
 0x294   :  { %vm687_vm5 = vcmp.eq.s32.totalorder %v669_v11, %v9400_v32  ;;  %v9456_v62 = vmul.f32 2.4801588e-05, %v9433_v61  ;;  %12693 = vst [vmem:[#allocation70_spill] sm:$0xff] %v9459_v39  ;;  %v9477_v31 = vmul.f32 2.4801588e-05, %v9451_v25  ;;  %v12698_v12 = vmov 0.0  }
 0x295   :  { %vm690_vm7 = vcmp.eq.s32.totalorder %v672_v23, %v9400_v32  ;;  %v9438_v63 = vsel %vm687_vm5, 1.0, %v12378_v60  ;;  %v9494_v25 = vmul.f32 2.7557319e-06, %v8281_v21 }
 0x296   :  { %5740 = vmatmul.mubr.f32.gmra.mrb[70].mxu0 %v9216_v45  ;;  %v9406_v45 = vsel %vm684_vm0, 1.0, %v12378_v60  ;;  %12689 = vst [vmem:[#allocation66_spill] sm:$0xff] %v9438_v63  ;;  %v9448_v13 = vsel %vm690_vm7, 1.0, %v12378_v60  ;;  %v9465_v11 = vmul.f32 2.4801588e-05, %v9438_v63  ;;  %v680_v63 = vadd.s32 120, %v665_v16 }
 0x297   :  { %5742 = vmatprep.mubr.f32.mxu0 %v9251_v41  ;;  %12685 = vst [vmem:[#allocation62_spill] sm:$0xff] %v9406_v45  ;;  %v9412_v41 = vsel %vm685_vm2, 1.0, %v12378_v60  ;;  %v9417_v2 = vmul.f32 2.4801588e-05, %v9406_v45  ;;  %12691 = vst [vmem:[#allocation68_spill] sm:$0xff] %v9448_v13 }
 0x298   :  { %12686 = vst [vmem:[#allocation63_spill] sm:$0xff] %v9412_v41  ;;  %v9474_v30 = vmul.f32 2.4801588e-05, %v9448_v13  ;;  %v679_v13 = vadd.s32 112, %v665_v16  ;;  %12696 = vst [vmem:[#allocation73_spill] sm:$0xff] %v9494_v25  ;;  %vm698_vm15 = vcmp.eq.s32.totalorder %v680_v63, %v9400_v32  ;;  %v12728_v25 = vld [vmem:[#allocation21_spill] sm:$0xff] }
 0x299   :  { %v9541_v63 = vsel %vm698_vm15, 1.0, %v12698_v12  ;;  %v2235_v10 = vmul.f32 2.7557319e-06, %v12728_v25  ;;  %v12732_v25 = vld [vmem:[#allocation34_spill] sm:$0xff] }
 0x29a   :  { %5743 = vmatmul.mubr.f32.gmra.mrb[72].mxu0 %v9244_v29  ;;  %v9409_v29 = vsel %vm683_vm1, 1.0, %v12378_v60  ;;  %vm697_vm14 = vcmp.eq.s32.totalorder %v679_v13, %v9400_v32  ;;  %v9535_v13 = vmul.f32 0.008333334, %v12707_v1 }
 0x29b   :  { %5745 = vmatprep.mubr.f32.mxu0 %v9279_v7  ;;  %v675_v7 = vadd.s32 80, %v665_v16  ;;  %v9422_v34 = vmul.f32 2.4801588e-05, %v9409_v29 }
 0x29c   :  { %12711 = vst [vmem:[#allocation79_spill] sm:$0xff] %v9535_v13  ;;  %v12720_v13 = vld [vmem:[#allocation16_spill] sm:$0xff] }
 0x29d   :  { %vm693_vm11 = vcmp.eq.s32.totalorder %v675_v7, %v9400_v32  ;;  %v2229_v7 = vmul.f32 2.7557319e-06, %v8265_v15  ;;  %v2233_v5 = vmul.f32 2.7557319e-06, %v12720_v13 }
 0x29e   :  { %5746 = vmatmul.mubr.f32.gmra.mrb[74].mxu0 %v9272_v42  ;;  %v677_v42 = vadd.s32 96, %v665_v16  ;;  %v9471_v23 = vsel %vm693_vm11, 1.0, %v12378_v60 }
 0x29f   :  { %5748 = vmatprep.mubr.f32.mxu0 %v9307_v22  ;;  %v9425_v22 = vmul.f32 2.4801588e-05, %v9412_v41  ;;  %12695 = vst [vmem:[#allocation72_spill] sm:$0xff] %v9471_v23  ;;  %v9504_v41 = vsel %vm696_vm13, 1.0, %v12698_v12 }
 0x2a0   :  { %vm695_vm10 = vcmp.eq.s32.totalorder %v677_v42, %v9400_v32  ;;  %v9527_v56 = vmul.f32 2.4801588e-05, %v9504_v41 }
 0x2a1   :  { %v9462_v57 = vsel %vm695_vm10, 1.0, %v12378_v60 }
 0x2a2   :  { %5749 = vmatmul.mubr.f32.gmra.mrb[76].mxu0 %v9300_v27  ;;  %v676_v27 = vadd.s32 88, %v665_v16  ;;  %12694 = vst [vmem:[#allocation71_spill] sm:$0xff] %v9462_v57  ;;  %v9488_v61 = vmul.f32 2.4801588e-05, %v9462_v57  ;;  %v12699_v57 = vld [vmem:[#allocation10_spill] sm:$0xff]  ;;  %v12702_v16 = vld [vmem:[#allocation5_spill] sm:$0xff] }
 0x2a3   :  { %5751 = vmatprep.mubr.f32.mxu0 %v9331_v55  ;;  %v9445_v55 = vmul.f32 0.041666668, %v9409_v29  ;;  %v9507_v18 = vmul.f32 2.7557319e-06, %v12699_v57  ;;  %v2228_v45 = vmul.f32 2.7557319e-06, %v12702_v16 }
 0x2a4   :  { %vm694_vm12 = vcmp.eq.s32.totalorder %v676_v27, %v9400_v32  ;;  %v9484_v27 = vmul.f32 2.4801588e-05, %v9459_v39  ;;  %v9501_v39 = vmul.f32 0.008333334, %v8281_v21  ;;  %12704 = vst [vmem:[#allocation5_spill] sm:$0xff] %v9514_v0  ;;  %v9538_v32 = vsel %vm697_vm14, 1.0, %v12698_v12 }
 0x2a5   :  { %v9480_v42 = vsel %vm694_vm12, 1.0, %v12378_v60  ;;  %12700 = vst [vmem:[#allocation75_spill] sm:$0xff] %v9507_v18  ;;  %v2999_v21 = vmul.f32 0.008333334, %v12702_v16  ;;  %v12714_v18 = vld [vmem:[#allocation20_spill] sm:$0xff]  ;;  %v12721_v12 = vld [vmem:[#allocation17_spill] sm:$0xff] }
 0x2a6   :  { %5752 = vmatmul.mubr.f32.gmra.mrb[78].mxu0 %v9325_v17  ;;  %v9441_v17 = vsel %vm688_vm6, 1.0, %v12378_v60  ;;  %v2230_v60 = vmul.f32 2.7557319e-06, %v8297_v49  ;;  %v9498_v15 = vmul.f32 2.4801588e-05, %v9480_v42  ;;  %12697 = vst [vmem:[#allocation74_spill] sm:$0xff] %v9501_v39 }
 0x2a7   :  { %12690 = vst [vmem:[#allocation67_spill] sm:$0xff] %v9441_v17  ;;  %v9468_v44 = vmul.f32 2.4801588e-05, %v9441_v17  ;;  %v9491_v17 = vmul.f32 2.4801588e-05, %v9471_v23 }
 0x2a8   :  { %v9510_v23 = vmul.f32 0.008333334, %v12699_v57  ;;  %v9517_v49 = vmul.f32 0.041666668, %v9480_v42  ;;  %v2231_v57 = vmul.f32 2.7557319e-06, %v12706_v14 }
 0x2a9   :  { %v12712_v14 = vld [vmem:[#allocation15_spill] sm:$0xff]  ;;  %v9547_v38 = vmul.f32 2.7557319e-06, %v12714_v18  ;;  %v9555_v50 = vmul.f32 0.008333334, %v12714_v18 }
 0x2aa   :  { %12701 = vst [vmem:[#allocation76_spill] sm:$0xff] %v9510_v23  ;;  %v2232_v23 = vmul.f32 2.7557319e-06, %v12709_v53  ;;  %v9544_v20 = vmul.f32 2.7557319e-06, %v12712_v14  ;;  %v9596_v39 = vadd.f32 %v2231_v57, %v2215_v52  ;;  %v9614_v52 = vadd.f32 %v9409_v29, %v12702_v16  ;;  %v12737_v29 = vld [vmem:[#allocation29_spill] sm:$0xff] }
 0x2ab   :  { %12715 = vst [vmem:[#allocation81_spill] sm:$0xff] %v9547_v38  ;;  %v9552_v53 = vmul.f32 0.008333334, %v12712_v14  ;;  %12718 = vst [vmem:[#allocation84_spill] sm:$0xff] %v9555_v50  ;;  %v9561_v59 = vmul.f32 2.7557319e-06, %v12721_v12  ;;  %v9573_v14 = vadd.f32 %v2229_v7, %v9417_v2  ;;  %v9617_v57 = vadd.f32 %v2234_v19, %v9456_v62 }
 0x2ac   :  { %12713 = vst [vmem:[#allocation80_spill] sm:$0xff] %v9544_v20  ;;  %v9564_v20 = vmul.f32 2.4801588e-05, %v9538_v32  ;;  %v9567_v38 = vmul.f32 2.4801588e-05, %v9541_v63  ;;  %v12725_v2 = vld [vmem:[#allocation25_spill] sm:$0xff] }
 0x2ad   :  { %12717 = vst [vmem:[#allocation83_spill] sm:$0xff] %v9552_v53  ;;  %12722 = vst [vmem:[#allocation86_spill] sm:$0xff] %v9561_v59  ;;  %v2996_v18 = vmul.f32 0.041666668, %v9504_v41  ;;  %v9577_v50 = vmul.f32 0.041666668, %v9541_v63  ;;  %v9585_v59 = vadd.f32 %v2228_v45, %v9422_v34  ;;  %v9603_v45 = vadd.f32 %v2999_v21, %v9445_v55 }
 0x2ae   :  { %v9580_v13 = vmul.f32 0.041666668, %v9538_v32  ;;  %v9592_v7 = vmul.f32 2.7557319e-06, %v12725_v2  ;;  %v12730_v34 = vld [vmem:[#allocation26_spill] sm:$0xff]  ;;  %v12738_v19 = vld [vmem:[#allocation31_spill] sm:$0xff] }
 0x2af   :  { %v2238_v16 = vmul.f32 2.7557319e-06, %v12737_v29  ;;  %v2239_v62 = vmul.f32 2.7557319e-06, %v12738_v19  ;;  %v12743_v29 = vld [vmem:[#allocation30_spill] sm:$0xff] }
 0x2b0   :  { %12726 = vst [vmem:[#allocation88_spill] sm:$0xff] %v9592_v7  ;;  %v2240_v7 = vmul.f32 2.7557319e-06, %v12732_v25  ;;  %v9639_v25 = vadd.f32 %v2235_v10, %v9474_v30 }
 0x2b2   :  { %v9659_v10 = vadd.f32 %v2240_v7, %v9488_v61 }
 0x2f9   :  { %v9549_v37 = vpop.f32.mrb[16].mxu1 }
 0x2fa   :  { %12716 = vst [vmem:[#allocation82_spill] sm:$0xff] %v9549_v37  ;;  %v9557_v1 = vpop.f32.mrb[17].mxu1  ;;  %v9570_v37 = vmul.f32 0.008333334, %v12721_v12  ;;  %v12724_v12 = vld [vmem:[#allocation24_spill] sm:$0xff] }
 0x2fb   :  { %12719 = vst [vmem:[#allocation85_spill] sm:$0xff] %v9557_v1  ;;  %v9588_v1 = vadd.f32 %v2230_v60, %v9425_v22  ;;  %v2236_v60 = vmul.f32 2.7557319e-06, %v12730_v34  ;;  %v9607_v22 = vmul.f32 0.008333334, %v12729_v36  ;;  %v9629_v36 = vadd.f32 %v2232_v23, %v9465_v11 }
 0x2fc   :  { %12723 = vst [vmem:[#allocation87_spill] sm:$0xff] %v9570_v37  ;;  %v2237_v37 = vmul.f32 2.7557319e-06, %v12724_v12  ;;  %v9610_v12 = vmul.f32 0.008333334, %v12725_v2  ;;  %v9632_v2 = vadd.f32 %v2233_v5, %v9468_v44  ;;  %v12742_v44 = vld [vmem:[#allocation36_spill] sm:$0xff] }
 0x2fd   :  { %v9582_v53 = vpop.f32.mrb[18].mxu1  ;;  %v3010_v11 = vmul.f32 0.008333334, %v12738_v19  ;;  %v9649_v5 = vadd.f32 %v2236_v60, %v9484_v27  ;;  %v2241_v23 = vmul.f32 2.7557319e-06, %v12742_v44 }
 0x2fe   :  { %v9594_v0 = vpop.f32.mrb[19].mxu1  ;;  %12731 = vst [vmem:[#allocation90_spill] sm:$0xff] %v9610_v12  ;;  %v3012_v61 = vmul.f32 0.008333334, %v12742_v44 }
 0x2ff   :  { %12727 = vst [vmem:[#allocation89_spill] sm:$0xff] %v9594_v0  ;;  %v12733_v0 = vld [vmem:[#allocation27_spill] sm:$0xff] }
 0x300   :  { %v9621_v21 = vmul.f32 2.7557319e-06, %v12733_v0  ;;  %v9624_v55 = vmul.f32 0.008333334, %v12733_v0  ;;  %v9642_v0 = vadd.f32 %v2237_v37, %v9477_v31  ;;  %v12746_v37 = vld [vmem:[#allocation32_spill] sm:$0xff] }
 0x301   :  { %v9626_v34 = vpop.f32.mrb[20].mxu1  ;;  %v9662_v30 = vmul.f32 2.7557319e-06, %v12746_v37  ;;  %v9665_v31 = vmul.f32 0.008333334, %v12746_v37 }
 0x302   :  { %12734 = vst [vmem:[#allocation91_spill] sm:$0xff] %v9621_v21  ;;  %12735 = vst [vmem:[#allocation92_spill] sm:$0xff] %v9624_v55  ;;  %v9636_v12 = vpop.f32.mrb[21].mxu1  ;;  %v12740_v55 = vld [vmem:[#allocation35_spill] sm:$0xff]  ;;  %v9653_v21 = vmul.f32 2.7557319e-06, %v12743_v29 }
 0x303   :  { %12736 = vst [vmem:[#allocation93_spill] sm:$0xff] %v9626_v34  ;;  %12739 = vst [vmem:[#allocation31_spill] sm:$0xff] %v9636_v12  ;;  %v9645_v34 = vmul.f32 2.7557319e-06, %v12740_v55  ;;  %v9656_v12 = vmul.f32 0.008333334, %v12743_v29  ;;  %v2255_v29 = vadd.f32 %v2239_v62, %v9498_v15 }
 0x304   :  { %12744 = vst [vmem:[#allocation36_spill] sm:$0xff] %v9653_v21  ;;  %12747 = vst [vmem:[#allocation96_spill] sm:$0xff] %v9662_v30  ;;  %v9668_v27 = vmul.f32 0.008333334, %v12740_v55  ;;  %v12754_v30 = vld [vmem:[#allocation40_spill] sm:$0xff]  ;;  %v12756_v15 = vld [vmem:[#allocation41_spill] sm:$0xff] }
 0x305   :  { %12741 = vst [vmem:[#allocation94_spill] sm:$0xff] %v9645_v34  ;;  %12745 = vst [vmem:[#allocation95_spill] sm:$0xff] %v9656_v12  ;;  %v9670_v60 = vpop.f32.mrb[22].mxu1  ;;  %v9673_v34 = vadd.f32 %v2238_v16, %v9491_v17  ;;  %v12751_v12 = vld [vmem:[#allocation37_spill] sm:$0xff]  ;;  %v2242_v37 = vmul.f32 2.7557319e-06, %v12754_v30  ;;  %v3717_v17 = vadd.f32 %v9480_v42, %v12738_v19  ;;  %v9690_v16 = vadd.f32 %v2241_v23, %v9527_v56 }
 0x306   :  { %12748 = vst [vmem:[#allocation97_spill] sm:$0xff] %v9665_v31  ;;  %12749 = vst [vmem:[#allocation98_spill] sm:$0xff] %v9668_v27  ;;  %v9677_v21 = vmul.f32 2.7557319e-06, %v12751_v12  ;;  %v9680_v7 = vpop.f32.mrb[23].mxu1  ;;  %v3026_v31 = vadd.f32 %v3010_v11, %v9517_v49  ;;  %v12760_v49 = vld [vmem:[#allocation43_spill] sm:$0xff]  ;;  %v9706_v42 = vadd.f32 %v9504_v41, %v12742_v44  ;;  %v3028_v23 = vadd.f32 %v3012_v61, %v2996_v18 }
 0x307   :  { %12750 = vst [vmem:[#allocation99_spill] sm:$0xff] %v9670_v60  ;;  %12753 = vst [vmem:[#allocation101_spill] sm:$0xff] %v9680_v7  ;;  %v9685_v55 = vmul.f32 0.008333334, %v12751_v12  ;;  %v9693_v62 = vmul.f32 2.7557319e-06, %v12756_v15 }
 0x308   :  { %12752 = vst [vmem:[#allocation100_spill] sm:$0xff] %v9677_v21  ;;  %v3013_v27 = vmul.f32 0.008333334, %v12754_v30  ;;  %v9697_v7 = vmul.f32 0.008333334, %v12756_v15  ;;  %v12759_v60 = vld [vmem:[#allocation42_spill] sm:$0xff]  ;;  %v9716_v15 = vadd.f32 %v9538_v32, %v12754_v30 }
 0x309   :  { %12755 = vst [vmem:[#allocation40_spill] sm:$0xff] %v9685_v55  ;;  %12757 = vst [vmem:[#allocation102_spill] sm:$0xff] %v9693_v62  ;;  %v2243_v21 = vmul.f32 2.7557319e-06, %v12759_v60  ;;  %v9701_v11 = vmul.f32 2.7557319e-06, %v12760_v49  ;;  %v2258_v55 = vadd.f32 %v2242_v37, %v9564_v20  ;;  %v3721_v20 = vadd.f32 %v9541_v63, %v12759_v60 }
 0x30a   :  { %12758 = vst [vmem:[#allocation103_spill] sm:$0xff] %v9697_v7  ;;  %v3014_v12 = vmul.f32 0.008333334, %v12759_v60  ;;  %v9708_v56 = vpop.f32.mrb[24].mxu1  ;;  %v2261_v19 = vmul.f32 2.755732e-07, %v8963_v58 }
 0x30b   :  { %12761 = vst [vmem:[#allocation42_spill] sm:$0xff] %v9701_v11  ;;  %v9712_v62 = vmul.f32 0.008333334, %v12760_v49  ;;  %v9718_v7 = vpop.f32.mrb[25].mxu1  ;;  %v2260_v11 = vmul.f32 2.755732e-07, %v8971_v48  ;;  %v3029_v49 = vadd.f32 %v3013_v27, %v9580_v13 }
 0x30c   :  { %12762 = vst [vmem:[#allocation104_spill] sm:$0xff] %v9718_v7  ;;  %v3031_v41 = vmul.f32 0.0013888889, %v8971_v48  ;;  %v3722_v44 = vmul.f32 0.5, %v8971_v48  ;;  %v2262_v58 = vmul.f32 2.755732e-07, %v8993_v6 }
 0x30d   :  { %v2263_v18 = vmul.f32 2.755732e-07, %v8984_v28  ;;  %v2265_v61 = vmul.f32 2.755732e-07, %v9005_v43  ;;  %v2264_v32 = vmul.f32 2.755732e-07, %v9014_v47  ;;  %v2259_v28 = vadd.f32 %v2243_v21, %v9567_v38 }
 0x30e   :  { %v2266_v30 = vmul.f32 2.755732e-07, %v9034_v33  ;;  %v2267_v7 = vmul.f32 2.755732e-07, %v9025_v40  ;;  %v9733_v37 = vpop.f32.mrb[26].mxu1  ;;  %v3030_v43 = vadd.f32 %v3014_v12, %v9577_v50  ;;  %v9742_v27 = vadd.f32 %v2260_v11, %v9585_v59 }
 0x30f   :  { %v2268_v48 = vmul.f32 2.755732e-07, %v9054_v35  ;;  %v2269_v6 = vmul.f32 2.755732e-07, %v9045_v8  ;;  %v9739_v13 = vpop.f32.mrb[27].mxu1  ;;  %v9745_v33 = vadd.f32 %v2261_v19, %v9573_v14  ;;  %v9749_v60 = vadd.f32 %v3031_v41, %v9603_v45 }
 0x310   :  { %v2271_v63 = vmul.f32 2.755732e-07, %v9065_v3  ;;  %v9752_v35 = vadd.f32 %v2262_v58, %v9588_v1  ;;  %v9755_v38 = vadd.f32 %v2263_v18, %v9596_v39  ;;  %v3042_v50 = vmul.f32 0.0013888889, %v9065_v3 }
 0x311   :  { %12763 = vst [vmem:[#allocation105_spill] sm:$0xff] %v9745_v33  ;;  %v9759_v12 = vadd.f32 %v3722_v44, %v9614_v52  ;;  %v9762_v59 = vadd.f32 %v2264_v32, %v9629_v36  ;;  %v9765_v14 = vadd.f32 %v2265_v61, %v9632_v2  ;;  %v9768_v45 = vadd.f32 %v2267_v7, %v9639_v25  ;;  %v9771_v1 = vpop.f32.mrb[28].mxu1  ;;  %v12844_v33 = vld [vmem:[#allocation96_spill] sm:$0xff] }
 0x312   :  { %12764 = vst [vmem:[#allocation106_spill] sm:$0xff] %v9752_v35  ;;  %12765 = vst [vmem:[#allocation107_spill] sm:$0xff] %v9755_v38  ;;  %v3733_v58 = vmul.f32 0.5, %v9065_v3  ;;  %v9774_v39 = vadd.f32 %v2266_v30, %v9617_v57  ;;  %v9777_v21 = vadd.f32 %v2268_v48, %v9649_v5  ;;  %v9780_v52 = vadd.f32 %v2269_v6, %v9642_v0  ;;  %v9783_v2 = vpop.f32.mrb[29].mxu1 }
 0x313   :  { %12766 = vst [vmem:[#allocation108_spill] sm:$0xff] %v9762_v59  ;;  %12767 = vst [vmem:[#allocation109_spill] sm:$0xff] %v9765_v14  ;;  %v2270_v36 = vmul.f32 2.755732e-07, %v9074_v26  ;;  %v9785_v11 = vadd.f32 %v2271_v63, %v2255_v29  ;;  %v2273_v25 = vmul.f32 2.755732e-07, %v9085_v54  ;;  %v9792_v19 = vadd.f32 %v3042_v50, %v3026_v31 }
 0x314   :  { %12768 = vst [vmem:[#allocation110_spill] sm:$0xff] %v9768_v45  ;;  %12769 = vst [vmem:[#allocation111_spill] sm:$0xff] %v9774_v39  ;;  %v3044_v3 = vmul.f32 0.0013888889, %v9085_v54  ;;  %v3735_v7 = vmul.f32 0.5, %v9085_v54  ;;  %v9797_v29 = vadd.f32 %v3733_v58, %v3717_v17  ;;  %v3737_v44 = vmul.f32 0.5, %v9105_v9 }
 0x315   :  { %12770 = vst [vmem:[#allocation112_spill] sm:$0xff] %v9777_v21  ;;  %12771 = vst [vmem:[#allocation113_spill] sm:$0xff] %v9780_v52  ;;  %v2272_v57 = vmul.f32 2.755732e-07, %v9094_v46  ;;  %v2275_v5 = vmul.f32 2.755732e-07, %v9105_v9  ;;  %v9803_v54 = vadd.f32 %v2270_v36, %v9673_v34  ;;  %v9811_v48 = vadd.f32 %v2273_v25, %v9690_v16 }
 0x316   :  { %12772 = vst [vmem:[#allocation114_spill] sm:$0xff] %v9783_v2  ;;  %12773 = vst [vmem:[#allocation115_spill] sm:$0xff] %v9792_v19  ;;  %v3046_v6 = vmul.f32 0.0013888889, %v9105_v9  ;;  %v2274_v0 = vmul.f32 2.755732e-07, %v9114_v4  ;;  %v9814_v50 = vadd.f32 %v3044_v3, %v3028_v23  ;;  %v9817_v9 = vadd.f32 %v3735_v7, %v9706_v42 }
 0x317   :  { %v3045_v41 = vmul.f32 0.0013888889, %v9114_v4  ;;  %12774 = vst [vmem:[#allocation116_spill] sm:$0xff] %v9797_v29  ;;  %v9800_v18 = vpop.f32.mrb[30].mxu1  ;;  %12776 = vst [vmem:[#allocation118_spill] sm:$0xff] %v9803_v54  ;;  %v3736_v32 = vmul.f32 0.5, %v9114_v4  ;;  %v9820_v34 = vadd.f32 %v2272_v57, %v9659_v10  ;;  %v9822_v58 = vadd.f32 %v2275_v5, %v2259_v28 }
 0x318   :  { %12775 = vst [vmem:[#allocation117_spill] sm:$0xff] %v9800_v18  ;;  %v2373_v61 = vmul.f32 2.755732e-07, %v9124_v24  ;;  %v3128_v31 = vmul.f32 0.0013888889, %v9124_v24  ;;  %v9808_v30 = vpop.f32.mrb[31].mxu1  ;;  %v9825_v4 = vadd.f32 %v3046_v6, %v3030_v43  ;;  %v9827_v46 = vadd.f32 %v2274_v0, %v2258_v55 }
 0x319   :  { %12777 = vst [vmem:[#allocation119_spill] sm:$0xff] %v9808_v30  ;;  %12778 = vst [vmem:[#allocation120_spill] sm:$0xff] %v9811_v48  ;;  %v12779_v17 = vld [vmem:[#allocation47_spill] sm:$0xff]  ;;  %v12786_v16 = vld [vmem:[#allocation49_spill] sm:$0xff]  ;;  %v9831_v23 = vadd.f32 %v3737_v44, %v3721_v20  ;;  %v9839_v28 = vadd.f32 %v3045_v41, %v3029_v49  ;;  %v9842_v57 = vadd.f32 %v3736_v32, %v9716_v15  ;;  %v9856_v41 = vmul.f32 0.5, %v9124_v24 }
 0x31a   :  { %v2372_v63 = vmul.f32 2.755732e-07, %v12779_v17  ;;  %12780 = vst [vmem:[#allocation47_spill] sm:$0xff] %v9814_v50  ;;  %12781 = vst [vmem:[#allocation121_spill] sm:$0xff] %v9817_v9  ;;  %v3127_v36 = vmul.f32 0.0013888889, %v12779_v17 }
 0x31b   :  { %12782 = vst [vmem:[#allocation122_spill] sm:$0xff] %v9820_v34  ;;  %12783 = vst [vmem:[#allocation123_spill] sm:$0xff] %v9822_v58  ;;  %v2374_v25 = vmul.f32 2.755732e-07, %v12786_v16  ;;  %v12787_v26 = vld [vmem:[#allocation48_spill] sm:$0xff]  ;;  %v12789_v3 = vld [vmem:[#allocation73_spill] sm:$0xff] }
 0x31c   :  { %12784 = vst [vmem:[#allocation124_spill] sm:$0xff] %v9825_v4  ;;  %12785 = vst [vmem:[#allocation125_spill] sm:$0xff] %v9827_v46  ;;  %v2375_v8 = vmul.f32 2.755732e-07, %v12787_v26  ;;  %v9834_v42 = vadd.f32 %v2373_v61, %v12789_v3  ;;  %v12790_v7 = vld [vmem:[#allocation74_spill] sm:$0xff]  ;;  %v12793_v43 = vld [vmem:[#allocation5_spill] sm:$0xff] }
 0x31d   :  { %12788 = vst [vmem:[#allocation49_spill] sm:$0xff] %v9831_v23  ;;  %v9837_v10 = vadd.f32 %v3128_v31, %v12790_v7  ;;  %12791 = vst [vmem:[#allocation48_spill] sm:$0xff] %v9839_v28  ;;  %v9845_v55 = vadd.f32 %v2372_v63, %v12793_v43  ;;  %v12794_v5 = vld [vmem:[#allocation50_spill] sm:$0xff]  ;;  %v3130_v0 = vmul.f32 0.0013888889, %v12787_v26  ;;  %v12795_v44 = vld [vmem:[#allocation51_spill] sm:$0xff] }
 0x31e   :  { %12792 = vst [vmem:[#allocation73_spill] sm:$0xff] %v9842_v57  ;;  %v2377_v6 = vmul.f32 2.755732e-07, %v12794_v5  ;;  %v3129_v20 = vmul.f32 0.0013888889, %v12786_v16  ;;  %v12796_v3 = vld [vmem:[#allocation77_spill] sm:$0xff] }
 0x31f   :  { %v2376_v61 = vmul.f32 2.755732e-07, %v12795_v44  ;;  %v9852_v40 = vadd.f32 %v3127_v36, %v12796_v3  ;;  %v3132_v49 = vmul.f32 0.0013888889, %v12794_v5  ;;  %v5508_v15 = vpop.f32.mrb[32].mxu0  ;;  %v12797_v31 = vld [vmem:[#allocation75_spill] sm:$0xff] }
 0x320   :  { %v9859_v32 = vadd.f32 %v2374_v25, %v12797_v31  ;;  %v12798_v63 = vld [vmem:[#allocation78_spill] sm:$0xff]  ;;  %v12799_v43 = vld [vmem:[#allocation52_spill] sm:$0xff]  ;;  %v3131_v57 = vmul.f32 0.0013888889, %v12795_v44  ;;  %v1441_v36 = vpop.f32.mrb[33].mxu0  ;;  %v12802_v3 = vld [vmem:[#allocation53_spill] sm:$0xff] }
 0x321   :  { %v9862_v7 = vadd.f32 %v2375_v8, %v12798_v63  ;;  %v2379_v47 = vmul.f32 2.755732e-07, %v12799_v43  ;;  %v12800_v23 = vld [vmem:[#allocation82_spill] sm:$0xff]  ;;  %v2378_v29 = vmul.f32 2.755732e-07, %v12802_v3  ;;  %v9872_v34 = vmul.f32 0.5, %v12779_v17 }
 0x322   :  { %v9867_v9 = vsub.f32 %v12800_v23, %v5508_v15  ;;  %v3134_v24 = vmul.f32 0.0013888889, %v12799_v43  ;;  %v12803_v25 = vld [vmem:[#allocation85_spill] sm:$0xff]  ;;  %v12804_v28 = vld [vmem:[#allocation86_spill] sm:$0xff]  ;;  %v12805_v63 = vld [vmem:[#allocation79_spill] sm:$0xff] }
 0x323   :  { %v1681_v31 = vsub.f32 %v12803_v25, %v1441_v36  ;;  %v9876_v8 = vadd.f32 %v2377_v6, %v12804_v28  ;;  %v9879_v4 = vadd.f32 %v3130_v0, %v12805_v63  ;;  %v12806_v50 = vld [vmem:[#allocation76_spill] sm:$0xff]  ;;  %v12808_v54 = vld [vmem:[#allocation55_spill] sm:$0xff]  ;;  %v12809_v21 = vld [vmem:[#allocation54_spill] sm:$0xff]  ;;  %v3133_v17 = vmul.f32 0.0013888889, %v12802_v3  ;;  %v5564_v0 = vpop.f32.mrb[32].mxu1 }
 0x324   :  { %12801 = vst [vmem:[#allocation74_spill] sm:$0xff] %v9867_v9  ;;  %v9882_v19 = vadd.f32 %v3129_v20, %v12806_v50  ;;  %v12807_v46 = vld [vmem:[#allocation80_spill] sm:$0xff]  ;;  %v2380_v52 = vmul.f32 2.755732e-07, %v12808_v54  ;;  %v2381_v30 = vmul.f32 2.755732e-07, %v12809_v21  ;;  %v9903_v59 = vadd.f32 %v3134_v24, %v9607_v22 }
 0x325   :  { %v9885_v58 = vadd.f32 %v2376_v61, %v12807_v46  ;;  %v2292_v18 = vmul.f32 2.5052108e-08, %v1681_v31  ;;  %v3063_v48 = vmul.f32 0.0001984127, %v1681_v31  ;;  %v3754_v45 = vmul.f32 0.16666667, %v1681_v31 }
 0x326   :  { %v12810_v28 = vld [vmem:[#allocation87_spill] sm:$0xff]  ;;  %v5511_v63 = vpop.f32.mrb[34].mxu0  ;;  %v12811_v39 = vld [vmem:[#allocation81_spill] sm:$0xff]  ;;  %v9897_v46 = vadd.f32 %v2379_v47, %v9600_v51  ;;  %12814 = vst [vmem:[#allocation50_spill] sm:$0xff] %v9903_v59  ;;  %v1698_v3 = vsub.f32 %v5564_v0, %v12800_v23  ;;  %v1602_v31 = vpop.f32.mrb[33].mxu1 }
 0x327   :  { %v9891_v6 = vadd.f32 %v3132_v49, %v12810_v28  ;;  %v9894_v50 = vadd.f32 %v2378_v29, %v12811_v39  ;;  %v12812_v20 = vld [vmem:[#allocation83_spill] sm:$0xff]  ;;  %v9907_v49 = vsub.f32 %v9582_v53, %v5511_v63  ;;  %v1451_v28 = vpop.f32.mrb[35].mxu0  ;;  %v9910_v14 = vadd.f32 %v2292_v18, %v9742_v27  ;;  %v12818_v47 = vld [vmem:[#allocation89_spill] sm:$0xff]  ;;  %v5567_v22 = vpop.f32.mrb[34].mxu1  ;;  %v12823_v27 = vld [vmem:[#allocation88_spill] sm:$0xff] }
 0x328   :  { %v9900_v61 = vadd.f32 %v3131_v57, %v12812_v20  ;;  %v9913_v39 = vadd.f32 %v3063_v48, %v9749_v60  ;;  %v1697_v51 = vsub.f32 %v1602_v31, %v12803_v25  ;;  %v9917_v29 = vsub.f32 %v12818_v47, %v1451_v28  ;;  %v12822_v0 = vld [vmem:[#allocation91_spill] sm:$0xff]  ;;  %v12824_v60 = vld [vmem:[#allocation84_spill] sm:$0xff]  ;;  %v12827_v31 = vld [vmem:[#allocation57_spill] sm:$0xff] }
 0x329   :  { %12815 = vst [vmem:[#allocation51_spill] sm:$0xff] %v9907_v49  ;;  %12816 = vst [vmem:[#allocation77_spill] sm:$0xff] %v9910_v14  ;;  %v3136_v57 = vmul.f32 0.0013888889, %v12809_v21  ;;  %v9921_v23 = vadd.f32 %v3754_v45, %v9759_v12  ;;  %v9923_v24 = vsub.f32 %v1698_v3, %v5508_v15  ;;  %v9926_v20 = vadd.f32 %v2380_v52, %v12822_v0  ;;  %v12828_v14 = vld [vmem:[#allocation56_spill] sm:$0xff]  ;;  %v12848_v2 = vld [vmem:[#allocation97_spill] sm:$0xff] }
 0x32a   :  { %12813 = vst [vmem:[#allocation5_spill] sm:$0xff] %v9900_v61  ;;  %12817 = vst [vmem:[#allocation75_spill] sm:$0xff] %v9913_v39  ;;  %v9929_v18 = vadd.f32 %v2381_v30, %v12823_v27  ;;  %v9932_v48 = vadd.f32 %v3133_v17, %v12824_v60  ;;  %v9934_v25 = vsub.f32 %v1697_v51, %v1441_v36  ;;  %v2382_v39 = vmul.f32 2.755732e-07, %v12827_v31  ;;  %v12829_v36 = vld [vmem:[#allocation90_spill] sm:$0xff]  ;;  %v1612_v60 = vpop.f32.mrb[35].mxu1 }
 0x32b   :  { %12819 = vst [vmem:[#allocation78_spill] sm:$0xff] %v9917_v29  ;;  %12820 = vst [vmem:[#allocation52_spill] sm:$0xff] %v9921_v23  ;;  %v2383_v59 = vmul.f32 2.755732e-07, %v12828_v14  ;;  %v3135_v12 = vmul.f32 0.0013888889, %v12808_v54  ;;  %v1700_v52 = vsub.f32 %v5567_v22, %v9582_v53  ;;  %v9946_v51 = vadd.f32 %v3136_v57, %v12829_v36 }
 0x32c   :  { %12821 = vst [vmem:[#allocation82_spill] sm:$0xff] %v9923_v24  ;;  %12825 = vst [vmem:[#allocation85_spill] sm:$0xff] %v9932_v48  ;;  %v2405_v45 = vmul.f32 2.5052108e-08, %v9923_v24  ;;  %v3160_v15 = vmul.f32 0.0001984127, %v9923_v24  ;;  %v1699_v38 = vsub.f32 %v1612_v60, %v12818_v47 }
 0x32d   :  { %12826 = vst [vmem:[#allocation86_spill] sm:$0xff] %v9934_v25  ;;  %v3138_v30 = vmul.f32 0.0013888889, %v12828_v14  ;;  %v2404_v3 = vmul.f32 2.5052108e-08, %v9934_v25  ;;  %12830 = vst [vmem:[#allocation79_spill] sm:$0xff] %v9946_v51  ;;  %v9949_v27 = vsub.f32 %v1700_v52, %v5511_v63 }
 0x32e   :  { %v3159_v17 = vmul.f32 0.0001984127, %v9934_v25  ;;  %v3137_v0 = vmul.f32 0.0013888889, %v12827_v31  ;;  %v5514_v23 = vpop.f32.mrb[36].mxu0  ;;  %v9952_v48 = vadd.f32 %v2405_v45, %v9834_v42  ;;  %v12833_v24 = vld [vmem:[#allocation58_spill] sm:$0xff]  ;;  %v9956_v22 = vadd.f32 %v3160_v15, %v9837_v10 }
 0x32f   :  { %12831 = vst [vmem:[#allocation76_spill] sm:$0xff] %v9949_v27  ;;  %v2385_v53 = vmul.f32 2.755732e-07, %v12833_v24  ;;  %v12835_v25 = vld [vmem:[#allocation93_spill] sm:$0xff]  ;;  %v1461_v57 = vpop.f32.mrb[37].mxu0  ;;  %v5570_v36 = vpop.f32.mrb[36].mxu1  ;;  %v9963_v63 = vadd.f32 %v2404_v3, %v9845_v55  ;;  %v9974_v60 = vsub.f32 %v1699_v38, %v1451_v28  ;;  %v9980_v55 = vadd.f32 %v2383_v59, %v12844_v33 }
 0x330   :  { %12832 = vst [vmem:[#allocation80_spill] sm:$0xff] %v9952_v48  ;;  %12834 = vst [vmem:[#allocation55_spill] sm:$0xff] %v9956_v22  ;;  %v9960_v35 = vsub.f32 %v12835_v25, %v5514_v23  ;;  %v9966_v52 = vadd.f32 %v3159_v17, %v9852_v40  ;;  %v2407_v42 = vmul.f32 2.5052108e-08, %v9949_v27  ;;  %v12839_v45 = vld [vmem:[#allocation31_spill] sm:$0xff]  ;;  %v12843_v22 = vld [vmem:[#allocation36_spill] sm:$0xff]  ;;  %v1702_v17 = vsub.f32 %v5570_v36, %v12835_v25 }
 0x331   :  { %12837 = vst [vmem:[#allocation87_spill] sm:$0xff] %v9963_v63  ;;  %v9970_v48 = vsub.f32 %v12839_v45, %v1461_v57  ;;  %v12841_v10 = vld [vmem:[#allocation59_spill] sm:$0xff]  ;;  %v3140_v47 = vmul.f32 0.0013888889, %v12833_v24  ;;  %12842 = vst [vmem:[#allocation89_spill] sm:$0xff] %v9974_v60  ;;  %v9977_v51 = vadd.f32 %v2382_v39, %v12843_v22  ;;  %v12845_v3 = vld [vmem:[#allocation92_spill] sm:$0xff]  ;;  %v9990_v61 = vadd.f32 %v3138_v30, %v12848_v2 }
 0x332   :  { %12836 = vst [vmem:[#allocation54_spill] sm:$0xff] %v9960_v35  ;;  %12838 = vst [vmem:[#allocation81_spill] sm:$0xff] %v9966_v52  ;;  %v2384_v15 = vmul.f32 2.755732e-07, %v12841_v10  ;;  %v9983_v40 = vadd.f32 %v3135_v12, %v12845_v3  ;;  %v12847_v52 = vld [vmem:[#allocation100_spill] sm:$0xff]  ;;  %v12851_v24 = vld [vmem:[#allocation95_spill] sm:$0xff]  ;;  %v9999_v12 = vsub.f32 %v1702_v17, %v5514_v23 }
 0x333   :  { %12840 = vst [vmem:[#allocation83_spill] sm:$0xff] %v9970_v48  ;;  %v9987_v63 = vadd.f32 %v2385_v53, %v12847_v52  ;;  %12849 = vst [vmem:[#allocation88_spill] sm:$0xff] %v9990_v61  ;;  %v3139_v38 = vmul.f32 0.0013888889, %v12841_v10  ;;  %v2406_v28 = vmul.f32 2.5052108e-08, %v9974_v60  ;;  %v9996_v33 = vadd.f32 %v3137_v0, %v12851_v24 }
 0x334   :  { %12846 = vst [vmem:[#allocation91_spill] sm:$0xff] %v9983_v40  ;;  %v12850_v39 = vld [vmem:[#allocation60_spill] sm:$0xff]  ;;  %v1622_v25 = vpop.f32.mrb[37].mxu1  ;;  %v5517_v36 = vpop.f32.mrb[38].mxu0  ;;  %v10002_v53 = vadd.f32 %v2407_v42, %v9862_v7  ;;  %v12854_v2 = vld [vmem:[#allocation94_spill] sm:$0xff]  ;;  %v12857_v61 = vld [vmem:[#allocation99_spill] sm:$0xff] }
 0x335   :  { %v2387_v22 = vmul.f32 2.755732e-07, %v12850_v39  ;;  %12852 = vst [vmem:[#allocation84_spill] sm:$0xff] %v9996_v33  ;;  %v3142_v59 = vmul.f32 0.0013888889, %v12850_v39  ;;  %v10005_v30 = vadd.f32 %v2384_v15, %v12854_v2  ;;  %v12855_v52 = vld [vmem:[#allocation40_spill] sm:$0xff]  ;;  %v1701_v10 = vsub.f32 %v1622_v25, %v12839_v45 }
 0x336   :  { %12853 = vst [vmem:[#allocation57_spill] sm:$0xff] %v10002_v53  ;;  %v10008_v3 = vadd.f32 %v3140_v47, %v12855_v52  ;;  %v10012_v24 = vsub.f32 %v12857_v61, %v5517_v36  ;;  %v1471_v0 = vpop.f32.mrb[39].mxu0  ;;  %v5573_v39 = vpop.f32.mrb[38].mxu1  ;;  %v10015_v23 = vadd.f32 %v2406_v28, %v9859_v32  ;;  %v12860_v17 = vld [vmem:[#allocation61_spill] sm:$0xff]  ;;  %v3162_v7 = vmul.f32 0.0001984127, %v9949_v27 }
 0x337   :  { %v2386_v33 = vmul.f32 2.755732e-07, %v12860_v17  ;;  %v2409_v42 = vmul.f32 2.5052108e-08, %v9999_v12  ;;  %v12861_v15 = vld [vmem:[#allocation101_spill] sm:$0xff]  ;;  %v12863_v47 = vld [vmem:[#allocation98_spill] sm:$0xff]  ;;  %v10027_v25 = vsub.f32 %v1701_v10, %v1461_v57  ;;  %v10033_v32 = vadd.f32 %v3142_v59, %v9712_v62 }
 0x338   :  { %12856 = vst [vmem:[#allocation56_spill] sm:$0xff] %v10008_v3  ;;  %12858 = vst [vmem:[#allocation90_spill] sm:$0xff] %v10012_v24  ;;  %v10021_v2 = vsub.f32 %v12861_v15, %v1471_v0  ;;  %v10024_v52 = vadd.f32 %v3139_v38, %v12863_v47  ;;  %v3161_v45 = vmul.f32 0.0001984127, %v9974_v60  ;;  %v12865_v53 = vld [vmem:[#allocation42_spill] sm:$0xff]  ;;  %v1704_v28 = vsub.f32 %v5573_v39, %v12857_v61  ;;  %v1632_v59 = vpop.f32.mrb[39].mxu1 }
 0x339   :  { %12859 = vst [vmem:[#allocation93_spill] sm:$0xff] %v10015_v23  ;;  %12864 = vst [vmem:[#allocation36_spill] sm:$0xff] %v10027_v25  ;;  %v10030_v3 = vadd.f32 %v2387_v22, %v12865_v53  ;;  %v3141_v27 = vmul.f32 0.0013888889, %v12860_v17  ;;  %v12866_v23 = vld [vmem:[#allocation7_spill] sm:$0xff]  ;;  %v3805_v38 = vmul.f32 0.5, %v12787_v26  ;;  %v10049_v39 = vadd.f32 %v2409_v42, %v9876_v8 }
 0x33a   :  { %12862 = vst [vmem:[#allocation31_spill] sm:$0xff] %v10021_v2  ;;  %v10039_v40 = vadd.f32 %v9856_v41, %v12866_v23  ;;  %v2408_v47 = vmul.f32 2.5052108e-08, %v10027_v25  ;;  %v3811_v57 = vmul.f32 0.5, %v12809_v21  ;;  %v3804_v10 = vmul.f32 0.5, %v12786_v16  ;;  %v5520_v61 = vpop.f32.mrb[40].mxu0 }
 0x33b   :  { %v3810_v22 = vmul.f32 0.5, %v12808_v54  ;;  %v10046_v62 = vsub.f32 %v1704_v28, %v5517_v36  ;;  %v10052_v41 = vadd.f32 %v3162_v7, %v9879_v4  ;;  %v3807_v26 = vmul.f32 0.5, %v12794_v5  ;;  %v1481_v16 = vpop.f32.mrb[41].mxu0  ;;  %v5576_v23 = vpop.f32.mrb[40].mxu1  ;;  %v12872_v42 = vld [vmem:[#allocation104_spill] sm:$0xff]  ;;  %v12875_v28 = vld [vmem:[#allocation102_spill] sm:$0xff] }
 0x33c   :  { %12867 = vst [vmem:[#allocation96_spill] sm:$0xff] %v10039_v40  ;;  %v1703_v53 = vsub.f32 %v1632_v59, %v12861_v15  ;;  %v10057_v21 = vsub.f32 %v9708_v56, %v5520_v61  ;;  %v10060_v54 = vadd.f32 %v2408_v47, %v9885_v58  ;;  %v10063_v36 = vadd.f32 %v3161_v45, %v9882_v19  ;;  %v12877_v47 = vld [vmem:[#allocation6_spill] sm:$0xff] }
 0x33d   :  { %12868 = vst [vmem:[#allocation92_spill] sm:$0xff] %v10046_v62  ;;  %12869 = vst [vmem:[#allocation100_spill] sm:$0xff] %v10052_v41  ;;  %v2411_v8 = vmul.f32 2.5052108e-08, %v10046_v62  ;;  %v10067_v4 = vsub.f32 %v12872_v42, %v1481_v16  ;;  %v3813_v5 = vmul.f32 0.5, %v12828_v14  ;;  %v3806_v7 = vmul.f32 0.5, %v12795_v44 }
 0x33e   :  { %12870 = vst [vmem:[#allocation97_spill] sm:$0xff] %v10057_v21  ;;  %12871 = vst [vmem:[#allocation95_spill] sm:$0xff] %v10063_v36  ;;  %v10071_v15 = vsub.f32 %v1703_v53, %v1471_v0  ;;  %v10074_v59 = vadd.f32 %v2386_v33, %v12875_v28  ;;  %v12876_v41 = vld [vmem:[#allocation103_spill] sm:$0xff]  ;;  %v10081_v19 = vadd.f32 %v9872_v34, %v12877_v47  ;;  %v12879_v36 = vld [vmem:[#allocation12_spill] sm:$0xff]  ;;  %v3812_v44 = vmul.f32 0.5, %v12827_v31 }
 0x33f   :  { %12873 = vst [vmem:[#allocation94_spill] sm:$0xff] %v10067_v4  ;;  %v10077_v58 = vadd.f32 %v3141_v27, %v12876_v41  ;;  %v1706_v45 = vsub.f32 %v5576_v23, %v9708_v56  ;;  %v10085_v40 = vadd.f32 %v3805_v38, %v12879_v36  ;;  %v12881_v14 = vld [vmem:[#allocation25_spill] sm:$0xff]  ;;  %v12883_v0 = vld [vmem:[#allocation10_spill] sm:$0xff]  ;;  %v12885_v27 = vld [vmem:[#allocation27_spill] sm:$0xff]  ;;  %v1642_v38 = vpop.f32.mrb[41].mxu1  ;;  %v5523_v23 = vpop.f32.mrb[42].mxu0 }
 0x340   :  { %12874 = vst [vmem:[#allocation40_spill] sm:$0xff] %v10071_v15  ;;  %12878 = vst [vmem:[#allocation99_spill] sm:$0xff] %v10081_v19  ;;  %v10088_v60 = vadd.f32 %v3811_v57, %v12881_v14  ;;  %v2410_v33 = vmul.f32 2.5052108e-08, %v10071_v15  ;;  %v10093_v53 = vadd.f32 %v3804_v10, %v12883_v0  ;;  %v10096_v41 = vadd.f32 %v3810_v22, %v12885_v27  ;;  %v12887_v34 = vld [vmem:[#allocation17_spill] sm:$0xff]  ;;  %v12890_v36 = vld [vmem:[#allocation32_spill] sm:$0xff] }
 0x341   :  { %12880 = vst [vmem:[#allocation61_spill] sm:$0xff] %v10085_v40  ;;  %v10099_v28 = vadd.f32 %v3807_v26, %v12887_v34  ;;  %v10101_v56 = vsub.f32 %v1706_v45, %v5520_v61  ;;  %v10104_v57 = vadd.f32 %v2411_v8, %v9897_v46  ;;  %v10107_v31 = vadd.f32 %v3813_v5, %v12890_v36  ;;  %v12892_v47 = vld [vmem:[#allocation15_spill] sm:$0xff]  ;;  %v1491_v26 = vpop.f32.mrb[43].mxu0  ;;  %v5579_v0 = vpop.f32.mrb[42].mxu1 }
 0x342   :  { %12882 = vst [vmem:[#allocation101_spill] sm:$0xff] %v10088_v60  ;;  %12884 = vst [vmem:[#allocation98_spill] sm:$0xff] %v10093_v53  ;;  %v10110_v14 = vadd.f32 %v3806_v7, %v12892_v47  ;;  %v1705_v10 = vsub.f32 %v1642_v38, %v12872_v42  ;;  %v10114_v22 = vsub.f32 %v9733_v37, %v5523_v23  ;;  %v10120_v45 = vmul.f32 0.5, %v12799_v43  ;;  %v12896_v7 = vld [vmem:[#allocation30_spill] sm:$0xff] }
 0x343   :  { %12886 = vst [vmem:[#allocation42_spill] sm:$0xff] %v10096_v41  ;;  %12888 = vst [vmem:[#allocation7_spill] sm:$0xff] %v10099_v28  ;;  %v10117_v61 = vadd.f32 %v2410_v33, %v9894_v50  ;;  %v3164_v46 = vmul.f32 0.0001984127, %v9999_v12  ;;  %v2413_v8 = vmul.f32 2.5052108e-08, %v10101_v56  ;;  %v10125_v5 = vsub.f32 %v9739_v13, %v1491_v26 }
 0x344   :  { %12889 = vst [vmem:[#allocation104_spill] sm:$0xff] %v10101_v56  ;;  %12891 = vst [vmem:[#allocation102_spill] sm:$0xff] %v10107_v31  ;;  %v10128_v42 = vadd.f32 %v3812_v44, %v12896_v7  ;;  %v2293_v27 = vmul.f32 2.5052108e-08, %v9867_v9  ;;  %v3163_v34 = vmul.f32 0.0001984127, %v10027_v25  ;;  %v10132_v38 = vsub.f32 %v1705_v10, %v1481_v16 }
 0x345   :  { %12893 = vst [vmem:[#allocation103_spill] sm:$0xff] %v10110_v14  ;;  %12894 = vst [vmem:[#allocation6_spill] sm:$0xff] %v10114_v22  ;;  %v2303_v50 = vmul.f32 2.5052108e-08, %v10114_v22  ;;  %v2295_v43 = vmul.f32 2.5052108e-08, %v9907_v49  ;;  %v1708_v47 = vsub.f32 %v5579_v0, %v9733_v37  ;;  %v10152_v37 = vadd.f32 %v3164_v46, %v9891_v6 }
 0x346   :  { %12895 = vst [vmem:[#allocation12_spill] sm:$0xff] %v10125_v5  ;;  %12897 = vst [vmem:[#allocation25_spill] sm:$0xff] %v10128_v42  ;;  %v2294_v33 = vmul.f32 2.5052108e-08, %v9917_v29  ;;  %v2297_v36 = vmul.f32 2.5052108e-08, %v9960_v35  ;;  %v10149_v29 = vadd.f32 %v2413_v8, %v9929_v18 }
 0x347   :  { %12898 = vst [vmem:[#allocation10_spill] sm:$0xff] %v10132_v38  ;;  %v2296_v14 = vmul.f32 2.5052108e-08, %v9970_v48  ;;  %v2299_v44 = vmul.f32 2.5052108e-08, %v10012_v24  ;;  %v10143_v9 = vadd.f32 %v2303_v50, %v9785_v11  ;;  %v10146_v10 = vsub.f32 %v1708_v47, %v5523_v23  ;;  %v1652_v49 = vpop.f32.mrb[43].mxu1 }
 0x348   :  { %v2412_v7 = vmul.f32 2.5052108e-08, %v10132_v38  ;;  %v2298_v16 = vmul.f32 2.5052108e-08, %v10021_v2  ;;  %v5526_v42 = vpop.f32.mrb[44].mxu0  ;;  %12900 = vst [vmem:[#allocation17_spill] sm:$0xff] %v10149_v29  ;;  %v1707_v0 = vsub.f32 %v1652_v49, %v9739_v13 }
 0x349   :  { %12899 = vst [vmem:[#allocation27_spill] sm:$0xff] %v10146_v10  ;;  %12901 = vst [vmem:[#allocation32_spill] sm:$0xff] %v10152_v37  ;;  %v10156_v24 = vsub.f32 %v9771_v1, %v5526_v42  ;;  %v1501_v48 = vpop.f32.mrb[45].mxu0  ;;  %v5582_v11 = vpop.f32.mrb[44].mxu1  ;;  %v12904_v23 = vld [vmem:[#allocation5_spill] sm:$0xff]  ;;  %v12906_v18 = vld [vmem:[#allocation114_spill] sm:$0xff] }
 0x34a   :  { %v10159_v50 = vadd.f32 %v2412_v7, %v9926_v20  ;;  %v10162_v47 = vadd.f32 %v3163_v34, %v12904_v23  ;;  %v2415_v2 = vmul.f32 2.5052108e-08, %v10146_v10  ;;  %v10166_v8 = vsub.f32 %v12906_v18, %v1501_v48  ;;  %v12908_v6 = vld [vmem:[#allocation105_spill] sm:$0xff]  ;;  %v12909_v13 = vld [vmem:[#allocation106_spill] sm:$0xff]  ;;  %v12911_v20 = vld [vmem:[#allocation107_spill] sm:$0xff] }
 0x34b   :  { %12902 = vst [vmem:[#allocation15_spill] sm:$0xff] %v10156_v24  ;;  %v10169_v46 = vadd.f32 %v2293_v27, %v12908_v6  ;;  %v10172_v49 = vadd.f32 %v2294_v33, %v12909_v13  ;;  %v10174_v37 = vsub.f32 %v1707_v0, %v1491_v26  ;;  %v2305_v35 = vmul.f32 2.5052108e-08, %v10156_v24  ;;  %v12912_v34 = vld [vmem:[#allocation109_spill] sm:$0xff]  ;;  %v12913_v6 = vld [vmem:[#allocation108_spill] sm:$0xff]  ;;  %v12914_v33 = vld [vmem:[#allocation111_spill] sm:$0xff] }
 0x34c   :  { %12903 = vst [vmem:[#allocation30_spill] sm:$0xff] %v10159_v50  ;;  %12905 = vst [vmem:[#allocation5_spill] sm:$0xff] %v10162_v47  ;;  %v10178_v7 = vadd.f32 %v2295_v43, %v12911_v20  ;;  %v10181_v23 = vadd.f32 %v2297_v36, %v12912_v34  ;;  %v2301_v47 = vmul.f32 2.5052108e-08, %v10057_v21  ;;  %v2300_v31 = vmul.f32 2.5052108e-08, %v10067_v4 }
 0x34d   :  { %12907 = vst [vmem:[#allocation114_spill] sm:$0xff] %v10166_v8  ;;  %12910 = vst [vmem:[#allocation105_spill] sm:$0xff] %v10174_v37  ;;  %v1710_v27 = vsub.f32 %v5582_v11, %v9771_v1  ;;  %v10187_v28 = vadd.f32 %v2296_v14, %v12913_v6  ;;  %v2414_v26 = vmul.f32 2.5052108e-08, %v10174_v37  ;;  %v10191_v0 = vadd.f32 %v2298_v16, %v12914_v33  ;;  %v12915_v13 = vld [vmem:[#allocation110_spill] sm:$0xff]  ;;  %v12916_v20 = vld [vmem:[#allocation120_spill] sm:$0xff] }
 0x34e   :  { %v10194_v43 = vadd.f32 %v2299_v44, %v12915_v13  ;;  %v10197_v36 = vadd.f32 %v2305_v35, %v12916_v20  ;;  %v3166_v34 = vmul.f32 0.0001984127, %v10046_v62  ;;  %v2302_v4 = vmul.f32 2.5052108e-08, %v10125_v5  ;;  %v1662_v1 = vpop.f32.mrb[45].mxu1  ;;  %v5529_v14 = vpop.f32.mrb[46].mxu0 }
 0x34f   :  { %v10201_v21 = vsub.f32 %v1710_v27, %v5526_v42  ;;  %v10204_v11 = vadd.f32 %v2415_v2, %v9980_v55  ;;  %v3165_v16 = vmul.f32 0.0001984127, %v10071_v15  ;;  %v1709_v6 = vsub.f32 %v1662_v1, %v12906_v18  ;;  %v12919_v44 = vld [vmem:[#allocation117_spill] sm:$0xff]  ;;  %v1511_v35 = vpop.f32.mrb[47].mxu0  ;;  %v5585_v13 = vpop.f32.mrb[46].mxu1  ;;  %v12922_v27 = vld [vmem:[#allocation119_spill] sm:$0xff] }
 0x350   :  { %v10209_v33 = vsub.f32 %v12919_v44, %v5529_v14  ;;  %v10212_v20 = vadd.f32 %v2414_v26, %v9977_v51  ;;  %v10216_v5 = vsub.f32 %v12922_v27, %v1511_v35  ;;  %v12924_v41 = vld [vmem:[#allocation112_spill] sm:$0xff]  ;;  %v12925_v2 = vld [vmem:[#allocation113_spill] sm:$0xff]  ;;  %v3168_v18 = vmul.f32 0.0001984127, %v10101_v56 }
 0x351   :  { %12917 = vst [vmem:[#allocation106_spill] sm:$0xff] %v10201_v21  ;;  %12918 = vst [vmem:[#allocation107_spill] sm:$0xff] %v10204_v11  ;;  %v2417_v42 = vmul.f32 2.5052108e-08, %v10201_v21  ;;  %v10219_v55 = vadd.f32 %v2300_v31, %v12924_v41  ;;  %v10222_v53 = vadd.f32 %v2301_v47, %v12925_v2  ;;  %v3074_v1 = vmul.f32 0.0001984127, %v10114_v22 }
 0x352   :  { %12920 = vst [vmem:[#allocation109_spill] sm:$0xff] %v10209_v33  ;;  %12921 = vst [vmem:[#allocation108_spill] sm:$0xff] %v10212_v20  ;;  %v10226_v60 = vsub.f32 %v1709_v6, %v1501_v48  ;;  %v2307_v51 = vmul.f32 2.5052108e-08, %v10209_v33  ;;  %v3167_v26 = vmul.f32 0.0001984127, %v10132_v38  ;;  %v1712_v19 = vsub.f32 %v5585_v13, %v12919_v44 }
 0x353   :  { %12923 = vst [vmem:[#allocation111_spill] sm:$0xff] %v10216_v5  ;;  %v2306_v40 = vmul.f32 2.5052108e-08, %v10216_v5  ;;  %v12927_v20 = vld [vmem:[#allocation118_spill] sm:$0xff]  ;;  %v3170_v31 = vmul.f32 0.0001984127, %v10146_v10 }
 0x354   :  { %12926 = vst [vmem:[#allocation110_spill] sm:$0xff] %v10226_v60  ;;  %v10233_v41 = vadd.f32 %v2302_v4, %v12927_v20  ;;  %v3076_v47 = vmul.f32 0.0001984127, %v10156_v24  ;;  %v2416_v2 = vmul.f32 2.5052108e-08, %v10226_v60  ;;  %v12928_v11 = vld [vmem:[#allocation123_spill] sm:$0xff]  ;;  %v10241_v6 = vsub.f32 %v1712_v19, %v5529_v14 }
 0x355   :  { %v10239_v48 = vadd.f32 %v2307_v51, %v12928_v11  ;;  %v1672_v22 = vpop.f32.mrb[47].mxu1  ;;  %v10243_v38 = vpop.f32.mrb[48].mxu0  ;;  %v12930_v56 = vld [vmem:[#allocation125_spill] sm:$0xff]  ;;  %v10249_v4 = vadd.f32 %v2417_v42, %v9987_v63  ;;  %v12932_v44 = vld [vmem:[#allocation50_spill] sm:$0xff]  ;;  %v10255_v20 = vmul.f32 2.5052108e-08, %v10166_v8 }
 0x356   :  { %12929 = vst [vmem:[#allocation120_spill] sm:$0xff] %v10241_v6  ;;  %v10246_v15 = vadd.f32 %v2306_v40, %v12930_v56  ;;  %v10252_v13 = vadd.f32 %v3166_v34, %v12932_v44  ;;  %v1711_v11 = vsub.f32 %v1672_v22, %v12922_v27  ;;  %v10258_v51 = vpop.f32.mrb[49].mxu0  ;;  %v10260_v19 = vpop.f32.mrb[48].mxu1  ;;  %v10263_v14 = vadd.f32 %v2416_v2, %v10005_v30  ;;  %v12935_v40 = vld [vmem:[#allocation85_spill] sm:$0xff]  ;;  %v12964_v50 = vld [vmem:[#allocation124_spill] sm:$0xff] }
 0x357   :  { %12931 = vst [vmem:[#allocation117_spill] sm:$0xff] %v10249_v4  ;;  %v10266_v56 = vadd.f32 %v3165_v16, %v12935_v40  ;;  %v3169_v63 = vmul.f32 0.0001984127, %v10174_v37  ;;  %v3172_v34 = vmul.f32 0.0001984127, %v10201_v21  ;;  %v10273_v44 = vsub.f32 %v10243_v38, %v10260_v19  ;;  %v10280_v30 = vpop.f32.mrb[50].mxu0 }
 0x358   :  { %12933 = vst [vmem:[#allocation119_spill] sm:$0xff] %v10252_v13  ;;  %12934 = vst [vmem:[#allocation112_spill] sm:$0xff] %v10263_v14  ;;  %v2419_v42 = vmul.f32 2.5052108e-08, %v10241_v6  ;;  %v3078_v22 = vmul.f32 0.0001984127, %v10209_v33  ;;  %v10276_v27 = vsub.f32 %v1711_v11, %v1511_v35 }
 0x359   :  { %12936 = vst [vmem:[#allocation113_spill] sm:$0xff] %v10266_v56  ;;  %12937 = vst [vmem:[#allocation118_spill] sm:$0xff] %v10273_v44  ;;  %v10278_v13 = vpop.f32.mrb[49].mxu1  ;;  %v12939_v16 = vld [vmem:[#allocation79_spill] sm:$0xff]  ;;  %v10292_v21 = vpop.f32.mrb[51].mxu0 }
 0x35a   :  { %12938 = vst [vmem:[#allocation123_spill] sm:$0xff] %v10276_v27  ;;  %v10283_v2 = vadd.f32 %v3168_v18, %v12939_v16  ;;  %v12941_v40 = vld [vmem:[#allocation91_spill] sm:$0xff]  ;;  %v10290_v8 = vsub.f32 %v10258_v51, %v10278_v13  ;;  %v10294_v37 = vpop.f32.mrb[50].mxu1  ;;  %v2325_v35 = vmul.f32 2.0876756e-09, %v10273_v44  ;;  %v10298_v11 = vadd.f32 %v2419_v42, %v10030_v3  ;;  %v10314_v3 = vpop.f32.mrb[52].mxu0 }
 0x35b   :  { %v10286_v56 = vadd.f32 %v3167_v26, %v12941_v40  ;;  %v12945_v14 = vld [vmem:[#allocation115_spill] sm:$0xff]  ;;  %v3171_v18 = vmul.f32 0.0001984127, %v10226_v60  ;;  %v3077_v26 = vmul.f32 0.0001984127, %v10216_v5  ;;  %v10308_v40 = vsub.f32 %v10280_v30, %v10294_v37  ;;  %v12948_v42 = vld [vmem:[#allocation88_spill] sm:$0xff] }
 0x35c   :  { %12940 = vst [vmem:[#allocation125_spill] sm:$0xff] %v10283_v2  ;;  %12943 = vst [vmem:[#allocation85_spill] sm:$0xff] %v10290_v8  ;;  %v10301_v10 = vadd.f32 %v3074_v1, %v12945_v14  ;;  %v2418_v16 = vmul.f32 2.5052108e-08, %v10276_v27  ;;  %5786 = vmatprep.mubr.f32.mxu1 %v10290_v8  ;;  %v10312_v2 = vpop.f32.mrb[51].mxu1  ;;  %v10318_v14 = vadd.f32 %v2325_v35, %v10169_v46  ;;  %v10327_v60 = vpop.f32.mrb[53].mxu0 }
 0x35d   :  { %12942 = vst [vmem:[#allocation50_spill] sm:$0xff] %v10286_v56  ;;  %12944 = vst [vmem:[#allocation79_spill] sm:$0xff] %v10298_v11  ;;  %v3174_v56 = vmul.f32 0.0001984127, %v10241_v6  ;;  %v2324_v1 = vmul.f32 2.0876756e-09, %v10290_v8  ;;  %v10325_v11 = vsub.f32 %v10292_v21, %v10312_v2  ;;  %v10395_v62 = vadd.f32 %v3078_v22, %v12964_v50 }
 0x35e   :  { %12946 = vst [vmem:[#allocation91_spill] sm:$0xff] %v10301_v10  ;;  %12947 = vst [vmem:[#allocation115_spill] sm:$0xff] %v10308_v40  ;;  %v10321_v10 = vadd.f32 %v3170_v31, %v12948_v42  ;;  %v10329_v6 = vpop.f32.mrb[52].mxu1  ;;  %v2327_v5 = vmul.f32 2.0876756e-09, %v10308_v40  ;;  %v10333_v4 = vadd.f32 %v2418_v16, %v10074_v59  ;;  %v12952_v8 = vld [vmem:[#allocation84_spill] sm:$0xff] }
 0x35f   :  { %12950 = vst [vmem:[#allocation126_spill] sm:$0xff] %v10325_v11  ;;  %v10336_v33 = vadd.f32 %v3169_v63, %v12952_v8  ;;  %v3173_v46 = vmul.f32 0.0001984127, %v10276_v27  ;;  %v10341_v31 = vsub.f32 %v10314_v3, %v10329_v6  ;;  %v10343_v35 = vpop.f32.mrb[53].mxu1  ;;  %v10345_v42 = vpop.f32.mrb[54].mxu0  ;;  %v12956_v40 = vld [vmem:[#allocation47_spill] sm:$0xff] }
 0x360   :  { %12949 = vst [vmem:[#allocation88_spill] sm:$0xff] %v10321_v10  ;;  %12951 = vst [vmem:[#allocation127_spill] sm:$0xff] %v10333_v4  ;;  %v12955_v10 = vld [vmem:[#allocation77_spill] sm:$0xff]  ;;  %v10351_v44 = vadd.f32 %v3076_v47, %v12956_v40  ;;  %v10355_v59 = vsub.f32 %v10327_v60, %v10343_v35  ;;  %v10357_v8 = vpop.f32.mrb[55].mxu0  ;;  %v10359_v63 = vpop.f32.mrb[54].mxu1  ;;  %v12959_v27 = vld [vmem:[#allocation56_spill] sm:$0xff] }
 0x361   :  { %12953 = vst [vmem:[#allocation84_spill] sm:$0xff] %v10336_v33  ;;  %12954 = vst [vmem:[#allocation128_spill] sm:$0xff] %v10341_v31  ;;  %v10348_v24 = vadd.f32 %v2324_v1, %v12955_v10  ;;  %v2326_v16 = vmul.f32 2.0876756e-09, %v10325_v11  ;;  %v10363_v33 = vadd.f32 %v2327_v5, %v10178_v7  ;;  %v10366_v4 = vadd.f32 %v3172_v34, %v12959_v27  ;;  %v10374_v40 = vpop.f32.mrb[55].mxu1  ;;  %v10376_v1 = vpop.f32.mrb[56].mxu0 }
 0x362   :  { %12957 = vst [vmem:[#allocation77_spill] sm:$0xff] %v10351_v44  ;;  %12958 = vst [vmem:[#allocation47_spill] sm:$0xff] %v10355_v59  ;;  %v10372_v47 = vsub.f32 %v10345_v42, %v10359_v63  ;;  %v2329_v44 = vmul.f32 2.0876756e-09, %v10341_v31  ;;  %v10380_v11 = vadd.f32 %v3171_v18, %v10024_v52  ;;  %v10384_v5 = vsub.f32 %v10357_v8, %v10374_v40  ;;  %v10389_v34 = vpop.f32.mrb[57].mxu0  ;;  %v10391_v27 = vpop.f32.mrb[56].mxu1 }
 0x363   :  { %12960 = vst [vmem:[#allocation56_spill] sm:$0xff] %v10366_v4  ;;  %v6546_v10 = vpack.c.bf16 %v10318_v14, %v10348_v24  ;;  %v10387_v7 = vadd.f32 %v2326_v16, %v10172_v49  ;;  %v2328_v4 = vmul.f32 2.0876756e-09, %v10355_v59  ;;  %12965 = vst [vmem:[#allocation124_spill] sm:$0xff] %v10395_v62  ;;  %v10399_v52 = vsub.f32 %v10376_v1, %v10391_v27  ;;  %v10401_v18 = vpop.f32.mrb[57].mxu1  ;;  %v12967_v31 = vld [vmem:[#allocation48_spill] sm:$0xff] }
 0x364   :  { %12961 = vst [vmem:[#allocation129_spill] sm:$0xff] %v10372_v47  ;;  %12962 = vst [vmem:[#allocation130_spill] sm:$0xff] %v10380_v11  ;;  %v10403_v11 = vpop.f32.mrb[58].mxu0  ;;  %v10406_v49 = vadd.f32 %v2329_v44, %v10181_v23  ;;  %v2331_v16 = vmul.f32 2.0876756e-09, %v10372_v47  ;;  %v10410_v29 = vadd.f32 %v3077_v26, %v12967_v31  ;;  %v10416_v22 = vsub.f32 %v10389_v34, %v10401_v18  ;;  %v10423_v23 = vpop.f32.mrb[58].mxu1 }
 0x365   :  { %12963 = vst [vmem:[#allocation131_spill] sm:$0xff] %v10384_v5  ;;  %6547 = vmatprep.subr.bf16.mxu1 %v6546_v10  ;;  %12966 = vst [vmem:[#allocation132_spill] sm:$0xff] %v10399_v52  ;;  %v6550_v50 = vpack.c.bf16 %v10363_v33, %v10387_v7  ;;  %v10419_v62 = vadd.f32 %v2328_v4, %v10187_v28  ;;  %v10421_v59 = vpop.f32.mrb[59].mxu0  ;;  %v2330_v44 = vmul.f32 2.0876756e-09, %v10384_v5  ;;  %v10430_v31 = vpop.f32.mrb[59].mxu1 }
 0x366   :  { %12968 = vst [vmem:[#allocation48_spill] sm:$0xff] %v10410_v29  ;;  %6549 = vmatpush3.bf16.msra.mxu1 %v6546_v10  ;;  %12969 = vst [vmem:[#allocation133_spill] sm:$0xff] %v10416_v22  ;;  %v10428_v26 = vsub.f32 %v10403_v11, %v10423_v23  ;;  %v10432_v10 = vpop.f32.mrb[60].mxu0  ;;  %v10435_v29 = vadd.f32 %v2331_v16, %v10194_v43  ;;  %v2333_v28 = vmul.f32 2.0876756e-09, %v10399_v52  ;;  %v10452_v43 = vpop.f32.mrb[60].mxu1 }
 0x367   :  { %12970 = vst [vmem:[#allocation134_spill] sm:$0xff] %v10423_v23  ;;  %12972 = vst [vmem:[#allocation136_spill] sm:$0xff] %v10430_v31  ;;  %v10439_v4 = vadd.f32 %v3174_v56, %v10033_v32  ;;  %6551 = vmatprep.subr.bf16.mxu1 %v6550_v50  ;;  %v6554_v47 = vpack.c.bf16 %v10406_v49, %v10419_v62  ;;  %v10445_v5 = vsub.f32 %v10421_v59, %v10430_v31  ;;  %v10450_v25 = vpop.f32.mrb[61].mxu0  ;;  %v10459_v56 = vpop.f32.mrb[61].mxu1 }
 0x368   :  { %12971 = vst [vmem:[#allocation135_spill] sm:$0xff] %v10428_v26  ;;  %12973 = vst [vmem:[#allocation137_spill] sm:$0xff] %v10432_v10  ;;  %v10448_v23 = vadd.f32 %v2330_v44, %v10191_v0  ;;  %v2332_v16 = vmul.f32 2.0876756e-09, %v10416_v22  ;;  %v10457_v32 = vsub.f32 %v10432_v10, %v10452_v43  ;;  %v10464_v52 = vadd.f32 %v2333_v28, %v10222_v53  ;;  %v10481_v53 = vpop.f32.mrb[62].mxu1 }
 0x369   :  { %12974 = vst [vmem:[#allocation138_spill] sm:$0xff] %v10439_v4  ;;  %12975 = vst [vmem:[#allocation139_spill] sm:$0xff] %v10445_v5  ;;  %v10461_v4 = vpop.f32.mrb[62].mxu0  ;;  %v2335_v0 = vmul.f32 2.0876756e-09, %v10428_v26  ;;  %v10468_v44 = vadd.f32 %v3173_v46, %v10077_v58  ;;  %v10488_v46 = vpop.f32.mrb[63].mxu1 }
 0x36a   :  { %12976 = vst [vmem:[#allocation140_spill] sm:$0xff] %v10450_v25  ;;  %12977 = vst [vmem:[#allocation141_spill] sm:$0xff] %v10452_v43  ;;  %6553 = vmatpush3.bf16.msra.mxu1 %v6550_v50  ;;  %v6558_v22 = vpack.c.bf16 %v10435_v29, %v10448_v23  ;;  %v10474_v43 = vsub.f32 %v10450_v25, %v10459_v56  ;;  %v10477_v10 = vadd.f32 %v2332_v16, %v10219_v55  ;;  %v10479_v31 = vpop.f32.mrb[63].mxu0  ;;  %v12986_v26 = vld [vmem:[#allocation122_spill] sm:$0xff] }
 0x36b   :  { %12978 = vst [vmem:[#allocation142_spill] sm:$0xff] %v10457_v32  ;;  %12979 = vst [vmem:[#allocation143_spill] sm:$0xff] %v10459_v56  ;;  %v2334_v28 = vmul.f32 2.0876756e-09, %v10445_v5  ;;  %6555 = vmatprep.subr.bf16.mxu1 %v6554_v47  ;;  %v10486_v58 = vsub.f32 %v10461_v4, %v10481_v53  ;;  %v5732_v50 = vpop.f32.mrb[64].mxu0  ;;  %v2320_v55 = vadd.f32 %v10255_v20, %v12986_v26 }
 0x36c   :  { %12980 = vst [vmem:[#allocation144_spill] sm:$0xff] %v10461_v4  ;;  %12981 = vst [vmem:[#allocation145_spill] sm:$0xff] %v10468_v44  ;;  %v10491_v44 = vadd.f32 %v2335_v0, %v10143_v9  ;;  %v2337_v16 = vmul.f32 2.0876756e-09, %v10457_v32  ;;  %v6562_v56 = vpack.c.bf16 %v10464_v52, %v10477_v10  ;;  %v10500_v5 = vsub.f32 %v10479_v31, %v10488_v46  ;;  %v2085_v25 = vpop.f32.mrb[65].mxu0 }
 0x36d   :  { %12982 = vst [vmem:[#allocation146_spill] sm:$0xff] %v10474_v43  ;;  %12983 = vst [vmem:[#allocation147_spill] sm:$0xff] %v10481_v53  ;;  %v2181_v53 = vsub.f32 %v5732_v50, %v10243_v38  ;;  %v10504_v4 = vadd.f32 %v2334_v28, %v10233_v41  ;;  %v2180_v9 = vsub.f32 %v2085_v25, %v10258_v51  ;;  %v2336_v0 = vmul.f32 2.0876756e-09, %v10474_v43  ;;  %v5735_v50 = vpop.f32.mrb[66].mxu0  ;;  %v12989_v28 = vld [vmem:[#allocation58_spill] sm:$0xff] }
 0x36e   :  { %12984 = vst [vmem:[#allocation148_spill] sm:$0xff] %v10486_v58  ;;  %12985 = vst [vmem:[#allocation149_spill] sm:$0xff] %v10488_v46  ;;  %v10509_v20 = vadd.f32 %v2337_v16, %v10197_v36  ;;  %v2339_v26 = vmul.f32 2.0876756e-09, %v10486_v58  ;;  %6557 = vmatpush3.bf16.msra.mxu1 %v6554_v47  ;;  %v2338_v41 = vmul.f32 2.0876756e-09, %v10500_v5  ;;  %v2183_v36 = vsub.f32 %v5735_v50, %v10280_v30 }
 0x36f   :  { %12987 = vst [vmem:[#allocation122_spill] sm:$0xff] %v10500_v5  ;;  %v10513_v32 = vsub.f32 %v2181_v53, %v10260_v19  ;;  %v6566_v38 = vpack.c.bf16 %v10491_v44, %v10504_v4  ;;  %v3815_v46 = vmul.f32 0.5, %v12989_v28  ;;  %6559 = vmatprep.subr.bf16.mxu1 %v6558_v22  ;;  %v10520_v25 = vsub.f32 %v2180_v9, %v10278_v13  ;;  %v2095_v47 = vpop.f32.mrb[67].mxu0  ;;  %v12991_v28 = vld [vmem:[#allocation53_spill] sm:$0xff]  ;;  %v12996_v50 = vld [vmem:[#allocation22_spill] sm:$0xff] }
 0x370   :  { %v10523_v51 = vadd.f32 %v2336_v0, %v2320_v55  ;;  %v10526_v19 = vadd.f32 %v2339_v26, %v10239_v48  ;;  %v2182_v53 = vsub.f32 %v2095_v47, %v10292_v21  ;;  %v10530_v16 = vadd.f32 %v2338_v41, %v10246_v15  ;;  %v12993_v55 = vld [vmem:[#allocation59_spill] sm:$0xff]  ;;  %v5738_v9 = vpop.f32.mrb[68].mxu0 }
 0x371   :  { %12988 = vst [vmem:[#allocation150_spill] sm:$0xff] %v10513_v32  ;;  %12990 = vst [vmem:[#allocation58_spill] sm:$0xff] %v10520_v25  ;;  %v2437_v58 = vmul.f32 2.0876756e-09, %v10513_v32  ;;  %v3808_v5 = vmul.f32 0.5, %v12991_v28  ;;  %v10535_v13 = vsub.f32 %v2183_v36, %v10294_v37  ;;  %5842 = vmatprep.mubr.f32.mxu0 %v10520_v25  ;;  %v3814_v21 = vmul.f32 0.5, %v12993_v55 }
 0x372   :  { %v10539_v30 = vpack.c.bf16 %v10509_v20, %v10523_v51  ;;  %v2436_v48 = vmul.f32 2.0876756e-09, %v10520_v25  ;;  %6561 = vmatpush3.bf16.msra.mxu1 %v6558_v22  ;;  %v10545_v15 = vsub.f32 %v2182_v53, %v10312_v2  ;;  %v10549_v0 = vpack.c.bf16 %v10526_v19, %v10530_v16  ;;  %v12995_v37 = vld [vmem:[#allocation80_spill] sm:$0xff]  ;;  %v2105_v47 = vpop.f32.mrb[69].mxu0  ;;  %v12997_v28 = vld [vmem:[#allocation87_spill] sm:$0xff] }
 0x373   :  { %12992 = vst [vmem:[#allocation53_spill] sm:$0xff] %v10535_v13  ;;  %v2453_v26 = vadd.f32 %v2437_v58, %v12995_v37  ;;  %v10554_v41 = vadd.f32 %v10120_v45, %v12996_v50  ;;  %6563 = vmatprep.subr.bf16.mxu1 %v6562_v56  ;;  %v2185_v36 = vsub.f32 %v5738_v9, %v10314_v3  ;;  %v2439_v2 = vmul.f32 2.0876756e-09, %v10535_v13  ;;  %v12998_v53 = vld [vmem:[#allocation60_spill] sm:$0xff]  ;;  %v13000_v9 = vld [vmem:[#allocation57_spill] sm:$0xff] }
 0x374   :  { %12994 = vst [vmem:[#allocation59_spill] sm:$0xff] %v10545_v15  ;;  %v2452_v22 = vadd.f32 %v2436_v48, %v12997_v28  ;;  %v3817_v55 = vmul.f32 0.5, %v12998_v53  ;;  %v2184_v25 = vsub.f32 %v2105_v47, %v10327_v60  ;;  %v2438_v58 = vmul.f32 2.0876756e-09, %v10545_v15  ;;  %v5741_v53 = vpop.f32.mrb[70].mxu0  ;;  %v13002_v60 = vld [vmem:[#allocation93_spill] sm:$0xff] }
 0x375   :  { %v2775_v43 = vadd.f32 %v2453_v26, %v10318_v14  ;;  %v3816_v37 = vmul.f32 0.5, %v12860_v17  ;;  %v10565_v45 = vsub.f32 %v2185_v36, %v10329_v6  ;;  %v2455_v48 = vadd.f32 %v2439_v2, %v13000_v9  ;;  %v13003_v14 = vld [vmem:[#allocation37_spill] sm:$0xff]  ;;  %v13004_v15 = vld [vmem:[#allocation20_spill] sm:$0xff]  ;;  %v13007_v2 = vld [vmem:[#allocation43_spill] sm:$0xff] }
 0x376   :  { %v6578_v50 = vpack.c.bf16 %v2453_v26, %v2452_v22  ;;  %v2774_v3 = vadd.f32 %v2452_v22, %v10348_v24  ;;  %6565 = vmatpush3.bf16.msra.mxu1 %v6562_v56  ;;  %v10570_v28 = vsub.f32 %v2184_v25, %v10343_v35  ;;  %v2454_v47 = vadd.f32 %v2438_v58, %v13002_v60  ;;  %v2115_v24 = vpop.f32.mrb[71].mxu0  ;;  %v13006_v22 = vld [vmem:[#allocation35_spill] sm:$0xff] }
 0x377   :  { %12999 = vst [vmem:[#allocation80_spill] sm:$0xff] %v10565_v45  ;;  %v10574_v13 = vadd.f32 %v3815_v46, %v13003_v14  ;;  %v10577_v17 = vadd.f32 %v3808_v5, %v13004_v15  ;;  %6567 = vmatprep.subr.bf16.mxu1 %v6566_v38  ;;  %v2187_v6 = vsub.f32 %v5741_v53, %v10345_v42  ;;  %v2441_v35 = vmul.f32 2.0876756e-09, %v10565_v45  ;;  %v5744_v58 = vpop.f32.mrb[72].mxu0  ;;  %v13010_v53 = vld [vmem:[#allocation82_spill] sm:$0xff]  ;;  %v13013_v14 = vld [vmem:[#allocation76_spill] sm:$0xff] }
 0x378   :  { %13001 = vst [vmem:[#allocation22_spill] sm:$0xff] %v10570_v28  ;;  %6579 = vmatprep.subr.bf16.mxu0 %v6578_v50  ;;  %v10580_v26 = vpack.c.bf16 %v2775_v43, %v2774_v3  ;;  %v2777_v56 = vadd.f32 %v2455_v48, %v10363_v33  ;;  %v2186_v25 = vsub.f32 %v2115_v24, %v10357_v8  ;;  %v2440_v5 = vmul.f32 2.0876756e-09, %v10570_v28  ;;  %v13009_v3 = vld [vmem:[#allocation41_spill] sm:$0xff] }
 0x379   :  { %6581 = vmatpush3.bf16.msra.mxu0 %v6578_v50  ;;  %v6582_v36 = vpack.c.bf16 %v2455_v48, %v2454_v47  ;;  %v2776_v46 = vadd.f32 %v2454_v47, %v10387_v7  ;;  %v10588_v15 = vsub.f32 %v2187_v6, %v10359_v63  ;;  %v2457_v42 = vadd.f32 %v2441_v35, %v10049_v39  ;;  %v2125_v63 = vpop.f32.mrb[73].mxu0  ;;  %v13015_v35 = vld [vmem:[#allocation89_spill] sm:$0xff] }
 0x37a   :  { %v10592_v43 = vadd.f32 %v3814_v21, %v13006_v22  ;;  %v10595_v33 = vadd.f32 %v3817_v55, %v13007_v2  ;;  %6569 = vmatpush3.bf16.msra.mxu1 %v6566_v38  ;;  %v10598_v8 = vsub.f32 %v2186_v25, %v10374_v40  ;;  %v2456_v50 = vadd.f32 %v2440_v5, %v10060_v54  ;;  %v13016_v22 = vld [vmem:[#allocation36_spill] sm:$0xff] }
 0x37b   :  { %13005 = vst [vmem:[#allocation87_spill] sm:$0xff] %v10588_v15  ;;  %6583 = vmatprep.subr.bf16.mxu0 %v6582_v36  ;;  %v10600_v7 = vpack.c.bf16 %v2777_v56, %v2776_v46  ;;  %6571 = vmatprep.subr.bf16.mxu1 %v10539_v30  ;;  %v2189_v39 = vsub.f32 %v5744_v58, %v10376_v1  ;;  %v2443_v55 = vmul.f32 2.0876756e-09, %v10588_v15  ;;  %v10614_v60 = vmul.f32 0.16666667, %v13010_v53  ;;  %v13011_v1 = vld [vmem:[#allocation86_spill] sm:$0xff] }
 0x37c   :  { %13008 = vst [vmem:[#allocation60_spill] sm:$0xff] %v10598_v8  ;;  %v2779_v21 = vadd.f32 %v2457_v42, %v10406_v49  ;;  %v10608_v38 = vadd.f32 %v3816_v37, %v13009_v3  ;;  %v2188_v40 = vsub.f32 %v2125_v63, %v10389_v34  ;;  %v6586_v9 = vpack.c.bf16 %v2457_v42, %v2456_v50  ;;  %v5747_v34 = vpop.f32.mrb[74].mxu0 }
 0x37d   :  { %6585 = vmatpush3.bf16.msra.mxu0 %v6582_v36  ;;  %v2778_v48 = vadd.f32 %v2456_v50, %v10419_v62  ;;  %v2442_v54 = vmul.f32 2.0876756e-09, %v10598_v8  ;;  %v10617_v47 = vmul.f32 0.16666667, %v13011_v1  ;;  %v10620_v49 = vsub.f32 %v2189_v39, %v10391_v27  ;;  %v2135_v27 = vpop.f32.mrb[75].mxu0  ;;  %v13020_v39 = vld [vmem:[#allocation92_spill] sm:$0xff] }
 0x37e   :  { %v2459_v37 = vadd.f32 %v2443_v55, %v10104_v57  ;;  %v10624_v6 = vmul.f32 0.16666667, %v13013_v14  ;;  %6573 = vmatpush3.bf16.msra.mxu1 %v10539_v30  ;;  %v10628_v62 = vsub.f32 %v2188_v40, %v10401_v18  ;;  %6587 = vmatprep.subr.bf16.mxu0 %v6586_v9  ;;  %v10634_v25 = vmul.f32 0.16666667, %v13015_v35  ;;  %v13023_v55 = vld [vmem:[#allocation30_spill] sm:$0xff]  ;;  %v13024_v40 = vld [vmem:[#allocation40_spill] sm:$0xff] }
 0x37f   :  { %13012 = vst [vmem:[#allocation57_spill] sm:$0xff] %v10620_v49  ;;  %v10630_v24 = vpack.c.bf16 %v2779_v21, %v2778_v48  ;;  %v2458_v56 = vadd.f32 %v2442_v54, %v10117_v61  ;;  %6575 = vmatprep.subr.bf16.mxu1 %v10549_v0  ;;  %v2191_v57 = vsub.f32 %v5747_v34, %v10403_v11  ;;  %v2445_v30 = vmul.f32 2.0876756e-09, %v10620_v49  ;;  %v13017_v11 = vld [vmem:[#allocation134_spill] sm:$0xff]  ;;  %v5750_v21 = vpop.f32.mrb[76].mxu0  ;;  %v13025_v48 = vld [vmem:[#allocation137_spill] sm:$0xff] }
 0x380   :  { %13014 = vst [vmem:[#allocation93_spill] sm:$0xff] %v10628_v62  ;;  %v2781_v36 = vadd.f32 %v2459_v37, %v10435_v29  ;;  %v2190_v18 = vsub.f32 %v2135_v27, %v10421_v59  ;;  %v2444_v61 = vmul.f32 2.0876756e-09, %v10628_v62  ;;  %v10644_v42 = vmul.f32 0.16666667, %v9999_v12  ;;  %v13019_v29 = vld [vmem:[#allocation17_spill] sm:$0xff] }
 0x381   :  { %6589 = vmatpush3.bf16.msra.mxu0 %v6586_v9  ;;  %v6590_v46 = vpack.c.bf16 %v2459_v37, %v2458_v56  ;;  %v2780_v5 = vadd.f32 %v2458_v56, %v10448_v23  ;;  %v10647_v2 = vmul.f32 0.16666667, %v13016_v22  ;;  %v10650_v58 = vsub.f32 %v2191_v57, %v13017_v11  ;;  %v13021_v59 = vld [vmem:[#allocation136_spill] sm:$0xff]  ;;  %v2145_v53 = vpop.f32.mrb[77].mxu0  ;;  %v13033_v11 = vld [vmem:[#allocation10_spill] sm:$0xff] }
 0x382   :  { %v2461_v50 = vadd.f32 %v2445_v30, %v13019_v29  ;;  %v10654_v63 = vmul.f32 0.16666667, %v13020_v39  ;;  %6577 = vmatpush3.bf16.msra.mxu1 %v10549_v0  ;;  %v10658_v23 = vsub.f32 %v2190_v18, %v13021_v59  ;;  %v2460_v3 = vadd.f32 %v2444_v61, %v13023_v55  ;;  %v13026_v37 = vld [vmem:[#allocation140_spill] sm:$0xff]  ;;  %v13029_v18 = vld [vmem:[#allocation118_spill] sm:$0xff]  ;;  %v5753_v39 = vpop.f32.mrb[78].mxu0 }
 0x383   :  { %13018 = vst [vmem:[#allocation37_spill] sm:$0xff] %v10650_v58  ;;  %6591 = vmatprep.subr.bf16.mxu0 %v6590_v46  ;;  %v10660_v12 = vpack.c.bf16 %v2781_v36, %v2780_v5  ;;  %v10664_v9 = vmul.f32 0.16666667, %v13024_v40  ;;  %6611 = vmatprep.subr.bf16.mxu1 %v10580_v26  ;;  %v2193_v54 = vsub.f32 %v5750_v21, %v13025_v48  ;;  %v2447_v0 = vmul.f32 2.0876756e-09, %v10650_v58  ;;  %v13027_v57 = vld [vmem:[#allocation104_spill] sm:$0xff] }
 0x384   :  { %13022 = vst [vmem:[#allocation20_spill] sm:$0xff] %v10658_v23  ;;  %v2783_v1 = vadd.f32 %v2461_v50, %v10464_v52  ;;  %v2192_v14 = vsub.f32 %v2145_v53, %v13026_v37  ;;  %v6594_v34 = vpack.c.bf16 %v2461_v50, %v2460_v3  ;;  %v2782_v56 = vadd.f32 %v2460_v3, %v10477_v10  ;;  %v13028_v36 = vld [vmem:[#allocation6_spill] sm:$0xff]  ;;  %v13030_v5 = vld [vmem:[#allocation141_spill] sm:$0xff]  ;;  %v13032_v52 = vld [vmem:[#allocation107_spill] sm:$0xff]  ;;  %v2155_v53 = vpop.f32.mrb[79].mxu0 }
 0x385   :  { %6593 = vmatpush3.bf16.msra.mxu0 %v6590_v46  ;;  %v2446_v35 = vmul.f32 2.0876756e-09, %v10658_v23  ;;  %v10674_v27 = vmul.f32 0.16666667, %v13027_v57  ;;  %v3765_v30 = vmul.f32 0.16666667, %v13028_v36  ;;  %5787 = vmatmul.mubr.f32.vlgmr.msra.gmra.mrb[64].mxu1 %v13029_v18  ;;  %v10679_v61 = vsub.f32 %v2193_v54, %v13030_v5 }
 0x386   :  { %v2463_v22 = vadd.f32 %v2447_v0, %v13032_v52  ;;  %v10683_v29 = vmul.f32 0.16666667, %v13033_v11  ;;  %v13034_v46 = vld [vmem:[#allocation126_spill] sm:$0xff]  ;;  %6613 = vmatpush3.bf16.msra.mxu1 %v10580_v26  ;;  %v13035_v10 = vld [vmem:[#allocation143_spill] sm:$0xff]  ;;  %v10690_v59 = vpack.c.bf16 %v2783_v1, %v2782_v56  ;;  %v13037_v21 = vld [vmem:[#allocation108_spill] sm:$0xff]  ;;  %6595 = vmatprep.subr.bf16.mxu0 %v6594_v34  ;;  %v2194_v37 = vsub.f32 %v2155_v53, %v10479_v31 }
 0x387   :  { %13031 = vst [vmem:[#allocation35_spill] sm:$0xff] %v10679_v61  ;;  %5789 = vmatprep.mubr.f32.mxu1 %v13034_v46  ;;  %v10688_v50 = vsub.f32 %v2192_v14, %v13035_v10  ;;  %v2462_v55 = vadd.f32 %v2446_v35, %v13037_v21  ;;  %v13038_v3 = vld [vmem:[#allocation15_spill] sm:$0xff]  ;;  %6615 = vmatprep.subr.bf16.mxu1 %v10600_v7  ;;  %v13039_v48 = vld [vmem:[#allocation144_spill] sm:$0xff]  ;;  %v2449_v26 = vmul.f32 2.0876756e-09, %v10679_v61  ;;  %v13040_v35 = vld [vmem:[#allocation109_spill] sm:$0xff] }
 0x388   :  { %v3767_v40 = vmul.f32 0.16666667, %v13038_v3  ;;  %v2195_v54 = vsub.f32 %v5753_v39, %v13039_v48  ;;  %v2785_v0 = vadd.f32 %v2463_v22, %v10491_v44  ;;  %v3769_v57 = vmul.f32 0.16666667, %v13040_v35  ;;  %v13041_v36 = vld [vmem:[#allocation115_spill] sm:$0xff]  ;;  %v13044_v11 = vld [vmem:[#allocation117_spill] sm:$0xff] }
 0x389   :  { %13036 = vst [vmem:[#allocation43_spill] sm:$0xff] %v10688_v50  ;;  %6597 = vmatpush3.bf16.msra.mxu0 %v6594_v34  ;;  %v6598_v14 = vpack.c.bf16 %v2463_v22, %v2462_v55  ;;  %v2784_v1 = vadd.f32 %v2462_v55, %v10504_v4  ;;  %v2448_v56 = vmul.f32 2.0876756e-09, %v10688_v50  ;;  %5790 = vmatmul.mubr.f32.gmra.mrb[66].mxu1 %v13041_v36  ;;  %v13042_v5 = vld [vmem:[#allocation147_spill] sm:$0xff]  ;;  %v13045_v44 = vld [vmem:[#allocation116_spill] sm:$0xff]  ;;  %v13049_v4 = vld [vmem:[#allocation149_spill] sm:$0xff] }
 0x38a   :  { %v10704_v52 = vsub.f32 %v2195_v54, %v13042_v5  ;;  %v2465_v10 = vadd.f32 %v2449_v26, %v13044_v11  ;;  %v10708_v39 = vadd.f32 %v3765_v30, %v13045_v44  ;;  %v13047_v21 = vld [vmem:[#allocation27_spill] sm:$0xff]  ;;  %6617 = vmatpush3.bf16.msra.mxu1 %v10600_v7  ;;  %v10714_v22 = vsub.f32 %v2194_v37, %v13049_v4  ;;  %v13051_v3 = vld [vmem:[#allocation112_spill] sm:$0xff]  ;;  %v13052_v53 = vld [vmem:[#allocation105_spill] sm:$0xff] }
 0x38b   :  { %v3845_v31 = vmul.f32 0.16666667, %v13047_v21  ;;  %v13048_v34 = vld [vmem:[#allocation47_spill] sm:$0xff]  ;;  %v6630_v55 = vpack.c.bf16 %v2785_v0, %v2784_v1  ;;  %v2464_v48 = vadd.f32 %v2448_v56, %v13051_v3  ;;  %v3844_v54 = vmul.f32 0.16666667, %v13052_v53  ;;  %6619 = vmatprep.subr.bf16.mxu1 %v10630_v24  ;;  %6599 = vmatprep.subr.bf16.mxu0 %v6598_v14  ;;  %v13054_v11 = vld [vmem:[#allocation106_spill] sm:$0xff] }
 0x38c   :  { %13043 = vst [vmem:[#allocation41_spill] sm:$0xff] %v10704_v52  ;;  %13046 = vst [vmem:[#allocation82_spill] sm:$0xff] %v10708_v39  ;;  %5792 = vmatprep.mubr.f32.mxu1 %v13048_v34  ;;  %v13053_v35 = vld [vmem:[#allocation111_spill] sm:$0xff]  ;;  %v2787_v30 = vadd.f32 %v2465_v10, %v10509_v20  ;;  %v2451_v26 = vmul.f32 2.0876756e-09, %v10704_v52  ;;  %v13055_v1 = vld [vmem:[#allocation110_spill] sm:$0xff] }
 0x38d   :  { %13050 = vst [vmem:[#allocation86_spill] sm:$0xff] %v10714_v22  ;;  %v3768_v5 = vmul.f32 0.16666667, %v13053_v35  ;;  %v3847_v44 = vmul.f32 0.16666667, %v13054_v11  ;;  %6601 = vmatpush3.bf16.msra.mxu0 %v6598_v14  ;;  %v6602_v7 = vpack.c.bf16 %v2465_v10, %v2464_v48  ;;  %v2786_v37 = vadd.f32 %v2464_v48, %v10523_v51  ;;  %v13056_v21 = vld [vmem:[#allocation128_spill] sm:$0xff] }
 0x38e   :  { %v2450_v0 = vmul.f32 2.0876756e-09, %v10714_v22  ;;  %v3846_v56 = vmul.f32 0.16666667, %v13055_v1  ;;  %5793 = vmatmul.mubr.f32.gmra.mrb[68].mxu1 %v13056_v21  ;;  %v13057_v4 = vld [vmem:[#allocation79_spill] sm:$0xff]  ;;  %v13058_v53 = vld [vmem:[#allocation121_spill] sm:$0xff] }
 0x38f   :  { %v2467_v3 = vadd.f32 %v2451_v26, %v13057_v4  ;;  %v10729_v35 = vadd.f32 %v3767_v40, %v13058_v53  ;;  %v13060_v20 = vld [vmem:[#allocation49_spill] sm:$0xff]  ;;  %v13062_v52 = vld [vmem:[#allocation120_spill] sm:$0xff]  ;;  %v13063_v14 = vld [vmem:[#allocation131_spill] sm:$0xff]  ;;  %6621 = vmatpush3.bf16.msra.mxu1 %v10630_v24  ;;  %v6634_v51 = vpack.c.bf16 %v2787_v30, %v2786_v37  ;;  %6603 = vmatprep.subr.bf16.mxu0 %v6602_v7 }
 0x390   :  { %v10732_v39 = vadd.f32 %v3769_v57, %v13060_v20  ;;  %v3849_v11 = vmul.f32 0.16666667, %v13062_v52  ;;  %5795 = vmatprep.mubr.f32.mxu1 %v13063_v14  ;;  %v13064_v10 = vld [vmem:[#allocation127_spill] sm:$0xff]  ;;  %v13065_v1 = vld [vmem:[#allocation96_spill] sm:$0xff]  ;;  %6623 = vmatprep.subr.bf16.mxu1 %v10660_v12  ;;  %v13068_v57 = vld [vmem:[#allocation73_spill] sm:$0xff] }
 0x391   :  { %13059 = vst [vmem:[#allocation76_spill] sm:$0xff] %v10729_v35  ;;  %v2466_v48 = vadd.f32 %v2450_v0, %v13064_v10  ;;  %v10740_v22 = vadd.f32 %v10614_v60, %v13065_v1  ;;  %v13067_v26 = vld [vmem:[#allocation123_spill] sm:$0xff]  ;;  %v2789_v40 = vadd.f32 %v2467_v3, %v10526_v19  ;;  %v10746_v52 = vadd.f32 %v3768_v5, %v13068_v57  ;;  %v13072_v60 = vld [vmem:[#allocation61_spill] sm:$0xff]  ;;  %v13077_v5 = vld [vmem:[#allocation98_spill] sm:$0xff] }
 0x392   :  { %13061 = vst [vmem:[#allocation89_spill] sm:$0xff] %v10732_v39  ;;  %v3848_v4 = vmul.f32 0.16666667, %v13067_v26  ;;  %v13070_v53 = vld [vmem:[#allocation99_spill] sm:$0xff]  ;;  %6605 = vmatpush3.bf16.msra.mxu0 %v6602_v7  ;;  %v10755_v0 = vadd.f32 %v10624_v6, %v13072_v60  ;;  %v13074_v20 = vld [vmem:[#allocation101_spill] sm:$0xff]  ;;  %v10764_v1 = vadd.f32 %v10634_v25, %v13077_v5  ;;  %v13083_v6 = vld [vmem:[#allocation102_spill] sm:$0xff] }
 0x393   :  { %13066 = vst [vmem:[#allocation36_spill] sm:$0xff] %v10740_v22  ;;  %13069 = vst [vmem:[#allocation134_spill] sm:$0xff] %v10746_v52  ;;  %v10750_v24 = vadd.f32 %v10617_v47, %v13070_v53  ;;  %v6606_v30 = vpack.c.bf16 %v2467_v3, %v2466_v48  ;;  %v2788_v37 = vadd.f32 %v2466_v48, %v10530_v16  ;;  %v13076_v19 = vld [vmem:[#allocation129_spill] sm:$0xff]  ;;  %v13079_v47 = vld [vmem:[#allocation42_spill] sm:$0xff]  ;;  %6625 = vmatpush3.bf16.msra.mxu1 %v10660_v12 }
 0x394   :  { %13073 = vst [vmem:[#allocation92_spill] sm:$0xff] %v10755_v0  ;;  %v10759_v10 = vadd.f32 %v10674_v27, %v13074_v20  ;;  %5796 = vmatmul.mubr.f32.gmra.mrb[70].mxu1 %v13076_v19  ;;  %13078 = vst [vmem:[#allocation30_spill] sm:$0xff] %v10764_v1  ;;  %v10768_v7 = vadd.f32 %v10683_v29, %v13079_v47  ;;  %v13081_v3 = vld [vmem:[#allocation7_spill] sm:$0xff]  ;;  %v10775_v48 = vadd.f32 %v3845_v31, %v13083_v6  ;;  %v13085_v26 = vld [vmem:[#allocation133_spill] sm:$0xff] }
 0x395   :  { %13071 = vst [vmem:[#allocation17_spill] sm:$0xff] %v10750_v24  ;;  %v10772_v16 = vadd.f32 %v10644_v42, %v13081_v3  ;;  %5798 = vmatprep.mubr.f32.mxu1 %v13085_v26  ;;  %v6638_v27 = vpack.c.bf16 %v2789_v40, %v2788_v37  ;;  %v13086_v57 = vld [vmem:[#allocation103_spill] sm:$0xff]  ;;  %v13088_v53 = vld [vmem:[#allocation25_spill] sm:$0xff]  ;;  %6627 = vmatprep.subr.bf16.mxu1 %v10690_v59  ;;  %v13096_v40 = vld [vmem:[#allocation132_spill] sm:$0xff] }
 0x396   :  { %13075 = vst [vmem:[#allocation136_spill] sm:$0xff] %v10759_v10  ;;  %13080 = vst [vmem:[#allocation40_spill] sm:$0xff] %v10768_v7  ;;  %v10781_v25 = vadd.f32 %v10647_v2, %v13086_v57  ;;  %v10784_v60 = vadd.f32 %v3844_v54, %v13088_v53  ;;  %6607 = vmatprep.subr.bf16.mxu0 %v6606_v30  ;;  %v10789_v42 = vadd.f32 %v10654_v63, %v10554_v41  ;;  %v13097_v41 = vld [vmem:[#allocation139_spill] sm:$0xff]  ;;  %v13103_v63 = vld [vmem:[#allocation122_spill] sm:$0xff] }
 0x397   :  { %13082 = vst [vmem:[#allocation137_spill] sm:$0xff] %v10772_v16  ;;  %13084 = vst [vmem:[#allocation140_spill] sm:$0xff] %v10775_v48  ;;  %v10792_v29 = vadd.f32 %v3847_v44, %v10574_v13  ;;  %v10796_v12 = vadd.f32 %v10664_v9, %v10577_v17  ;;  %6609 = vmatpush3.bf16.msra.mxu0 %v6606_v30  ;;  %v10799_v2 = vadd.f32 %v3846_v56, %v10592_v43  ;;  %v13098_v13 = vld [vmem:[#allocation59_spill] sm:$0xff]  ;;  %v13100_v43 = vld [vmem:[#allocation146_spill] sm:$0xff] }
 0x398   :  { %13087 = vst [vmem:[#allocation104_spill] sm:$0xff] %v10781_v25  ;;  %13089 = vst [vmem:[#allocation6_spill] sm:$0xff] %v10784_v60  ;;  %v10802_v31 = vadd.f32 %v3849_v11, %v10595_v33  ;;  %v10805_v54 = vadd.f32 %v3848_v4, %v10608_v38  ;;  %5799 = vmatmul.mubr.f32.gmra.mrb[72].mxu1 %v13096_v40  ;;  %v13099_v17 = vld [vmem:[#allocation135_spill] sm:$0xff]  ;;  %v13101_v33 = vld [vmem:[#allocation53_spill] sm:$0xff]  ;;  %v10828_v56 = vadd.f32 %v10513_v32, %v13029_v18 }
 0x399   :  { %13090 = vst [vmem:[#allocation118_spill] sm:$0xff] %v10789_v42  ;;  %13091 = vst [vmem:[#allocation141_spill] sm:$0xff] %v10792_v29  ;;  %5801 = vmatprep.mubr.f32.mxu1 %v13097_v41  ;;  %6629 = vmatpush3.bf16.msra.mxu1 %v10690_v59  ;;  %v13102_v38 = vld [vmem:[#allocation142_spill] sm:$0xff]  ;;  %v13104_v9 = vld [vmem:[#allocation85_spill] sm:$0xff]  ;;  %v10833_v11 = vadd.f32 %v13098_v13, %v13034_v46  ;;  %v10845_v4 = vadd.f32 %v10570_v28, %v13048_v34 }
 0x39a   :  { %13092 = vst [vmem:[#allocation107_spill] sm:$0xff] %v10796_v12  ;;  %13093 = vst [vmem:[#allocation10_spill] sm:$0xff] %v10799_v2  ;;  %6631 = vmatprep.subr.bf16.mxu1 %v6630_v55  ;;  %5843 = vmatmul.mubr.f32.vlgmr.msra.gmra.mrb[80].mxu0 %v10513_v32  ;;  %v13105_v59 = vld [vmem:[#allocation58_spill] sm:$0xff]  ;;  %v10852_v30 = vadd.f32 %v10565_v45, %v13056_v21  ;;  %v10857_v37 = vadd.f32 %v10598_v8, %v13063_v14  ;;  %v13118_v6 = vld [vmem:[#allocation41_spill] sm:$0xff] }
 0x39b   :  { %13094 = vst [vmem:[#allocation126_spill] sm:$0xff] %v10802_v31  ;;  %13095 = vst [vmem:[#allocation143_spill] sm:$0xff] %v10805_v54  ;;  %5845 = vmatprep.mubr.f32.mxu0 %v13098_v13  ;;  %v10821_v44 = vadd.f32 %v13105_v59, %v13104_v9  ;;  %v10864_v20 = vadd.f32 %v10588_v15, %v13076_v19  ;;  %v10869_v5 = vadd.f32 %v10628_v62, %v13085_v26  ;;  %v13116_v47 = vld [vmem:[#allocation86_spill] sm:$0xff]  ;;  %v13126_v25 = vld [vmem:[#allocation64_spill] sm:$0xff] }
 0x39c   :  { %5802 = vmatmul.mubr.f32.gmra.mrb[74].mxu1 %v13099_v17  ;;  %13108 = vst [vmem:[#allocation15_spill] sm:$0xff] %v10828_v56  ;;  %13109 = vst [vmem:[#allocation144_spill] sm:$0xff] %v10833_v11  ;;  %v10876_v3 = vadd.f32 %v10620_v49, %v13096_v40  ;;  %v10888_v57 = vadd.f32 %v10650_v58, %v13099_v17  ;;  %v10892_v53 = vadd.f32 %v10688_v50, %v13100_v43  ;;  %v13125_v12 = vld [vmem:[#allocation62_spill] sm:$0xff]  ;;  %v13127_v16 = vld [vmem:[#allocation63_spill] sm:$0xff] }
 0x39d   :  { %5804 = vmatprep.mubr.f32.mxu1 %v13100_v43  ;;  %6633 = vmatpush3.bf16.msra.mxu1 %v6630_v55  ;;  %13106 = vst [vmem:[#allocation108_spill] sm:$0xff] %v10821_v44  ;;  %v13107_v55 = vld [vmem:[#allocation148_spill] sm:$0xff]  ;;  %13111 = vst [vmem:[#allocation115_spill] sm:$0xff] %v10845_v4  ;;  %v10898_v54 = vadd.f32 %v10679_v61, %v13102_v38  ;;  %v2984_v42 = vmul.f32 0.041666668, %v13125_v12  ;;  %v13128_v1 = vld [vmem:[#allocation66_spill] sm:$0xff] }
 0x39e   :  { %6635 = vmatprep.subr.bf16.mxu1 %v6634_v51  ;;  %5846 = vmatmul.mubr.f32.gmra.mrb[82].mxu0 %v13101_v33  ;;  %13112 = vst [vmem:[#allocation147_spill] sm:$0xff] %v10852_v30  ;;  %13113 = vst [vmem:[#allocation117_spill] sm:$0xff] %v10857_v37  ;;  %v10908_v31 = vadd.f32 %v13118_v6, %v13107_v55  ;;  %v2986_v52 = vmul.f32 0.041666668, %v13126_v25  ;;  %v2985_v39 = vmul.f32 0.041666668, %v13127_v16 }
 0x39f   :  { %5848 = vmatprep.mubr.f32.mxu0 %v10570_v28  ;;  %13114 = vst [vmem:[#allocation116_spill] sm:$0xff] %v10864_v20  ;;  %13115 = vst [vmem:[#allocation27_spill] sm:$0xff] %v10869_v5  ;;  %v13129_v0 = vld [vmem:[#allocation4_spill] sm:$0xff]  ;;  %v13130_v24 = vld [vmem:[#allocation67_spill] sm:$0xff] }
 0x3a0   :  { %5805 = vmatmul.mubr.f32.gmra.mrb[76].mxu1 %v13102_v38  ;;  %13117 = vst [vmem:[#allocation47_spill] sm:$0xff] %v10876_v3  ;;  %13120 = vst [vmem:[#allocation112_spill] sm:$0xff] %v10888_v57  ;;  %v3000_v35 = vmul.f32 0.008333334, %v13129_v0  ;;  %v2988_v22 = vmul.f32 0.041666668, %v13130_v24 }
 0x3a1   :  { %5807 = vmatprep.mubr.f32.mxu1 %v13103_v63  ;;  %6637 = vmatpush3.bf16.msra.mxu1 %v6634_v51  ;;  %v10840_v51 = vadd.f32 %v13101_v33, %v13041_v36  ;;  %13121 = vst [vmem:[#allocation105_spill] sm:$0xff] %v10892_v53  ;;  %13122 = vst [vmem:[#allocation111_spill] sm:$0xff] %v10898_v54  ;;  %v13134_v12 = vld [vmem:[#allocation38_spill] sm:$0xff]  ;;  %v13152_v38 = vld [vmem:[#allocation75_spill] sm:$0xff] }
 0x3a2   :  { %6639 = vmatprep.subr.bf16.mxu1 %v6638_v27  ;;  %5849 = vmatmul.mubr.f32.gmra.mrb[84].mxu0 %v10565_v45  ;;  %13124 = vst [vmem:[#allocation110_spill] sm:$0xff] %v10908_v31  ;;  %v3032_v25 = vmul.f32 0.0013888889, %v13134_v12  ;;  %v13142_v12 = vld [vmem:[#allocation14_spill] sm:$0xff]  ;;  %v13153_v45 = vld [vmem:[#allocation23_spill] sm:$0xff]  ;;  %v13165_v32 = vld [vmem:[#allocation97_spill] sm:$0xff] }
 0x3a3   :  { %5851 = vmatprep.mubr.f32.mxu0 %v10598_v8  ;;  %13110 = vst [vmem:[#allocation109_spill] sm:$0xff] %v10840_v51  ;;  %v3035_v43 = vmul.f32 0.0013888889, %v13153_v45  ;;  %v13154_v28 = vld [vmem:[#allocation54_spill] sm:$0xff]  ;;  %v3072_v26 = vmul.f32 0.0001984127, %v13165_v32 }
 0x3a4   :  { %5808 = vmatmul.mubr.f32.gmra.mrb[78].mxu1 %v13107_v55  ;;  %v13147_v55 = vld [vmem:[#allocation21_spill] sm:$0xff] }
 0x3a5   :  { %5898 = vmatprep.mubr.f32.mxu1 %v10821_v44  ;;  %6641 = vmatpush3.bf16.msra.mxu1 %v6638_v27  ;;  %v10881_v27 = vadd.f32 %v10658_v23, %v13097_v41 }
 0x3a6   :  { %5852 = vmatmul.mubr.f32.gmra.mrb[86].mxu0 %v10588_v15  ;;  %v13148_v15 = vld [vmem:[#allocation51_spill] sm:$0xff] }
 0x3a7   :  { %5854 = vmatprep.mubr.f32.mxu0 %v10628_v62  ;;  %13119 = vst [vmem:[#allocation149_spill] sm:$0xff] %v10881_v27  ;;  %v3006_v62 = vmul.f32 0.008333334, %v13147_v55 }
 0x3a8   :  { %5899 = vmatmul.mubr.f32.vlgmr.msra.gmra.mrb[80].mxu1 %v10828_v56  ;;  %v13144_v56 = vld [vmem:[#allocation8_spill] sm:$0xff] }
 0x3a9   :  { %5901 = vmatprep.mubr.f32.mxu1 %v10833_v11 }
 0x3aa   :  { %5855 = vmatmul.mubr.f32.gmra.mrb[88].mxu0 %v10620_v49  ;;  %v13146_v49 = vld [vmem:[#allocation13_spill] sm:$0xff] }
 0x3ab   :  { %5857 = vmatprep.mubr.f32.mxu0 %v10658_v23 }
 0x3ac   :  { %5902 = vmatmul.mubr.f32.gmra.mrb[82].mxu1 %v10840_v51 }
 0x3ad   :  { %5904 = vmatprep.mubr.f32.mxu1 %v10845_v4  ;;  %v13140_v4 = vld [vmem:[#allocation72_spill] sm:$0xff] }
 0x3ae   :  { %5858 = vmatmul.mubr.f32.gmra.mrb[90].mxu0 %v10650_v58  ;;  %v10944_v51 = vmul.f32 0.041666668, %v13140_v4  ;;  %v3003_v58 = vmul.f32 0.008333334, %v13142_v12  ;;  %v3066_v12 = vmul.f32 0.0001984127, %v13148_v15 }
 0x3af   :  { %5860 = vmatprep.mubr.f32.mxu0 %v10688_v50 }
 0x3b0   :  { %5905 = vmatmul.mubr.f32.gmra.mrb[84].mxu1 %v10852_v30  ;;  %v13138_v30 = vld [vmem:[#allocation70_spill] sm:$0xff] }
 0x3b1   :  { %5907 = vmatprep.mubr.f32.mxu1 %v10857_v37  ;;  %v13137_v37 = vld [vmem:[#allocation16_spill] sm:$0xff]  ;;  %v2991_v24 = vmul.f32 0.041666668, %v13138_v30  ;;  %v3034_v30 = vmul.f32 0.0013888889, %v13144_v56 }
 0x3b2   :  { %5861 = vmatmul.mubr.f32.gmra.mrb[92].mxu0 %v10679_v61  ;;  %v3004_v0 = vmul.f32 0.008333334, %v13137_v37  ;;  %v3016_v61 = vadd.f32 %v3000_v35, %v2984_v42 }
 0x3b3   :  { %5863 = vmatprep.mubr.f32.mxu0 %v13116_v47 }
 0x3b4   :  { %5908 = vmatmul.mubr.f32.gmra.mrb[86].mxu1 %v10864_v20  ;;  %v3048_v37 = vadd.f32 %v3032_v25, %v3016_v61  ;;  %v3020_v44 = vadd.f32 %v3004_v0, %v2988_v22  ;;  %v13149_v25 = vld [vmem:[#allocation26_spill] sm:$0xff] }
 0x3b5   :  { %5910 = vmatprep.mubr.f32.mxu1 %v10869_v5  ;;  %v13135_v5 = vld [vmem:[#allocation9_spill] sm:$0xff] }
 0x3b6   :  { %5864 = vmatmul.mubr.f32.gmra.mrb[94].mxu0 %v13118_v6  ;;  %v3001_v16 = vmul.f32 0.008333334, %v13135_v5  ;;  %v13136_v6 = vld [vmem:[#allocation11_spill] sm:$0xff] }
 0x3b7   :  { %5954 = vmatprep.mubr.f32.mxu0 %v13104_v9  ;;  %v10902_v9 = vadd.f32 %v13116_v47, %v13103_v63  ;;  %v13139_v47 = vld [vmem:[#allocation74_spill] sm:$0xff]  ;;  %v13143_v5 = vld [vmem:[#allocation19_spill] sm:$0xff] }
 0x3b8   :  { %5911 = vmatmul.mubr.f32.gmra.mrb[88].mxu1 %v10876_v3  ;;  %v3005_v11 = vmul.f32 0.008333334, %v13143_v5  ;;  %v3017_v23 = vadd.f32 %v3001_v16, %v2985_v39  ;;  %v3007_v39 = vmul.f32 0.008333334, %v13149_v25  ;;  %v13150_v16 = vld [vmem:[#allocation78_spill] sm:$0xff] }
 0x3b9   :  { %5913 = vmatprep.mubr.f32.mxu1 %v10881_v27  ;;  %13123 = vst [vmem:[#allocation106_spill] sm:$0xff] %v10902_v9  ;;  %v13133_v27 = vld [vmem:[#allocation69_spill] sm:$0xff] }
 0x3ba   :  { %v2992_v3 = vmul.f32 0.041666668, %v13133_v27 }
 0x3bc   :  { %5914 = vmatmul.mubr.f32.gmra.mrb[90].mxu1 %v10888_v57 }
 0x3bd   :  { %5916 = vmatprep.mubr.f32.mxu1 %v10892_v53  ;;  %v13132_v53 = vld [vmem:[#allocation68_spill] sm:$0xff] }
 0x3be   :  { %v2990_v57 = vmul.f32 0.041666668, %v13132_v53  ;;  %v13141_v53 = vld [vmem:[#allocation71_spill] sm:$0xff] }
 0x3bf   :  { %v10947_v27 = vmul.f32 0.041666668, %v13141_v53  ;;  %v3033_v53 = vmul.f32 0.0013888889, %v13146_v49  ;;  %v13151_v49 = vld [vmem:[#allocation18_spill] sm:$0xff] }
 0x3c0   :  { %5917 = vmatmul.mubr.f32.gmra.mrb[92].mxu1 %v10898_v54  ;;  %v3022_v17 = vadd.f32 %v3006_v62, %v2990_v57 }
 0x3c1   :  { %5919 = vmatprep.mubr.f32.mxu1 %v10902_v9 }
 0x3c4   :  { %5920 = vmatmul.mubr.f32.gmra.mrb[94].mxu1 %v10908_v31  ;;  %v13131_v31 = vld [vmem:[#allocation65_spill] sm:$0xff] }
 0x3c5   :  { %6010 = vmatprep.mubr.f32.mxu1 %v13105_v59  ;;  %v2987_v59 = vmul.f32 0.041666668, %v13128_v1  ;;  %v2989_v9 = vmul.f32 0.041666668, %v13131_v31  ;;  %v3002_v1 = vmul.f32 0.008333334, %v13136_v6 }
 0x3c6   :  { %v3064_v31 = vmul.f32 0.0001984127, %v13139_v47  ;;  %v13145_v47 = vld [vmem:[#allocation24_spill] sm:$0xff] }
 0x3c7   :  { %v3008_v35 = vmul.f32 0.008333334, %v13145_v47  ;;  %v3018_v4 = vadd.f32 %v3002_v1, %v2986_v52  ;;  %v3065_v47 = vmul.f32 0.0001984127, %v13150_v16  ;;  %v3019_v22 = vadd.f32 %v3003_v58, %v2987_v59 }
 0x3c8   :  { %v3080_v63 = vadd.f32 %v3064_v31, %v3048_v37  ;;  %v3021_v0 = vadd.f32 %v3005_v11, %v2989_v9  ;;  %v3036_v31 = vmul.f32 0.0013888889, %v13151_v49  ;;  %v3049_v16 = vadd.f32 %v3033_v53, %v3017_v23  ;;  %v13160_v49 = vld [vmem:[#allocation90_spill] sm:$0xff] }
 0x3c9   :  { %v3050_v15 = vadd.f32 %v3034_v30, %v3018_v4  ;;  %v3024_v37 = vadd.f32 %v3008_v35, %v2992_v3  ;;  %v3068_v58 = vmul.f32 0.0001984127, %v13154_v28  ;;  %v3023_v4 = vadd.f32 %v3007_v39, %v2991_v24  ;;  %v13155_v30 = vld [vmem:[#allocation83_spill] sm:$0xff]  ;;  %v13157_v35 = vld [vmem:[#allocation34_spill] sm:$0xff]  ;;  %v13158_v28 = vld [vmem:[#allocation33_spill] sm:$0xff] }
 0x3ca   :  { %v3067_v3 = vmul.f32 0.0001984127, %v13155_v30  ;;  %v3081_v23 = vadd.f32 %v3065_v47, %v3049_v16  ;;  %v3052_v59 = vadd.f32 %v3036_v31, %v3020_v44  ;;  %v3011_v24 = vmul.f32 0.008333334, %v13157_v35  ;;  %v13159_v16 = vld [vmem:[#allocation29_spill] sm:$0xff] }
 0x3cb   :  { %v3051_v30 = vadd.f32 %v3035_v43, %v3019_v22  ;;  %v3037_v47 = vmul.f32 0.0013888889, %v13158_v28  ;;  %v3009_v45 = vmul.f32 0.008333334, %v13159_v16  ;;  %v3070_v33 = vmul.f32 0.0001984127, %v13160_v49 }
 0x3cc   :  { %v3084_v44 = vadd.f32 %v3068_v58, %v3052_v59  ;;  %v13163_v59 = vld [vmem:[#allocation44_spill] sm:$0xff] }
 0x3cd   :  { %v3083_v22 = vadd.f32 %v3067_v3, %v3051_v30  ;;  %v3053_v40 = vadd.f32 %v3037_v47, %v3021_v0  ;;  %v3025_v30 = vadd.f32 %v3009_v45, %v10944_v51  ;;  %v13164_v3 = vld [vmem:[#allocation45_spill] sm:$0xff] }
 0x3ce   :  { %v3041_v13 = vmul.f32 0.0013888889, %v13164_v3 }
 0x458   :  { %v10912_v2 = vpop.f32.mrb[64].mxu1 }
 0x459   :  { %v10914_v29 = vpop.f32.mrb[65].mxu1 }
 0x45c   :  { %v10916_v60 = vpop.f32.mrb[66].mxu1 }
 0x45d   :  { %v10918_v48 = vpop.f32.mrb[67].mxu1 }
 0x461   :  { %v10920_v7 = vpop.f32.mrb[68].mxu1 }
 0x462   :  { %v10922_v10 = vpop.f32.mrb[69].mxu1 }
 0x467   :  { %v10931_v54 = vpop.f32.mrb[70].mxu1 }
 0x468   :  { %v10935_v20 = vpop.f32.mrb[71].mxu1 }
 0x46b   :  { %v10949_v50 = vpop.f32.mrb[72].mxu1 }
 0x46c   :  { %v10953_v6 = vpop.f32.mrb[73].mxu1 }
 0x46d   :  { %v10957_v42 = vpop.f32.mrb[80].mxu0 }
 0x46e   :  { %v2936_v5 = vsub.f32 %v10912_v2, %v10957_v42  ;;  %v10964_v61 = vpop.f32.mrb[81].mxu0 }
 0x46f   :  { %v10968_v56 = vpop.f32.mrb[74].mxu1  ;;  %v2935_v52 = vsub.f32 %v10914_v29, %v10964_v61 }
 0x470   :  { %v10972_v1 = vpop.f32.mrb[75].mxu1  ;;  %v10974_v55 = vadd.f32 %v3080_v63, %v2936_v5  ;;  %v3082_v63 = vadd.f32 %v3066_v12, %v3050_v15  ;;  %v13156_v15 = vld [vmem:[#allocation28_spill] sm:$0xff] }
 0x471   :  { %v10978_v8 = vadd.f32 %v13152_v38, %v2935_v52  ;;  %v10980_v25 = vpop.f32.mrb[82].mxu0  ;;  %v3038_v12 = vmul.f32 0.0013888889, %v13156_v15 }
 0x472   :  { %v2938_v11 = vsub.f32 %v10916_v60, %v10980_v25  ;;  %v10986_v5 = vpop.f32.mrb[83].mxu0 }
 0x473   :  { %v10989_v9 = vpop.f32.mrb[76].mxu1  ;;  %v2937_v38 = vsub.f32 %v10918_v48, %v10986_v5  ;;  %v6642_v62 = vpack.c.bf16 %v10974_v55, %v10978_v8  ;;  %v3054_v58 = vadd.f32 %v3038_v12, %v3022_v17 }
 0x474   :  { %v10995_v57 = vpop.f32.mrb[77].mxu1  ;;  %v10997_v53 = vadd.f32 %v3082_v63, %v2938_v11  ;;  %v13161_v63 = vld [vmem:[#allocation39_spill] sm:$0xff] }
 0x475   :  { %v11001_v39 = vadd.f32 %v3081_v23, %v2937_v38  ;;  %v11003_v52 = vpop.f32.mrb[84].mxu0  ;;  %6643 = vmatprep.subr.bf16.mxu0 %v6642_v62  ;;  %v3040_v38 = vmul.f32 0.0013888889, %v13161_v63  ;;  %v13162_v23 = vld [vmem:[#allocation31_spill] sm:$0xff]  ;;  %v3027_v63 = vadd.f32 %v3011_v24, %v10947_v27  ;;  %v3086_v17 = vadd.f32 %v3070_v33, %v3054_v58  ;;  %v13166_v24 = vld [vmem:[#allocation94_spill] sm:$0xff] }
 0x476   :  { %v2940_v11 = vsub.f32 %v10920_v7, %v11003_v52  ;;  %v11010_v31 = vpop.f32.mrb[85].mxu0  ;;  %6645 = vmatpush3.bf16.msra.mxu0 %v6642_v62  ;;  %v3069_v35 = vmul.f32 0.0001984127, %v13162_v23  ;;  %v3039_v62 = vmul.f32 0.0013888889, %v13163_v59  ;;  %v13167_v58 = vld [vmem:[#allocation46_spill] sm:$0xff] }
 0x477   :  { %v11014_v15 = vpop.f32.mrb[78].mxu1  ;;  %v2939_v43 = vsub.f32 %v10922_v10, %v11010_v31  ;;  %v6646_v16 = vpack.c.bf16 %v10997_v53, %v11001_v39  ;;  %v3056_v27 = vadd.f32 %v3040_v38, %v3024_v37  ;;  %v3043_v32 = vmul.f32 0.0013888889, %v13167_v58 }
 0x478   :  { %v11020_v49 = vpop.f32.mrb[79].mxu1  ;;  %v11022_v28 = vadd.f32 %v3084_v44, %v2940_v11  ;;  %v3071_v44 = vmul.f32 0.0001984127, %v13166_v24  ;;  %v3085_v47 = vadd.f32 %v3069_v35, %v3053_v40  ;;  %v3055_v33 = vadd.f32 %v3039_v62, %v3023_v4  ;;  %v13169_v35 = vld [vmem:[#allocation114_spill] sm:$0xff] }
 0x479   :  { %v11026_v41 = vadd.f32 %v3083_v22, %v2939_v43  ;;  %v11028_v23 = vpop.f32.mrb[86].mxu0  ;;  %6647 = vmatprep.subr.bf16.mxu0 %v6646_v16  ;;  %v3057_v40 = vadd.f32 %v3041_v13, %v3025_v30  ;;  %v3075_v19 = vmul.f32 0.0001984127, %v13169_v35  ;;  %v3088_v4 = vadd.f32 %v3072_v26, %v3056_v27  ;;  %v13170_v30 = vld [vmem:[#allocation55_spill] sm:$0xff]  ;;  %v13171_v27 = vld [vmem:[#allocation81_spill] sm:$0xff] }
 0x47a   :  { %v2942_v11 = vsub.f32 %v10931_v54, %v11028_v23  ;;  %v11035_v12 = vpop.f32.mrb[87].mxu0  ;;  %6649 = vmatpush3.bf16.msra.mxu0 %v6646_v16  ;;  %v13168_v16 = vld [vmem:[#allocation12_spill] sm:$0xff]  ;;  %v3059_v26 = vadd.f32 %v3043_v32, %v3027_v63 }
 0x47b   :  { %v5900_v43 = vpop.f32.mrb[80].mxu1  ;;  %v2941_v0 = vsub.f32 %v10935_v20, %v11035_v12  ;;  %v6650_v45 = vpack.c.bf16 %v11022_v28, %v11026_v41  ;;  %v3073_v37 = vmul.f32 0.0001984127, %v13168_v16 }
 0x47c   :  { %v2952_v51 = vsub.f32 %v5900_v43, %v10912_v2  ;;  %v2856_v22 = vpop.f32.mrb[81].mxu1  ;;  %v11043_v3 = vadd.f32 %v3086_v17, %v2942_v11  ;;  %v3091_v32 = vadd.f32 %v3075_v19, %v3059_v26 }
 0x47d   :  { %v2951_v38 = vsub.f32 %v2856_v22, %v10914_v29  ;;  %v11048_v24 = vadd.f32 %v3085_v47, %v2941_v0  ;;  %v11050_v59 = vpop.f32.mrb[88].mxu0  ;;  %6651 = vmatprep.subr.bf16.mxu0 %v6650_v45  ;;  %v3087_v0 = vadd.f32 %v3071_v44, %v3055_v33  ;;  %v3089_v44 = vadd.f32 %v3073_v37, %v3057_v40  ;;  %v13172_v40 = vld [vmem:[#allocation100_spill] sm:$0xff] }
 0x47e   :  { %v2968_v2 = vsub.f32 %v2952_v51, %v10957_v42  ;;  %v2944_v11 = vsub.f32 %v10949_v50, %v11050_v59  ;;  %v11056_v62 = vpop.f32.mrb[89].mxu0  ;;  %6653 = vmatpush3.bf16.msra.mxu0 %v6650_v45 }
 0x47f   :  { %v2967_v17 = vsub.f32 %v2951_v38, %v10964_v61  ;;  %v5903_v29 = vpop.f32.mrb[82].mxu1  ;;  %v2943_v43 = vsub.f32 %v10953_v6, %v11056_v62  ;;  %v6654_v13 = vpack.c.bf16 %v11043_v3, %v11048_v24 }
 0x480   :  { %v3192_v47 = vadd.f32 %v13170_v30, %v2968_v2  ;;  %v2954_v42 = vsub.f32 %v5903_v29, %v10916_v60  ;;  %v2866_v51 = vpop.f32.mrb[83].mxu1  ;;  %v11065_v22 = vadd.f32 %v3088_v4, %v2944_v11 }
 0x481   :  { %v3191_v45 = vadd.f32 %v13171_v27, %v2967_v17  ;;  %v2953_v61 = vsub.f32 %v2866_v51, %v10918_v48  ;;  %v11069_v38 = vadd.f32 %v3087_v0, %v2943_v43  ;;  %v11071_v35 = vpop.f32.mrb[90].mxu0  ;;  %6655 = vmatprep.subr.bf16.mxu0 %v6654_v13  ;;  %v13173_v43 = vld [vmem:[#allocation91_spill] sm:$0xff] }
 0x482   :  { %v3498_v33 = vadd.f32 %v3192_v47, %v10974_v55  ;;  %v2970_v2 = vsub.f32 %v2954_v42, %v10980_v25  ;;  %v2946_v60 = vsub.f32 %v10968_v56, %v11071_v35  ;;  %v11077_v11 = vpop.f32.mrb[91].mxu0  ;;  %6657 = vmatpush3.bf16.msra.mxu0 %v6654_v13  ;;  %v13174_v13 = vld [vmem:[#allocation95_spill] sm:$0xff] }
 0x483   :  { %v3497_v63 = vadd.f32 %v3191_v45, %v10978_v8  ;;  %v2969_v48 = vsub.f32 %v2953_v61, %v10986_v5  ;;  %v5906_v4 = vpop.f32.mrb[84].mxu1  ;;  %v6674_v17 = vpack.c.bf16 %v3192_v47, %v3191_v45  ;;  %v2945_v37 = vsub.f32 %v10972_v1, %v11077_v11 }
 0x484   :  { %v3194_v55 = vadd.f32 %v13172_v40, %v2970_v2  ;;  %v2956_v25 = vsub.f32 %v5906_v4, %v10920_v7  ;;  %v2876_v29 = vpop.f32.mrb[85].mxu1  ;;  %v11086_v0 = vadd.f32 %v13173_v43, %v2946_v60  ;;  %v6658_v19 = vpack.c.bf16 %v11065_v22, %v11069_v38 }
 0x485   :  { %v3193_v8 = vadd.f32 %v13174_v13, %v2969_v48  ;;  %v2955_v5 = vsub.f32 %v2876_v29, %v10922_v10  ;;  %6675 = vmatprep.subr.bf16.mxu1 %v6674_v17  ;;  %v11092_v30 = vadd.f32 %v3089_v44, %v2945_v37  ;;  %v11094_v47 = vpop.f32.mrb[92].mxu0  ;;  %v11096_v42 = vpack.c.bf16 %v3498_v33, %v3497_v63  ;;  %v13176_v63 = vld [vmem:[#allocation77_spill] sm:$0xff] }
 0x486   :  { %v3500_v7 = vadd.f32 %v3194_v55, %v10997_v53  ;;  %v2972_v51 = vsub.f32 %v2956_v25, %v11003_v52  ;;  %6677 = vmatpush3.bf16.msra.mxu1 %v6674_v17  ;;  %v2948_v26 = vsub.f32 %v10989_v9, %v11094_v47  ;;  %6659 = vmatprep.subr.bf16.mxu0 %v6658_v19  ;;  %v11102_v27 = vpop.f32.mrb[93].mxu0  ;;  %v13175_v53 = vld [vmem:[#allocation32_spill] sm:$0xff] }
 0x487   :  { %v3499_v10 = vadd.f32 %v3193_v8, %v11001_v39  ;;  %v2971_v45 = vsub.f32 %v2955_v5, %v11010_v31  ;;  %v5909_v61 = vpop.f32.mrb[86].mxu1  ;;  %v6678_v44 = vpack.c.bf16 %v3194_v55, %v3193_v8  ;;  %v2947_v33 = vsub.f32 %v10995_v57, %v11102_v27  ;;  %6661 = vmatpush3.bf16.msra.mxu0 %v6658_v19  ;;  %v13177_v39 = vld [vmem:[#allocation5_spill] sm:$0xff] }
 0x488   :  { %v3196_v2 = vadd.f32 %v13175_v53, %v2972_v51  ;;  %v2958_v52 = vsub.f32 %v5909_v61, %v10931_v54  ;;  %v2886_v60 = vpop.f32.mrb[87].mxu1  ;;  %v11111_v48 = vadd.f32 %v13176_v63, %v2948_v26  ;;  %v6662_v4 = vpack.c.bf16 %v11086_v0, %v11092_v30  ;;  %v13179_v51 = vld [vmem:[#allocation124_spill] sm:$0xff] }
 0x489   :  { %v3195_v17 = vadd.f32 %v13177_v39, %v2971_v45  ;;  %v2957_v31 = vsub.f32 %v2886_v60, %v10935_v20  ;;  %6679 = vmatprep.subr.bf16.mxu1 %v6678_v44  ;;  %v11117_v37 = vadd.f32 %v3091_v32, %v2947_v33  ;;  %v11119_v40 = vpop.f32.mrb[94].mxu0  ;;  %v11121_v55 = vpack.c.bf16 %v3500_v7, %v3499_v10  ;;  %v13181_v61 = vld [vmem:[#allocation48_spill] sm:$0xff] }
 0x48a   :  { %v3502_v54 = vadd.f32 %v3196_v2, %v11022_v28  ;;  %v2974_v25 = vsub.f32 %v2958_v52, %v11028_v23  ;;  %6681 = vmatpush3.bf16.msra.mxu1 %v6678_v44  ;;  %v2950_v29 = vsub.f32 %v11014_v15, %v11119_v40  ;;  %6663 = vmatprep.subr.bf16.mxu0 %v6662_v4  ;;  %v11127_v43 = vpop.f32.mrb[95].mxu0  ;;  %v13178_v28 = vld [vmem:[#allocation119_spill] sm:$0xff] }
 0x48b   :  { %v3501_v20 = vadd.f32 %v3195_v17, %v11026_v41  ;;  %v2973_v32 = vsub.f32 %v2957_v31, %v11035_v12  ;;  %v5912_v19 = vpop.f32.mrb[88].mxu1  ;;  %v6682_v13 = vpack.c.bf16 %v3196_v2, %v3195_v17  ;;  %v2949_v8 = vsub.f32 %v11020_v49, %v11127_v43  ;;  %6665 = vmatpush3.bf16.msra.mxu0 %v6662_v4  ;;  %v13180_v41 = vld [vmem:[#allocation113_spill] sm:$0xff] }
 0x48c   :  { %v3198_v5 = vadd.f32 %v13178_v28, %v2974_v25  ;;  %v2960_v23 = vsub.f32 %v5912_v19, %v10949_v50  ;;  %v2896_v7 = vpop.f32.mrb[89].mxu1  ;;  %v11136_v26 = vadd.f32 %v13179_v51, %v2950_v29  ;;  %v6666_v10 = vpack.c.bf16 %v11111_v48, %v11117_v37  ;;  %v13182_v4 = vld [vmem:[#allocation125_spill] sm:$0xff]  ;;  %v13184_v19 = vld [vmem:[#allocation88_spill] sm:$0xff] }
 0x48d   :  { %v3197_v45 = vadd.f32 %v13180_v41, %v2973_v32  ;;  %v2959_v12 = vsub.f32 %v2896_v7, %v10953_v6  ;;  %6683 = vmatprep.subr.bf16.mxu1 %v6682_v13  ;;  %v11143_v44 = vadd.f32 %v13181_v61, %v2949_v8  ;;  %v11145_v33 = vpack.c.bf16 %v3502_v54, %v3501_v20  ;;  %v13185_v28 = vld [vmem:[#allocation84_spill] sm:$0xff] }
 0x48e   :  { %v3504_v53 = vadd.f32 %v3198_v5, %v11043_v3  ;;  %v2976_v50 = vsub.f32 %v2960_v23, %v11050_v59  ;;  %6685 = vmatpush3.bf16.msra.mxu1 %v6682_v13  ;;  %6667 = vmatprep.subr.bf16.mxu0 %v6666_v10  ;;  %v13183_v3 = vld [vmem:[#allocation50_spill] sm:$0xff] }
 0x48f   :  { %v3503_v2 = vadd.f32 %v3197_v45, %v11048_v24  ;;  %v2975_v52 = vsub.f32 %v2959_v12, %v11056_v62  ;;  %v5915_v60 = vpop.f32.mrb[90].mxu1  ;;  %v6686_v63 = vpack.c.bf16 %v3198_v5, %v3197_v45  ;;  %6669 = vmatpush3.bf16.msra.mxu0 %v6666_v10  ;;  %v6670_v6 = vpack.c.bf16 %v11136_v26, %v11143_v44 }
 0x490   :  { %v3200_v39 = vadd.f32 %v13182_v4, %v2976_v50  ;;  %v2962_v17 = vsub.f32 %v5915_v60, %v10968_v56  ;;  %v2906_v31 = vpop.f32.mrb[91].mxu1  ;;  %v13189_v50 = vld [vmem:[#allocation145_spill] sm:$0xff]  ;;  %v13200_v4 = vld [vmem:[#allocation80_spill] sm:$0xff] }
 0x491   :  { %v3199_v54 = vadd.f32 %v13183_v3, %v2975_v52  ;;  %v2961_v59 = vsub.f32 %v2906_v31, %v10972_v1  ;;  %6687 = vmatprep.subr.bf16.mxu1 %v6686_v63  ;;  %6671 = vmatprep.subr.bf16.mxu0 %v6670_v6  ;;  %v11157_v24 = vpack.c.bf16 %v3504_v53, %v3503_v2  ;;  %v13195_v52 = vld [vmem:[#allocation139_spill] sm:$0xff]  ;;  %v13196_v60 = vld [vmem:[#allocation53_spill] sm:$0xff] }
 0x492   :  { %v3506_v62 = vadd.f32 %v3200_v39, %v11065_v22  ;;  %v2978_v25 = vsub.f32 %v2962_v17, %v11071_v35  ;;  %6689 = vmatpush3.bf16.msra.mxu1 %v6686_v63  ;;  %v13197_v63 = vld [vmem:[#allocation22_spill] sm:$0xff]  ;;  %v13204_v31 = vld [vmem:[#allocation87_spill] sm:$0xff]  ;;  %v13205_v3 = vld [vmem:[#allocation93_spill] sm:$0xff] }
 0x493   :  { %v3505_v29 = vadd.f32 %v3199_v54, %v11069_v38  ;;  %v2977_v20 = vsub.f32 %v2961_v59, %v11077_v11  ;;  %v5918_v32 = vpop.f32.mrb[92].mxu1  ;;  %v6690_v56 = vpack.c.bf16 %v3200_v39, %v3199_v54  ;;  %6673 = vmatpush3.bf16.msra.mxu0 %v6670_v6  ;;  %v13198_v6 = vld [vmem:[#allocation135_spill] sm:$0xff]  ;;  %v13201_v39 = vld [vmem:[#allocation60_spill] sm:$0xff]  ;;  %v13202_v17 = vld [vmem:[#allocation142_spill] sm:$0xff] }
 0x494   :  { %v3202_v13 = vadd.f32 %v13184_v19, %v2978_v25  ;;  %v2964_v1 = vsub.f32 %v5918_v32, %v10989_v9  ;;  %v2916_v8 = vpop.f32.mrb[93].mxu1  ;;  %6707 = vmatprep.subr.bf16.mxu0 %v11096_v42  ;;  %v13206_v54 = vld [vmem:[#allocation148_spill] sm:$0xff]  ;;  %v13208_v59 = vld [vmem:[#allocation57_spill] sm:$0xff]  ;;  %v13210_v25 = vld [vmem:[#allocation15_spill] sm:$0xff] }
 0x495   :  { %v3201_v5 = vadd.f32 %v13185_v28, %v2977_v20  ;;  %v2963_v22 = vsub.f32 %v2916_v8, %v10995_v57  ;;  %6691 = vmatprep.subr.bf16.mxu1 %v6690_v56  ;;  %v11168_v35 = vpack.c.bf16 %v3506_v62, %v3505_v29  ;;  %v13186_v57 = vld [vmem:[#allocation56_spill] sm:$0xff]  ;;  %v13213_v20 = vld [vmem:[#allocation43_spill] sm:$0xff]  ;;  %v13214_v32 = vld [vmem:[#allocation109_spill] sm:$0xff] }
 0x496   :  { %v3508_v38 = vadd.f32 %v3202_v13, %v11086_v0  ;;  %v2980_v11 = vsub.f32 %v2964_v1, %v11094_v47  ;;  %6693 = vmatpush3.bf16.msra.mxu1 %v6690_v56  ;;  %5955 = vmatmul.mubr.f32.vlgmr.msra.gmra.mrb[96].mxu0 %v13029_v18  ;;  %v13187_v47 = vld [vmem:[#allocation130_spill] sm:$0xff]  ;;  %v13209_v62 = vld [vmem:[#allocation20_spill] sm:$0xff]  ;;  %v13215_v56 = vld [vmem:[#allocation115_spill] sm:$0xff] }
 0x497   :  { %v3507_v23 = vadd.f32 %v3201_v5, %v11092_v30  ;;  %v2979_v9 = vsub.f32 %v2963_v22, %v11102_v27  ;;  %v5921_v7 = vpop.f32.mrb[94].mxu1  ;;  %v6694_v51 = vpack.c.bf16 %v3202_v13, %v3201_v5  ;;  %5957 = vmatprep.mubr.f32.mxu0 %v13034_v46  ;;  %6709 = vmatpush3.bf16.msra.mxu0 %v11096_v42  ;;  %v13211_v29 = vld [vmem:[#allocation144_spill] sm:$0xff]  ;;  %v13216_v19 = vld [vmem:[#allocation35_spill] sm:$0xff]  ;;  %v13217_v13 = vld [vmem:[#allocation86_spill] sm:$0xff] }
 0x498   :  { %v3204_v10 = vadd.f32 %v13186_v57, %v2980_v11  ;;  %v2966_v41 = vsub.f32 %v5921_v7, %v11014_v15  ;;  %v2926_v0 = vpop.f32.mrb[95].mxu1  ;;  %6711 = vmatprep.subr.bf16.mxu0 %v11121_v55  ;;  %v13218_v1 = vld [vmem:[#allocation147_spill] sm:$0xff]  ;;  %v13219_v8 = vld [vmem:[#allocation117_spill] sm:$0xff]  ;;  %v13222_v22 = vld [vmem:[#allocation116_spill] sm:$0xff] }
 0x499   :  { %v3203_v45 = vadd.f32 %v13187_v47, %v2979_v9  ;;  %v2965_v18 = vsub.f32 %v2926_v0, %v11020_v49  ;;  %6695 = vmatprep.subr.bf16.mxu1 %v6694_v51  ;;  %v11182_v30 = vpack.c.bf16 %v3508_v38, %v3507_v23  ;;  %v13188_v49 = vld [vmem:[#allocation138_spill] sm:$0xff]  ;;  %v13220_v28 = vld [vmem:[#allocation41_spill] sm:$0xff]  ;;  %v13221_v5 = vld [vmem:[#allocation27_spill] sm:$0xff] }
 0x49a   :  { %v3510_v27 = vadd.f32 %v3204_v10, %v11111_v48  ;;  %v2982_v46 = vsub.f32 %v2966_v41, %v11119_v40  ;;  %6697 = vmatpush3.bf16.msra.mxu1 %v6694_v51  ;;  %5958 = vmatmul.mubr.f32.gmra.mrb[98].mxu0 %v13041_v36  ;;  %v13224_v38 = vld [vmem:[#allocation149_spill] sm:$0xff]  ;;  %v13225_v11 = vld [vmem:[#allocation112_spill] sm:$0xff]  ;;  %v13227_v9 = vld [vmem:[#allocation111_spill] sm:$0xff] }
 0x49b   :  { %v3509_v12 = vadd.f32 %v3203_v45, %v11117_v37  ;;  %v2981_v15 = vsub.f32 %v2965_v18, %v11127_v43  ;;  %v6698_v61 = vpack.c.bf16 %v3204_v10, %v3203_v45  ;;  %5960 = vmatprep.mubr.f32.mxu0 %v13048_v34  ;;  %6713 = vmatpush3.bf16.msra.mxu0 %v11121_v55  ;;  %v13190_v43 = vld [vmem:[#allocation129_spill] sm:$0xff]  ;;  %v13228_v7 = vld [vmem:[#allocation106_spill] sm:$0xff] }
 0x49c   :  { %v3206_v53 = vadd.f32 %v13188_v49, %v2982_v46  ;;  %6715 = vmatprep.subr.bf16.mxu0 %v11145_v33  ;;  %v13226_v23 = vld [vmem:[#allocation105_spill] sm:$0xff]  ;;  %v13229_v51 = vld [vmem:[#allocation110_spill] sm:$0xff] }
 0x49d   :  { %v3205_v48 = vadd.f32 %v13189_v50, %v2981_v15  ;;  %6699 = vmatprep.subr.bf16.mxu1 %v6698_v61  ;;  %v6730_v40 = vpack.c.bf16 %v3510_v27, %v3509_v12  ;;  %v13230_v18 = vld [vmem:[#allocation38_spill] sm:$0xff]  ;;  %v13232_v12 = vld [vmem:[#allocation4_spill] sm:$0xff] }
 0x49e   :  { %v3512_v2 = vadd.f32 %v3206_v53, %v11136_v26  ;;  %6701 = vmatpush3.bf16.msra.mxu1 %v6698_v61  ;;  %5961 = vmatmul.mubr.f32.gmra.mrb[100].mxu0 %v13056_v21  ;;  %v13191_v26 = vld [vmem:[#allocation133_spill] sm:$0xff]  ;;  %v13192_v21 = vld [vmem:[#allocation150_spill] sm:$0xff] }
 0x49f   :  { %v3511_v36 = vadd.f32 %v3205_v48, %v11143_v44  ;;  %v6702_v37 = vpack.c.bf16 %v3206_v53, %v3205_v48  ;;  %5963 = vmatprep.mubr.f32.mxu0 %v13063_v14  ;;  %6717 = vmatpush3.bf16.msra.mxu0 %v11145_v33  ;;  %v13193_v14 = vld [vmem:[#allocation59_spill] sm:$0xff]  ;;  %v13194_v44 = vld [vmem:[#allocation132_spill] sm:$0xff]  ;;  %v13231_v27 = vld [vmem:[#allocation74_spill] sm:$0xff] }
 0x4a0   :  { %6719 = vmatprep.subr.bf16.mxu0 %v11157_v24  ;;  %v3755_v46 = vmul.f32 0.16666667, %v13231_v27  ;;  %v13233_v15 = vld [vmem:[#allocation62_spill] sm:$0xff]  ;;  %v13234_v48 = vld [vmem:[#allocation8_spill] sm:$0xff] }
 0x4a1   :  { %6703 = vmatprep.subr.bf16.mxu1 %v6702_v37  ;;  %v6734_v34 = vpack.c.bf16 %v3512_v2, %v3511_v36  ;;  %v3707_v61 = vadd.f32 %v13233_v15, %v13232_v12  ;;  %v13235_v36 = vld [vmem:[#allocation13_spill] sm:$0xff] }
 0x4a2   :  { %6705 = vmatpush3.bf16.msra.mxu1 %v6702_v37  ;;  %5964 = vmatmul.mubr.f32.gmra.mrb[102].mxu0 %v13190_v43  ;;  %v3724_v37 = vmul.f32 0.5, %v13235_v36 }
 0x4a3   :  { %6834 = vmatprep.subr.bf16.mxu1 %v11096_v42  ;;  %5966 = vmatprep.mubr.f32.mxu0 %v13191_v26 }
 0x4a4   :  { %6721 = vmatpush3.bf16.msra.mxu0 %v11157_v24 }
 0x4a5   :  { %6011 = vmatmul.mubr.f32.vlgmr.msra.gmra.mrb[96].mxu1 %v13192_v21  ;;  %6723 = vmatprep.subr.bf16.mxu0 %v11168_v35 }
 0x4a6   :  { %6013 = vmatprep.mubr.f32.mxu1 %v13193_v14  ;;  %6842 = vmatpush3.bf16.msra.mxu1 %v11096_v42  ;;  %v13199_v42 = vld [vmem:[#allocation146_spill] sm:$0xff] }
 0x4a7   :  { %6835 = vmatprep.subr.bf16.mxu1 %v11121_v55  ;;  %5967 = vmatmul.mubr.f32.gmra.mrb[104].mxu0 %v13194_v44  ;;  %v13237_v44 = vld [vmem:[#allocation11_spill] sm:$0xff] }
 0x4a8   :  { %5969 = vmatprep.mubr.f32.mxu0 %v13195_v52  ;;  %6725 = vmatpush3.bf16.msra.mxu0 %v11168_v35  ;;  %v13238_v52 = vld [vmem:[#allocation64_spill] sm:$0xff] }
 0x4a9   :  { %6014 = vmatmul.mubr.f32.gmra.mrb[98].mxu1 %v13196_v60  ;;  %6727 = vmatprep.subr.bf16.mxu0 %v11182_v30  ;;  %v3709_v60 = vadd.f32 %v13238_v52, %v13237_v44  ;;  %v13254_v44 = vld [vmem:[#allocation21_spill] sm:$0xff]  ;;  %v13255_v52 = vld [vmem:[#allocation68_spill] sm:$0xff] }
 0x4aa   :  { %6016 = vmatprep.mubr.f32.mxu1 %v13197_v63  ;;  %6843 = vmatpush3.bf16.msra.mxu1 %v11121_v55  ;;  %v13203_v55 = vld [vmem:[#allocation122_spill] sm:$0xff] }
 0x4ab   :  { %6836 = vmatprep.subr.bf16.mxu1 %v11145_v33  ;;  %5970 = vmatmul.mubr.f32.gmra.mrb[106].mxu0 %v13198_v6  ;;  %v13239_v63 = vld [vmem:[#allocation78_spill] sm:$0xff] }
 0x4ac   :  { %5972 = vmatprep.mubr.f32.mxu0 %v13199_v42  ;;  %6729 = vmatpush3.bf16.msra.mxu0 %v11182_v30  ;;  %v3756_v6 = vmul.f32 0.16666667, %v13239_v63  ;;  %v13256_v63 = vld [vmem:[#allocation31_spill] sm:$0xff] }
 0x4ad   :  { %6017 = vmatmul.mubr.f32.gmra.mrb[100].mxu1 %v13200_v4  ;;  %6731 = vmatprep.subr.bf16.mxu0 %v6730_v40  ;;  %v13240_v4 = vld [vmem:[#allocation9_spill] sm:$0xff] }
 0x4ae   :  { %6019 = vmatprep.mubr.f32.mxu1 %v13201_v39  ;;  %6844 = vmatpush3.bf16.msra.mxu1 %v11145_v33  ;;  %v13207_v33 = vld [vmem:[#allocation108_spill] sm:$0xff]  ;;  %v13241_v39 = vld [vmem:[#allocation63_spill] sm:$0xff] }
 0x4af   :  { %6837 = vmatprep.subr.bf16.mxu1 %v11157_v24  ;;  %5973 = vmatmul.mubr.f32.gmra.mrb[108].mxu0 %v13202_v17  ;;  %v3708_v17 = vadd.f32 %v13241_v39, %v13240_v4  ;;  %v13257_v39 = vld [vmem:[#allocation19_spill] sm:$0xff] }
 0x4b0   :  { %5975 = vmatprep.mubr.f32.mxu0 %v13203_v55  ;;  %6733 = vmatpush3.bf16.msra.mxu0 %v6730_v40 }
 0x4b1   :  { %6020 = vmatmul.mubr.f32.gmra.mrb[102].mxu1 %v13204_v31  ;;  %6735 = vmatprep.subr.bf16.mxu0 %v6734_v34 }
 0x4b2   :  { %6022 = vmatprep.mubr.f32.mxu1 %v13205_v3  ;;  %6845 = vmatpush3.bf16.msra.mxu1 %v11157_v24  ;;  %v13212_v24 = vld [vmem:[#allocation37_spill] sm:$0xff] }
 0x4b3   :  { %6838 = vmatprep.subr.bf16.mxu1 %v11168_v35  ;;  %5976 = vmatmul.mubr.f32.gmra.mrb[110].mxu0 %v13206_v54  ;;  %v13242_v54 = vld [vmem:[#allocation18_spill] sm:$0xff] }
 0x4b4   :  { %6737 = vmatpush3.bf16.msra.mxu0 %v6734_v34  ;;  %6066 = vmatprep.mubr.f32.mxu0 %v13207_v33  ;;  %v3727_v33 = vmul.f32 0.5, %v13242_v54 }
 0x4b5   :  { %6023 = vmatmul.mubr.f32.gmra.mrb[104].mxu1 %v13208_v59 }
 0x4b6   :  { %6025 = vmatprep.mubr.f32.mxu1 %v13209_v62  ;;  %6846 = vmatpush3.bf16.msra.mxu1 %v11168_v35  ;;  %v13223_v35 = vld [vmem:[#allocation47_spill] sm:$0xff]  ;;  %v13243_v62 = vld [vmem:[#allocation52_spill] sm:$0xff] }
 0x4b7   :  { %6839 = vmatprep.subr.bf16.mxu1 %v11182_v30  ;;  %6067 = vmatmul.mubr.f32.vlgmr.msra.gmra.mrb[112].mxu0 %v13210_v25 }
 0x4b8   :  { %6069 = vmatprep.mubr.f32.mxu0 %v13211_v29 }
 0x4b9   :  { %6026 = vmatmul.mubr.f32.gmra.mrb[106].mxu1 %v13212_v24  ;;  %v3740_v24 = vadd.f32 %v3724_v37, %v3708_v17  ;;  %v13253_v37 = vld [vmem:[#allocation90_spill] sm:$0xff]  ;;  %v13258_v17 = vld [vmem:[#allocation65_spill] sm:$0xff] }
 0x4ba   :  { %6028 = vmatprep.mubr.f32.mxu1 %v13213_v20  ;;  %6847 = vmatpush3.bf16.msra.mxu1 %v11182_v30  ;;  %v3723_v30 = vmul.f32 0.5, %v13230_v18  ;;  %v13244_v20 = vld [vmem:[#allocation23_spill] sm:$0xff] }
 0x4bb   :  { %6840 = vmatprep.subr.bf16.mxu1 %v6730_v40  ;;  %6070 = vmatmul.mubr.f32.gmra.mrb[114].mxu0 %v13214_v32  ;;  %v3726_v32 = vmul.f32 0.5, %v13244_v20 }
 0x4bc   :  { %6072 = vmatprep.mubr.f32.mxu0 %v13215_v56  ;;  %v3739_v50 = vadd.f32 %v3723_v30, %v3707_v61  ;;  %v13245_v56 = vld [vmem:[#allocation54_spill] sm:$0xff] }
 0x4bd   :  { %6029 = vmatmul.mubr.f32.gmra.mrb[108].mxu1 %v13216_v19  ;;  %v3759_v19 = vmul.f32 0.16666667, %v13245_v56 }
 0x4be   :  { %6031 = vmatprep.mubr.f32.mxu1 %v13217_v13  ;;  %6848 = vmatpush3.bf16.msra.mxu1 %v6730_v40  ;;  %v3725_v40 = vmul.f32 0.5, %v13234_v48  ;;  %v3771_v21 = vadd.f32 %v3755_v46, %v3739_v50  ;;  %v13251_v46 = vld [vmem:[#allocation28_spill] sm:$0xff] }
 0x4bf   :  { %6841 = vmatprep.subr.bf16.mxu1 %v6734_v34  ;;  %6073 = vmatmul.mubr.f32.gmra.mrb[116].mxu0 %v13218_v1  ;;  %v3729_v12 = vmul.f32 0.5, %v13251_v46 }
 0x4c0   :  { %6075 = vmatprep.mubr.f32.mxu0 %v13219_v8  ;;  %v3741_v3 = vadd.f32 %v3725_v40, %v3709_v60  ;;  %v13252_v40 = vld [vmem:[#allocation33_spill] sm:$0xff]  ;;  %v3713_v60 = vadd.f32 %v13255_v52, %v13254_v44 }
 0x4c1   :  { %6032 = vmatmul.mubr.f32.gmra.mrb[110].mxu1 %v13220_v28  ;;  %v13246_v28 = vld [vmem:[#allocation16_spill] sm:$0xff]  ;;  %v3728_v36 = vmul.f32 0.5, %v13252_v40  ;;  %v13266_v40 = vld [vmem:[#allocation70_spill] sm:$0xff] }
 0x4c2   :  { %6849 = vmatpush3.bf16.msra.mxu1 %v6734_v34  ;;  %6078 = vmatprep.mubr.f32.mxu1 %v13221_v5  ;;  %v13236_v34 = vld [vmem:[#allocation51_spill] sm:$0xff] }
 0x4c3   :  { %6076 = vmatmul.mubr.f32.gmra.mrb[118].mxu0 %v13222_v22  ;;  %v3757_v43 = vmul.f32 0.16666667, %v13236_v34  ;;  %v13247_v5 = vld [vmem:[#allocation67_spill] sm:$0xff]  ;;  %v3761_v34 = vmul.f32 0.16666667, %v13253_v37 }
 0x4c4   :  { %v3711_v22 = vadd.f32 %v13247_v5, %v13246_v28  ;;  %v13261_v5 = vld [vmem:[#allocation97_spill] sm:$0xff] }
 0x4c5   :  { %6079 = vmatmul.mubr.f32.vlgmr.msra.gmra.mrb[112].mxu1 %v13223_v35  ;;  %v3773_v1 = vadd.f32 %v3757_v43, %v3741_v3  ;;  %v13248_v35 = vld [vmem:[#allocation83_spill] sm:$0xff]  ;;  %v3712_v3 = vadd.f32 %v13258_v17, %v13257_v39  ;;  %v3764_v17 = vmul.f32 0.16666667, %v13168_v16  ;;  %v3734_v16 = vmul.f32 0.5, %v13167_v58  ;;  %v13273_v58 = vld [vmem:[#allocation82_spill] sm:$0xff] }
 0x4c6   :  { %6081 = vmatprep.mubr.f32.mxu1 %v13224_v38  ;;  %v3758_v38 = vmul.f32 0.16666667, %v13248_v35  ;;  %v3743_v27 = vadd.f32 %v3727_v33, %v3711_v22  ;;  %v3763_v22 = vmul.f32 0.16666667, %v13261_v5 }
 0x4c9   :  { %6082 = vmatmul.mubr.f32.gmra.mrb[114].mxu1 %v13225_v11 }
 0x4ca   :  { %6084 = vmatprep.mubr.f32.mxu1 %v13226_v23  ;;  %v3772_v23 = vadd.f32 %v3756_v6, %v3740_v24  ;;  %v3760_v6 = vmul.f32 0.16666667, %v13256_v63  ;;  %v13259_v24 = vld [vmem:[#allocation39_spill] sm:$0xff]  ;;  %v13267_v63 = vld [vmem:[#allocation45_spill] sm:$0xff] }
 0x4cb   :  { %v3731_v20 = vmul.f32 0.5, %v13259_v24  ;;  %v13268_v24 = vld [vmem:[#allocation29_spill] sm:$0xff] }
 0x4cd   :  { %6085 = vmatmul.mubr.f32.gmra.mrb[116].mxu1 %v13227_v9  ;;  %v13249_v9 = vld [vmem:[#allocation14_spill] sm:$0xff] }
 0x4ce   :  { %6087 = vmatprep.mubr.f32.mxu1 %v13228_v7  ;;  %v13250_v7 = vld [vmem:[#allocation66_spill] sm:$0xff] }
 0x4d1   :  { %6088 = vmatmul.mubr.f32.gmra.mrb[118].mxu1 %v13229_v51  ;;  %v3710_v51 = vadd.f32 %v13250_v7, %v13249_v9  ;;  %v13263_v9 = vld [vmem:[#allocation69_spill] sm:$0xff] }
 0x4d3   :  { %v3742_v48 = vadd.f32 %v3726_v32, %v3710_v51  ;;  %v13264_v51 = vld [vmem:[#allocation94_spill] sm:$0xff] }
 0x4d5   :  { %v3774_v4 = vadd.f32 %v3758_v38, %v3742_v48  ;;  %v13265_v48 = vld [vmem:[#allocation26_spill] sm:$0xff] }
 0x569   :  { %v11257_v57 = vpop.f32.mrb[96].mxu0 }
 0x56a   :  { %v11259_v10 = vpop.f32.mrb[97].mxu0 }
 0x56d   :  { %v11261_v41 = vpop.f32.mrb[98].mxu0 }
 0x56e   :  { %v11263_v0 = vpop.f32.mrb[99].mxu0 }
 0x571   :  { %v11265_v47 = vpop.f32.mrb[100].mxu0 }
 0x572   :  { %v11267_v45 = vpop.f32.mrb[101].mxu0 }
 0x575   :  { %v11273_v49 = vpop.f32.mrb[102].mxu0 }
 0x576   :  { %v11275_v53 = vpop.f32.mrb[103].mxu0 }
 0x578   :  { %v11278_v2 = vpop.f32.mrb[96].mxu1 }
 0x579   :  { %v3659_v26 = vsub.f32 %v11257_v57, %v11278_v2  ;;  %v11284_v14 = vpop.f32.mrb[97].mxu1 }
 0x57a   :  { %v3658_v42 = vsub.f32 %v11259_v10, %v11284_v14  ;;  %v11293_v55 = vpop.f32.mrb[104].mxu0 }
 0x57b   :  { %v11295_v31 = vadd.f32 %v3771_v21, %v3659_v26   ;;  %v11298_v59 = vpop.f32.mrb[105].mxu0  ;;  %v3775_v26 = vadd.f32 %v3759_v19, %v3743_v27  ;;  %v3762_v27 = vmul.f32 0.16666667, %v13264_v51 }
 0x57c   :  { %v11301_v25 = vadd.f32 %v13243_v62, %v3658_v42   ;;  %v11303_v29 = vpop.f32.mrb[98].mxu1  ;;  %v3745_v62 = vadd.f32 %v3729_v12, %v3713_v60 }
 0x57d   :  { %v3661_v13 = vsub.f32 %v11261_v41, %v11303_v29  ;;  %v11309_v8 = vpop.f32.mrb[99].mxu1 }
 0x57e   :  { %v3660_v11 = vsub.f32 %v11263_v0, %v11309_v8  ;;  %v11318_v18 = vpop.f32.mrb[106].mxu0  ;;  %v3777_v38 = vadd.f32 %v3761_v34, %v3745_v62 }
 0x57f   :  { %v11320_v30 = vadd.f32 %v3773_v1, %v3661_v13   ;;  %v11323_v15 = vpop.f32.mrb[107].mxu0  ;;  %v3744_v13 = vadd.f32 %v3728_v36, %v3712_v3  ;;  %v13260_v1 = vld [vmem:[#allocation44_spill] sm:$0xff]  ;;  %v3714_v36 = vadd.f32 %v13266_v40, %v13265_v48 }
 0x580   :  { %v11325_v61 = vadd.f32 %v3772_v23, %v3660_v11   ;;  %v11327_v50 = vpop.f32.mrb[100].mxu1  ;;  %v3730_v28 = vmul.f32 0.5, %v13260_v1  ;;  %v13262_v23 = vld [vmem:[#allocation24_spill] sm:$0xff] }
 0x581   :  { %v3663_v43 = vsub.f32 %v11265_v47, %v11327_v50  ;;  %v11333_v21 = vpop.f32.mrb[101].mxu1  ;;  %v3715_v7 = vadd.f32 %v13263_v9, %v13262_v23  ;;  %v3776_v12 = vadd.f32 %v3760_v6, %v3744_v13 }
 0x582   :  { %v3662_v42 = vsub.f32 %v11267_v45, %v11333_v21  ;;  %v11342_v54 = vpop.f32.mrb[108].mxu0  ;;  %v3746_v60 = vadd.f32 %v3730_v28, %v3714_v36 }
 0x583   :  { %v11344_v33 = vadd.f32 %v3775_v26, %v3663_v43   ;;  %v11347_v32 = vpop.f32.mrb[109].mxu0  ;;  %v3747_v26 = vadd.f32 %v3731_v20, %v3715_v7  ;;  %v13269_v20 = vld [vmem:[#allocation72_spill] sm:$0xff] }
 0x584   :  { %v11349_v56 = vadd.f32 %v3774_v4, %v3662_v42   ;;  %v11351_v19 = vpop.f32.mrb[102].mxu1  ;;  %v3732_v42 = vmul.f32 0.5, %v13267_v63  ;;  %v3778_v62 = vadd.f32 %v3762_v27, %v3746_v60  ;;  %v3716_v13 = vadd.f32 %v13269_v20, %v13268_v24  ;;  %v13270_v27 = vld [vmem:[#allocation34_spill] sm:$0xff]  ;;  %v13275_v20 = vld [vmem:[#allocation17_spill] sm:$0xff] }
 0x585   :  { %v3665_v35 = vsub.f32 %v11273_v49, %v11351_v19  ;;  %v11357_v11 = vpop.f32.mrb[103].mxu1  ;;  %v3779_v4 = vadd.f32 %v3763_v22, %v3747_v26 }
 0x586   :  { %v3664_v46 = vsub.f32 %v11275_v53, %v11357_v11  ;;  %v11366_v37 = vpop.f32.mrb[110].mxu0  ;;  %v3748_v23 = vadd.f32 %v3732_v42, %v3716_v13 }
 0x587   :  { %v11368_v43 = vadd.f32 %v3777_v38, %v3665_v35   ;;  %v11370_v34 = vpop.f32.mrb[111].mxu0 }
 0x588   :  { %v11372_v44 = vadd.f32 %v3776_v12, %v3664_v46   ;;  %v11374_v52 = vpop.f32.mrb[104].mxu1  ;;  %v13271_v46 = vld [vmem:[#allocation71_spill] sm:$0xff]  ;;  %v3780_v26 = vadd.f32 %v3764_v17, %v3748_v23 }
 0x589   :  { %v3667_v6 = vsub.f32 %v11293_v55, %v11374_v52  ;;  %v11379_v39 = vpop.f32.mrb[105].mxu1  ;;  %v3718_v12 = vadd.f32 %v13271_v46, %v13270_v27 }
 0x58a   :  { %v3666_v3 = vsub.f32 %v11298_v59, %v11379_v39  ;;  %v6068_v1 = vpop.f32.mrb[112].mxu0 }
 0x58b   :  { %v11386_v5 = vadd.f32 %v3779_v4, %v3667_v6   ;;  %v3675_v28 = vsub.f32 %v6068_v1, %v11257_v57  ;;  %v3579_v35 = vpop.f32.mrb[113].mxu0  ;;  %v13272_v57 = vld [vmem:[#allocation114_spill] sm:$0xff]  ;;  %v3750_v24 = vadd.f32 %v3734_v16, %v3718_v12  ;;  %v13277_v16 = vld [vmem:[#allocation92_spill] sm:$0xff] }
 0x58c   :  { %v11389_v38 = vadd.f32 %v3778_v62, %v3666_v3   ;;  %v11391_v22 = vpop.f32.mrb[106].mxu1  ;;  %v3674_v9 = vsub.f32 %v3579_v35, %v11259_v10  ;;  %v3766_v40 = vmul.f32 0.16666667, %v13272_v57  ;;  %v13274_v10 = vld [vmem:[#allocation36_spill] sm:$0xff] }
 0x58d   :  { %v3669_v7 = vsub.f32 %v11318_v18, %v11391_v22  ;;  %v3468_v51 = vpop.f32.mrb[107].mxu1  ;;  %v3691_v48 = vsub.f32 %v3675_v28, %v11278_v2 }
 0x58e   :  { %v3668_v36 = vsub.f32 %v11323_v15, %v3468_v51  ;;  %v3690_v60 = vsub.f32 %v3674_v9, %v11284_v14  ;;  %v6071_v63 = vpop.f32.mrb[114].mxu0  ;;  %v3782_v23 = vadd.f32 %v3766_v40, %v3750_v24 }
 0x58f   :  { %v11404_v42 = vadd.f32 %v13273_v58, %v3669_v7   ;;  %v11407_v6 = vadd.f32 %v13274_v10, %v3691_v48   ;;  %v3677_v4 = vsub.f32 %v6071_v63, %v11261_v41  ;;  %v3589_v3 = vpop.f32.mrb[115].mxu0  ;;  %v13276_v7 = vld [vmem:[#allocation76_spill] sm:$0xff] }
 0x590   :  { %v11410_v62 = vadd.f32 %v3780_v26, %v3668_v36   ;;  %v6030_v2 = vpop.f32.mrb[108].mxu1  ;;  %v11413_v13 = vadd.f32 %v13275_v20, %v3690_v60   ;;  %v3676_v17 = vsub.f32 %v3589_v3, %v11263_v0  ;;  %v13278_v36 = vld [vmem:[#allocation30_spill] sm:$0xff]  ;;  %v13280_v3 = vld [vmem:[#allocation137_spill] sm:$0xff] }
 0x591   :  { %v3671_v14 = vsub.f32 %v11342_v54, %v6030_v2  ;;  %v3478_v1 = vpop.f32.mrb[109].mxu1  ;;  %v3693_v28 = vsub.f32 %v3677_v4, %v11303_v29 }
 0x592   :  { %v3670_v35 = vsub.f32 %v11347_v32, %v3478_v1  ;;  %v3692_v41 = vsub.f32 %v3676_v17, %v11309_v8  ;;  %v6074_v9 = vpop.f32.mrb[116].mxu0 }
 0x593   :  { %v11421_v27 = vadd.f32 %v13276_v7, %v3671_v14   ;;  %v11424_v46 = vadd.f32 %v13277_v16, %v3693_v28   ;;  %v3679_v12 = vsub.f32 %v6074_v9, %v11265_v47  ;;  %v3599_v0 = vpop.f32.mrb[117].mxu0  ;;  %v13279_v47 = vld [vmem:[#allocation89_spill] sm:$0xff] }
 0x594   :  { %v11427_v48 = vadd.f32 %v3782_v23, %v3670_v35   ;;  %v6033_v57 = vpop.f32.mrb[110].mxu1  ;;  %v11430_v29 = vadd.f32 %v13278_v36, %v3692_v41   ;;  %v3678_v40 = vsub.f32 %v3599_v0, %v11267_v45  ;;  %v13281_v45 = vld [vmem:[#allocation134_spill] sm:$0xff]  ;;  %v13282_v35 = vld [vmem:[#allocation104_spill] sm:$0xff] }
 0x595   :  { %v3673_v8 = vsub.f32 %v11366_v37, %v6033_v57  ;;  %v3488_v26 = vpop.f32.mrb[111].mxu1  ;;  %v3695_v60 = vsub.f32 %v3679_v12, %v11327_v50  ;;  %v13283_v12 = vld [vmem:[#allocation118_spill] sm:$0xff] }
 0x596   :  { %v3672_v63 = vsub.f32 %v11370_v34, %v3488_v26  ;;  %v3694_v58 = vsub.f32 %v3678_v40, %v11333_v21  ;;  %v6077_v10 = vpop.f32.mrb[118].mxu0 }
 0x597   :  { %v11438_v4 = vadd.f32 %v13279_v47, %v3673_v8   ;;  %v11441_v24 = vadd.f32 %v13280_v3, %v3695_v60   ;;  %v3681_v20 = vsub.f32 %v6077_v10, %v11273_v49  ;;  %v3609_v17 = vpop.f32.mrb[119].mxu0  ;;  %v13284_v8 = vld [vmem:[#allocation107_spill] sm:$0xff]  ;;  %v13287_v3 = vld [vmem:[#allocation140_spill] sm:$0xff] }
 0x598   :  { %v11445_v14 = vadd.f32 %v13281_v45, %v3672_v63   ;;  %v6080_v28 = vpop.f32.mrb[112].mxu1  ;;  %v11448_v50 = vadd.f32 %v13282_v35, %v3694_v58   ;;  %v3680_v23 = vsub.f32 %v3609_v17, %v11275_v53  ;;  %v13285_v53 = vld [vmem:[#allocation136_spill] sm:$0xff]  ;;  %v13288_v45 = vld [vmem:[#allocation6_spill] sm:$0xff] }
 0x599   :  { %v3683_v21 = vsub.f32 %v6080_v28, %v11293_v55  ;;  %v3619_v41 = vpop.f32.mrb[113].mxu1  ;;  %v3697_v9 = vsub.f32 %v3681_v20, %v11351_v19 }
 0x59a   :  { %v3682_v7 = vsub.f32 %v3619_v41, %v11298_v59  ;;  %v3696_v16 = vsub.f32 %v3680_v23, %v11357_v11  ;;  %v13286_v59 = vld [vmem:[#allocation40_spill] sm:$0xff]  ;;  %v13289_v41 = vld [vmem:[#allocation141_spill] sm:$0xff] }
 0x59b   :  { %v3699_v49 = vsub.f32 %v3683_v21, %v11374_v52  ;;  %v11457_v0 = vadd.f32 %v13283_v12, %v3697_v9  }
 0x59c   :  { %v3698_v36 = vsub.f32 %v3682_v7, %v11379_v39  ;;  %v6083_v40 = vpop.f32.mrb[114].mxu1  ;;  %v11461_v60 = vadd.f32 %v13284_v8, %v3696_v16  }
 0x59d   :  { %v11464_v55 = vadd.f32 %v13285_v53, %v3699_v49   ;;  %v3685_v19 = vsub.f32 %v6083_v40, %v11318_v18  ;;  %v3629_v63 = vpop.f32.mrb[115].mxu1  ;;  %v13292_v40 = vld [vmem:[#allocation143_spill] sm:$0xff] }
 0x59e   :  { %v3874_v58 = vadd.f32 %v13286_v59, %v3698_v36   ;;  %v3684_v11 = vsub.f32 %v3629_v63, %v11323_v15  ;;  %v13302_v63 = vmov %v11461_v60  ;;  %v13303_v59 = vmov %v11441_v24 }
 0x59f   :  { %v3701_v52 = vsub.f32 %v3685_v19, %v11391_v22  ;;  %v13290_v22 = vld [vmem:[#allocation10_spill] sm:$0xff]  ;;  %v13301_v19 = vmov %v11457_v0 }
 0x5a0   :  { %v3700_v10 = vsub.f32 %v3684_v11, %v3468_v51  ;;  %v6086_v47 = vpop.f32.mrb[116].mxu1  ;;  %v13300_v53 = vmov %v3874_v58  ;;  %v13304_v11 = vmov %v11448_v50 }
 0x5a1   :  { %v3877_v39 = vadd.f32 %v13287_v3, %v3701_v52   ;;  %v3687_v20 = vsub.f32 %v6086_v47, %v11342_v54  ;;  %v3639_v17 = vpop.f32.mrb[117].mxu1  ;;  %v13291_v54 = vld [vmem:[#allocation126_spill] sm:$0xff]  ;;  %v13305_v52 = vmov %v11424_v46  ;;  %v13307_v47 = vmov %v11407_v6 }
 0x5a2   :  { %v3876_v28 = vadd.f32 %v13288_v45, %v3700_v10   ;;  %v3686_v35 = vsub.f32 %v3639_v17, %v11347_v32  ;;  %v13306_v10 = vmov %v11430_v29  ;;  %v13308_v3 = vmov %v11413_v13 }
 0x5a3   :  { %v3703_v23 = vsub.f32 %v3687_v20, %v6030_v2  ;;  %v13309_v20 = vmov %v11438_v4  ;;  %v13310_v17 = vmov %v11445_v14  ;;  %v13311_v45 = vmov %v11421_v27 }
 0x5a4   :  { %v3702_v18 = vsub.f32 %v3686_v35, %v3478_v1  ;;  %v6089_v21 = vpop.f32.mrb[118].mxu1  ;;  %v13312_v35 = vmov %v11427_v48 }
 0x5a5   :  { %v3879_v9 = vadd.f32 %v13289_v41, %v3703_v23   ;;  %v3689_v15 = vsub.f32 %v6089_v21, %v11366_v37  ;;  %v3649_v7 = vpop.f32.mrb[119].mxu1  ;;  %v13313_v23 = vmov %v11404_v42  ;;  %v13315_v21 = vmov %v11386_v5 }
 0x5a6   :  { %v3878_v51 = vadd.f32 %v13290_v22, %v3702_v18   ;;  %v3688_v16 = vsub.f32 %v3649_v7, %v11370_v34  ;;  %v13297_v34 = vmov %v3877_v39  ;;  %v13314_v18 = vmov %v11410_v62  ;;  %4494 = sbr.rel (%p4673_p0) target bundleno = 1754 (0x6da), region = 47 }
 0x5a7   :  { %v3705_v49 = vsub.f32 %v3689_v15, %v6033_v57  ;;  %v13295_v37 = vmov %v3879_v9  ;;  %v13298_v57 = vmov %v3876_v28  ;;  %v13316_v41 = vmov %v11389_v38 }
 0x5a8   :  { %v3704_v12 = vsub.f32 %v3688_v16, %v3488_v26  ;;  %v13296_v1 = vmov %v3878_v51  ;;  %v13299_v26 = vmov %v11464_v55  ;;  %v13317_v15 = vmov %v11368_v43 }
 0x5a9   :  { %v3881_v36 = vadd.f32 %v13291_v54, %v3705_v49   ;;  %v13318_v7 = vmov %v11372_v44  ;;  %v13319_v22 = vmov %v11344_v33  ;;  %v13320_v16 = vmov %v11349_v56 }
 0x5aa   :  { %v3880_v8 = vadd.f32 %v13292_v40, %v3704_v12   ;;  %v13321_v49 = vmov %v11320_v30  ;;  %v13322_v12 = vmov %v11325_v61  ;;  %v13323_v54 = vmov %v11295_v31 }
 0x5ab   :  { %v13293_v32 = vmov %v3881_v36  ;;  %v13324_v40 = vmov %v11301_v25 }
 0x5ac   :  { %v13294_v2 = vmov %v3880_v8 }
 0x5ad   :  { %s11665_s23 = smov 0  }
 0x5ae LB: > { %v6738_v32 = vpack.c.bf16 %v7810_v31, %v7814_v25  ;;  %v6770_v2 = vpack.c.bf16 %v7746_v6, %v7750_v13  ;;  %6122 = vmatprep.mubr.f32.mxu0 %v7814_v25  ;;  %6178 = vmatprep.mubr.f32.mxu1 %v7750_v13  ;;  %v6742_v37 = vpack.c.bf16 %v7802_v30, %v7806_v61  ;;  %s3886_s24 = sadd.s32 1, %s7818_s23   ;;  %s7818_s23 = sphi %s11665_s23, %s13382_s23   ;;  %v7814_v25 = vphi %v11301_v25, %v13381_v25   ;;  %v7810_v31 = vphi %v11295_v31, %v13380_v31   ;;  %v7806_v61 = vphi %v11325_v61, %v13379_v61   ;;  %v7802_v30 = vphi %v11320_v30, %v13378_v30   ;;  %v7798_v56 = vphi %v11349_v56, %v13377_v56   ;;  %v7794_v33 = vphi %v11344_v33, %v13376_v33   ;;  %v7790_v44 = vphi %v11372_v44, %v13375_v44   ;;  %v7786_v43 = vphi %v11368_v43, %v13374_v43   ;;  %v7782_v38 = vphi %v11389_v38, %v13373_v38   ;;  %v7778_v5 = vphi %v11386_v5, %v13372_v5   ;;  %v7774_v62 = vphi %v11410_v62, %v13371_v62   ;;  %v7770_v42 = vphi %v11404_v42, %v13370_v42   ;;  %v7766_v48 = vphi %v11427_v48, %v13369_v48   ;;  %v7762_v27 = vphi %v11421_v27, %v13368_v27   ;;  %v7758_v14 = vphi %v11445_v14, %v13367_v14   ;;  %v7754_v4 = vphi %v11438_v4, %v13366_v4   ;;  %v7750_v13 = vphi %v11413_v13, %v13365_v13   ;;  %v7746_v6 = vphi %v11407_v6, %v13364_v6   ;;  %v7742_v29 = vphi %v11430_v29, %v13363_v29   ;;  %v7738_v46 = vphi %v11424_v46, %v13362_v46   ;;  %v7734_v50 = vphi %v11448_v50, %v13361_v50   ;;  %v7730_v24 = vphi %v11441_v24, %v13360_v24   ;;  %v7726_v60 = vphi %v11461_v60, %v13359_v60   ;;  %v7722_v0 = vphi %v11457_v0, %v13358_v0   ;;  %v7718_v58 = vphi %v3874_v58, %v13357_v58   ;;  %v7714_v55 = vphi %v11464_v55, %v13356_v55   ;;  %v7710_v28 = vphi %v3876_v28, %v13355_v28   ;;  %v7706_v39 = vphi %v3877_v39, %v13354_v39   ;;  %v7702_v51 = vphi %v3878_v51, %v13353_v51   ;;  %v7698_v9 = vphi %v3879_v9, %v13352_v9   ;;  %v7694_v8 = vphi %v3880_v8, %v13351_v8   ;;  %v7690_v36 = vphi %v3881_v36, %v13350_v36  }
 0x5af   : > { %v6774_v1 = vpack.c.bf16 %v7738_v46, %v7742_v29  ;;  %v6746_v34 = vpack.c.bf16 %v7794_v33, %v7798_v56  ;;  %v6778_v57 = vpack.c.bf16 %v7730_v24, %v7734_v50  ;;  %v6750_v26 = vpack.c.bf16 %v7786_v43, %v7790_v44  ;;  %p11974_p1 = scmp.ge.s32.totalorder %s3886_s24, %s12289_s0  ;;  %s13382_s23 = smov %s3886_s24 }
 0x5b0   : > { %6739 = vmatprep.subr.bf16.mxu0 %v6738_v32  ;;  %6771 = vmatprep.subr.bf16.mxu1 %v6770_v2  ;;  %v6782_v53 = vpack.c.bf16 %v7722_v0, %v7726_v60  ;;  %v6754_v19 = vpack.c.bf16 %v7778_v5, %v7782_v38  ;;  %v6786_v63 = vpack.c.bf16 %v7714_v55, %v7718_v58 }
 0x5b1   : > { %6741 = vmatpush3.bf16.msra.mxu0 %v6738_v32  ;;  %6773 = vmatpush3.bf16.msra.mxu1 %v6770_v2  ;;  %v6758_v59 = vpack.c.bf16 %v7770_v42, %v7774_v62  ;;  %v6790_v11 = vpack.c.bf16 %v7706_v39, %v7710_v28  ;;  %v6762_v52 = vpack.c.bf16 %v7762_v27, %v7766_v48 }
 0x5b2   : > { %6743 = vmatprep.subr.bf16.mxu0 %v6742_v37  ;;  %6775 = vmatprep.subr.bf16.mxu1 %v6774_v1  ;;  %v6794_v10 = vpack.c.bf16 %v7698_v9, %v7702_v51  ;;  %v11788_v47 = vadd.f32 %v7750_v13, %v7814_v25  ;;  %v11792_v3 = vadd.f32 %v7746_v6, %v7810_v31 }
 0x5b3   : > { %v6766_v20 = vpack.c.bf16 %v7754_v4, %v7758_v14  ;;  %v6798_v17 = vpack.c.bf16 %v7690_v36, %v7694_v8  ;;  %v11802_v13 = vadd.f32 %v7742_v29, %v7806_v61  ;;  %v11806_v45 = vadd.f32 %v7738_v46, %v7802_v30 }
 0x5b4   : > { %v6802_v25 = vpack.c.bf16 %v11792_v3, %v11788_v47  ;;  %v11810_v35 = vadd.f32 %v7734_v50, %v7798_v56  ;;  %v11814_v23 = vadd.f32 %v7730_v24, %v7794_v33  ;;  %v11824_v21 = vadd.f32 %v7726_v60, %v7790_v44 }
 0x5b5   : > { %6745 = vmatpush3.bf16.msra.mxu0 %v6742_v37  ;;  %6777 = vmatpush3.bf16.msra.mxu1 %v6774_v1  ;;  %v6806_v18 = vpack.c.bf16 %v11806_v45, %v11802_v13  ;;  %v11828_v41 = vadd.f32 %v7722_v0, %v7786_v43 }
 0x5b6   : > { %6747 = vmatprep.subr.bf16.mxu0 %v6746_v34  ;;  %6779 = vmatprep.subr.bf16.mxu1 %v6778_v57 }
 0x5b9   : > { %6749 = vmatpush3.bf16.msra.mxu0 %v6746_v34  ;;  %6781 = vmatpush3.bf16.msra.mxu1 %v6778_v57 }
 0x5ba   : > { %6751 = vmatprep.subr.bf16.mxu0 %v6750_v26  ;;  %6783 = vmatprep.subr.bf16.mxu1 %v6782_v53 }
 0x5bd   : > { %6753 = vmatpush3.bf16.msra.mxu0 %v6750_v26  ;;  %6785 = vmatpush3.bf16.msra.mxu1 %v6782_v53 }
 0x5be   : > { %6755 = vmatprep.subr.bf16.mxu0 %v6754_v19  ;;  %6787 = vmatprep.subr.bf16.mxu1 %v6786_v63 }
 0x5c1   : > { %6757 = vmatpush3.bf16.msra.mxu0 %v6754_v19  ;;  %6789 = vmatpush3.bf16.msra.mxu1 %v6786_v63 }
 0x5c2   : > { %6759 = vmatprep.subr.bf16.mxu0 %v6758_v59  ;;  %6791 = vmatprep.subr.bf16.mxu1 %v6790_v11 }
 0x5c5   : > { %6761 = vmatpush3.bf16.msra.mxu0 %v6758_v59  ;;  %6793 = vmatpush3.bf16.msra.mxu1 %v6790_v11 }
 0x5c6   : > { %6763 = vmatprep.subr.bf16.mxu0 %v6762_v52  ;;  %6795 = vmatprep.subr.bf16.mxu1 %v6794_v10 }
 0x5c9   : > { %6765 = vmatpush3.bf16.msra.mxu0 %v6762_v52  ;;  %6797 = vmatpush3.bf16.msra.mxu1 %v6794_v10 }
 0x5ca   : > { %6767 = vmatprep.subr.bf16.mxu0 %v6766_v20  ;;  %6799 = vmatprep.subr.bf16.mxu1 %v6798_v17 }
 0x5cd   : > { %6769 = vmatpush3.bf16.msra.mxu0 %v6766_v20  ;;  %6801 = vmatpush3.bf16.msra.mxu1 %v6798_v17 }
 0x5ce   : > { %6803 = vmatprep.subr.bf16.mxu0 %v6802_v25  ;;  %6850 = vmatprep.subr.bf16.mxu1 %v6802_v25 }
 0x5d0   : > { %6123 = vmatmul.mubr.f32.vlgmr.msra.gmra.mrb[0].mxu0 %v7810_v31  ;;  %6179 = vmatmul.mubr.f32.vlgmr.msra.gmra.mrb[0].mxu1 %v7746_v6  ;;  %v6810_v31 = vpack.c.bf16 %v11814_v23, %v11810_v35  ;;  %v4220_v6 = vadd.f32 %v7714_v55, %v7778_v5 }
 0x5d1   : > { %6805 = vmatpush3.bf16.msra.mxu0 %v6802_v25  ;;  %6858 = vmatpush3.bf16.msra.mxu1 %v6802_v25 }
 0x5d2   : > { %6125 = vmatprep.mubr.f32.mxu0 %v7806_v61  ;;  %6181 = vmatprep.mubr.f32.mxu1 %v7742_v29  ;;  %v4219_v61 = vadd.f32 %v7718_v58, %v7782_v38  ;;  %v6814_v29 = vpack.c.bf16 %v11828_v41, %v11824_v21 }
 0x5d3   : > { %6807 = vmatprep.subr.bf16.mxu0 %v6806_v18  ;;  %6851 = vmatprep.subr.bf16.mxu1 %v6806_v18 }
 0x5d4   : > { %6126 = vmatmul.mubr.f32.gmra.mrb[2].mxu0 %v7802_v30  ;;  %6182 = vmatmul.mubr.f32.gmra.mrb[2].mxu1 %v7738_v46  ;;  %v4221_v30 = vadd.f32 %v7710_v28, %v7774_v62  ;;  %v6818_v46 = vpack.c.bf16 %v4220_v6, %v4219_v61 }
 0x5d5   : > { %6809 = vmatpush3.bf16.msra.mxu0 %v6806_v18  ;;  %6859 = vmatpush3.bf16.msra.mxu1 %v6806_v18 }
 0x5d6   : > { %6128 = vmatprep.mubr.f32.mxu0 %v7798_v56  ;;  %6184 = vmatprep.mubr.f32.mxu1 %v7734_v50  ;;  %v4222_v56 = vadd.f32 %v7706_v39, %v7770_v42 }
 0x5d7   : > { %6811 = vmatprep.subr.bf16.mxu0 %v6810_v31  ;;  %6852 = vmatprep.subr.bf16.mxu1 %v6810_v31 }
 0x5d8   : > { %6129 = vmatmul.mubr.f32.gmra.mrb[4].mxu0 %v7794_v33  ;;  %6185 = vmatmul.mubr.f32.gmra.mrb[4].mxu1 %v7730_v24  ;;  %v4223_v33 = vadd.f32 %v7702_v51, %v7766_v48  ;;  %v6822_v24 = vpack.c.bf16 %v4222_v56, %v4221_v30 }
 0x5d9   : > { %6813 = vmatpush3.bf16.msra.mxu0 %v6810_v31  ;;  %6860 = vmatpush3.bf16.msra.mxu1 %v6810_v31 }
 0x5da   : > { %6131 = vmatprep.mubr.f32.mxu0 %v7790_v44  ;;  %6187 = vmatprep.mubr.f32.mxu1 %v7726_v60  ;;  %v4224_v44 = vadd.f32 %v7698_v9, %v7762_v27 }
 0x5db   : > { %6815 = vmatprep.subr.bf16.mxu0 %v6814_v29  ;;  %6853 = vmatprep.subr.bf16.mxu1 %v6814_v29 }
 0x5dc   : > { %6132 = vmatmul.mubr.f32.gmra.mrb[6].mxu0 %v7786_v43  ;;  %6188 = vmatmul.mubr.f32.gmra.mrb[6].mxu1 %v7722_v0  ;;  %v4225_v43 = vadd.f32 %v7694_v8, %v7758_v14  ;;  %v6826_v50 = vpack.c.bf16 %v4224_v44, %v4223_v33 }
 0x5dd   : > { %6817 = vmatpush3.bf16.msra.mxu0 %v6814_v29  ;;  %6861 = vmatpush3.bf16.msra.mxu1 %v6814_v29 }
 0x5de   : > { %6134 = vmatprep.mubr.f32.mxu0 %v7782_v38  ;;  %6190 = vmatprep.mubr.f32.mxu1 %v7718_v58  ;;  %v4226_v38 = vadd.f32 %v7690_v36, %v7754_v4 }
 0x5df   : > { %6819 = vmatprep.subr.bf16.mxu0 %v6818_v46  ;;  %6854 = vmatprep.subr.bf16.mxu1 %v6818_v46 }
 0x5e0   : > { %6135 = vmatmul.mubr.f32.gmra.mrb[8].mxu0 %v7778_v5  ;;  %6191 = vmatmul.mubr.f32.gmra.mrb[8].mxu1 %v7714_v55  ;;  %v6830_v5 = vpack.c.bf16 %v4226_v38, %v4225_v43 }
 0x5e1   : > { %6821 = vmatpush3.bf16.msra.mxu0 %v6818_v46  ;;  %6862 = vmatpush3.bf16.msra.mxu1 %v6818_v46 }
 0x5e2   : > { %6137 = vmatprep.mubr.f32.mxu0 %v7774_v62  ;;  %6193 = vmatprep.mubr.f32.mxu1 %v7710_v28 }
 0x5e3   : > { %6823 = vmatprep.subr.bf16.mxu0 %v6822_v24  ;;  %6855 = vmatprep.subr.bf16.mxu1 %v6822_v24 }
 0x5e4   : > { %6138 = vmatmul.mubr.f32.gmra.mrb[10].mxu0 %v7770_v42  ;;  %6194 = vmatmul.mubr.f32.gmra.mrb[10].mxu1 %v7706_v39 }
 0x5e5   : > { %6825 = vmatpush3.bf16.msra.mxu0 %v6822_v24  ;;  %6863 = vmatpush3.bf16.msra.mxu1 %v6822_v24 }
 0x5e6   : > { %6140 = vmatprep.mubr.f32.mxu0 %v7766_v48  ;;  %6196 = vmatprep.mubr.f32.mxu1 %v7702_v51 }
 0x5e7   : > { %6827 = vmatprep.subr.bf16.mxu0 %v6826_v50  ;;  %6856 = vmatprep.subr.bf16.mxu1 %v6826_v50 }
 0x5e8   : > { %6141 = vmatmul.mubr.f32.gmra.mrb[12].mxu0 %v7762_v27  ;;  %6197 = vmatmul.mubr.f32.gmra.mrb[12].mxu1 %v7698_v9 }
 0x5e9   : > { %6829 = vmatpush3.bf16.msra.mxu0 %v6826_v50  ;;  %6864 = vmatpush3.bf16.msra.mxu1 %v6826_v50 }
 0x5ea   : > { %6143 = vmatprep.mubr.f32.mxu0 %v7758_v14  ;;  %6199 = vmatprep.mubr.f32.mxu1 %v7694_v8 }
 0x5eb   : > { %6831 = vmatprep.subr.bf16.mxu0 %v6830_v5  ;;  %6857 = vmatprep.subr.bf16.mxu1 %v6830_v5 }
 0x5ec   : > { %6144 = vmatmul.mubr.f32.gmra.mrb[14].mxu0 %v7754_v4  ;;  %6200 = vmatmul.mubr.f32.gmra.mrb[14].mxu1 %v7690_v36 }
 0x5ed   : > { %6833 = vmatpush3.bf16.msra.mxu0 %v6830_v5  ;;  %6865 = vmatpush3.bf16.msra.mxu1 %v6830_v5 }
 0x5ee   : > { %6234 = vmatprep.mubr.f32.mxu0 %v11788_v47  ;;  %6246 = vmatprep.mubr.f32.mxu1 %v4219_v61 }
 0x5f0   : > { %6235 = vmatmul.mubr.f32.vlgmr.msra.gmra.mrb[16].mxu0 %v11792_v3  ;;  %6247 = vmatmul.mubr.f32.vlgmr.msra.gmra.mrb[16].mxu1 %v4220_v6 }
 0x5f1   : > { %6237 = vmatprep.mubr.f32.mxu0 %v11802_v13  ;;  %6249 = vmatprep.mubr.f32.mxu1 %v4221_v30 }
 0x5f4   : > { %6238 = vmatmul.mubr.f32.gmra.mrb[18].mxu0 %v11806_v45  ;;  %6250 = vmatmul.mubr.f32.gmra.mrb[18].mxu1 %v4222_v56 }
 0x5f5   : > { %6240 = vmatprep.mubr.f32.mxu0 %v11810_v35  ;;  %6252 = vmatprep.mubr.f32.mxu1 %v4223_v33 }
 0x5f8   : > { %6241 = vmatmul.mubr.f32.gmra.mrb[20].mxu0 %v11814_v23  ;;  %6253 = vmatmul.mubr.f32.gmra.mrb[20].mxu1 %v4224_v44 }
 0x5f9   : > { %6243 = vmatprep.mubr.f32.mxu0 %v11824_v21  ;;  %6255 = vmatprep.mubr.f32.mxu1 %v4225_v43 }
 0x5fc   : > { %6244 = vmatmul.mubr.f32.gmra.mrb[22].mxu0 %v11828_v41  ;;  %6256 = vmatmul.mubr.f32.gmra.mrb[22].mxu1 %v4226_v38 }
 0x6a3   : > { %v6124_v42 = vpop.f32.mrb[0].mxu0  ;;  %v6180_v62 = vpop.f32.mrb[0].mxu1 }
 0x6a4   : > { %v11884_v31 = vsub.f32 %v6124_v42, %v6180_v62   ;;  %v3987_v27 = vpop.f32.mrb[1].mxu0  ;;  %v4132_v48 = vpop.f32.mrb[1].mxu1 }
 0x6a5   : > { %v11886_v25 = vsub.f32 %v3987_v27, %v4132_v48  }
 0x6a6   : > { %13325 = vst [vmem:[#allocation151_spill] sm:$0xff] %v11884_v31 }
 0x6a7   : > { %13326 = vst [vmem:[#allocation152_spill] sm:$0xff] %v11886_v25  ;;  %v11888_v4 = vpop.f32.mrb[2].mxu0  ;;  %v6183_v14 = vpop.f32.mrb[2].mxu1 }
 0x6a8   : > { %v11891_v30 = vsub.f32 %v11888_v4, %v6183_v14   ;;  %v3997_v0 = vpop.f32.mrb[3].mxu0  ;;  %v4142_v60 = vpop.f32.mrb[3].mxu1 }
 0x6a9   : > { %v11893_v61 = vsub.f32 %v3997_v0, %v4142_v60  }
 0x6aa   : > { %13327 = vst [vmem:[#allocation153_spill] sm:$0xff] %v11891_v30 }
 0x6ab   : > { %13328 = vst [vmem:[#allocation154_spill] sm:$0xff] %v11893_v61  ;;  %v11895_v55 = vpop.f32.mrb[4].mxu0  ;;  %v11897_v58 = vpop.f32.mrb[4].mxu1 }
 0x6ac   : > { %v11901_v33 = vsub.f32 %v11895_v55, %v11897_v58   ;;  %v11903_v39 = vpop.f32.mrb[5].mxu0  ;;  %v11905_v28 = vpop.f32.mrb[5].mxu1 }
 0x6ad   : > { %v11909_v56 = vsub.f32 %v11903_v39, %v11905_v28  }
 0x6ae   : > { %13329 = vst [vmem:[#allocation155_spill] sm:$0xff] %v11901_v33 }
 0x6af   : > { %13330 = vst [vmem:[#allocation156_spill] sm:$0xff] %v11909_v56  ;;  %v11911_v9 = vpop.f32.mrb[6].mxu0  ;;  %v11913_v51 = vpop.f32.mrb[6].mxu1 }
 0x6b0   : > { %v11917_v43 = vsub.f32 %v11911_v9, %v11913_v51   ;;  %v11919_v36 = vpop.f32.mrb[7].mxu0  ;;  %v11921_v8 = vpop.f32.mrb[7].mxu1 }
 0x6b1   : > { %v11925_v44 = vsub.f32 %v11919_v36, %v11921_v8  }
 0x6b2   : > { %13331 = vst [vmem:[#allocation157_spill] sm:$0xff] %v11917_v43 }
 0x6b3   : > { %13332 = vst [vmem:[#allocation158_spill] sm:$0xff] %v11925_v44  ;;  %v6136_v32 = vpop.f32.mrb[8].mxu0  ;;  %v6192_v2 = vpop.f32.mrb[8].mxu1 }
 0x6b4   : > { %v11927_v5 = vsub.f32 %v6136_v32, %v6192_v2   ;;  %v4027_v37 = vpop.f32.mrb[9].mxu0  ;;  %v4172_v1 = vpop.f32.mrb[9].mxu1 }
 0x6b5   : > { %v11929_v38 = vsub.f32 %v4027_v37, %v4172_v1  }
 0x6b6   : > { %v13333_v21 = vmov %v11927_v5 }
 0x6b7   : > { %13334 = vst [vmem:[#allocation159_spill] sm:$0xff] %v11929_v38  ;;  %v6139_v34 = vpop.f32.mrb[10].mxu0  ;;  %v6195_v57 = vpop.f32.mrb[10].mxu1 }
 0x6b8   : > { %v11931_v26 = vsub.f32 %v6139_v34, %v6195_v57   ;;  %v4037_v53 = vpop.f32.mrb[11].mxu0  ;;  %v4182_v19 = vpop.f32.mrb[11].mxu1 }
 0x6b9   : > { %v11933_v63 = vsub.f32 %v4037_v53, %v4182_v19  }
 0x6ba   : > { %v13335_v23 = vmov %v11931_v26 }
 0x6bb   : > { %v13336_v18 = vmov %v11933_v63  ;;  %v6142_v59 = vpop.f32.mrb[12].mxu0  ;;  %v6198_v11 = vpop.f32.mrb[12].mxu1 }
 0x6bc   : > { %v11935_v52 = vsub.f32 %v6142_v59, %v6198_v11   ;;  %v4047_v10 = vpop.f32.mrb[13].mxu0  ;;  %v4192_v47 = vpop.f32.mrb[13].mxu1 }
 0x6bd   : > { %v11937_v3 = vsub.f32 %v4047_v10, %v4192_v47  }
 0x6be   : > { %v13337_v45 = vmov %v11935_v52 }
 0x6bf   : > { %v13338_v35 = vmov %v11937_v3  ;;  %v6145_v20 = vpop.f32.mrb[14].mxu0  ;;  %v6201_v17 = vpop.f32.mrb[14].mxu1 }
 0x6c0   : > { %v11939_v25 = vsub.f32 %v6145_v20, %v6201_v17   ;;  %v4057_v13 = vpop.f32.mrb[15].mxu0  ;;  %v4202_v31 = vpop.f32.mrb[15].mxu1 }
 0x6c1   : > { %v11941_v61 = vsub.f32 %v4057_v13, %v4202_v31  }
 0x6c2   : > { %v13339_v40 = vmov %v11939_v25 }
 0x6c3   : > { %v13340_v54 = vmov %v11941_v61  ;;  %v6236_v6 = vpop.f32.mrb[16].mxu0  ;;  %v6248_v29 = vpop.f32.mrb[16].mxu1 }
 0x6c4   : > { %v4389_v30 = vsub.f32 %v6236_v6, %v6124_v42  ;;  %v4397_v56 = vsub.f32 %v6248_v29, %v6136_v32  ;;  %v4293_v46 = vpop.f32.mrb[17].mxu0  ;;  %v4333_v33 = vpop.f32.mrb[17].mxu1 }
 0x6c5   : > { %v4388_v44 = vsub.f32 %v4293_v46, %v3987_v27  ;;  %v4396_v24 = vsub.f32 %v4333_v33, %v4027_v37 }
 0x6c6   : > { %v11943_v6 = vsub.f32 %v4389_v30, %v6180_v62   ;;  %v11945_v43 = vsub.f32 %v4397_v56, %v6192_v2  }
 0x6c7   : > { %v11947_v38 = vsub.f32 %v4388_v44, %v4132_v48   ;;  %v11949_v50 = vsub.f32 %v4396_v24, %v4172_v1   ;;  %v6239_v5 = vpop.f32.mrb[18].mxu0  ;;  %v6251_v52 = vpop.f32.mrb[18].mxu1  ;;  %v13375_v44 = vld [vmem:[#allocation158_spill] sm:$0xff] }
 0x6c8   : > { %v13341_v12 = vmov %v11943_v6  ;;  %v13342_v26 = vmov %v11945_v43  ;;  %v4391_v25 = vsub.f32 %v6239_v5, %v11888_v4  ;;  %v4399_v61 = vsub.f32 %v6251_v52, %v6139_v34  ;;  %v4303_v49 = vpop.f32.mrb[19].mxu0  ;;  %v4343_v42 = vpop.f32.mrb[19].mxu1  ;;  %v13374_v43 = vld [vmem:[#allocation157_spill] sm:$0xff] }
 0x6c9   : > { %v13343_v3 = vmov %v11947_v38  ;;  %v13344_v63 = vmov %v11949_v50  ;;  %v4390_v32 = vsub.f32 %v4303_v49, %v3997_v0  ;;  %v4398_v29 = vsub.f32 %v4343_v42, %v4037_v53  ;;  %v13373_v38 = vld [vmem:[#allocation159_spill] sm:$0xff] }
 0x6ca   : > { %v11952_v46 = vsub.f32 %v4391_v25, %v6183_v14   ;;  %v11954_v27 = vsub.f32 %v4399_v61, %v6195_v57   ;;  %v13370_v42 = vmov %v13335_v23  ;;  %v13372_v5 = vmov %v13333_v21  ;;  %v13379_v61 = vld [vmem:[#allocation154_spill] sm:$0xff]  ;;  %v13381_v25 = vld [vmem:[#allocation152_spill] sm:$0xff] }
 0x6cb   : > { %v11956_v62 = vsub.f32 %v4390_v32, %v4142_v60   ;;  %v11958_v2 = vsub.f32 %v4398_v29, %v4182_v19   ;;  %v6242_v48 = vpop.f32.mrb[20].mxu0  ;;  %v6254_v37 = vpop.f32.mrb[20].mxu1 }
 0x6cc   : > { %v13345_v16 = vmov %v11952_v46  ;;  %v13346_v22 = vmov %v11954_v27  ;;  %v4393_v1 = vsub.f32 %v6242_v48, %v11895_v55  ;;  %v4401_v6 = vsub.f32 %v6254_v37, %v6142_v59  ;;  %v4313_v30 = vpop.f32.mrb[21].mxu0  ;;  %v4353_v4 = vpop.f32.mrb[21].mxu1 }
 0x6cd   : > { %v13347_v7 = vmov %v11956_v62  ;;  %v13348_v15 = vmov %v11958_v2  ;;  %v4392_v34 = vsub.f32 %v4313_v30, %v11903_v39  ;;  %v4400_v56 = vsub.f32 %v4353_v4, %v4047_v10  ;;  %v13378_v30 = vld [vmem:[#allocation153_spill] sm:$0xff] }
 0x6ce   : > { %v4409_v49 = vsub.f32 %v4393_v1, %v11897_v58   ;;  %v4417_v53 = vsub.f32 %v4401_v6, %v6198_v11   ;;  %v13354_v39 = vmov %v13346_v22  ;;  %v13357_v58 = vmov %v13344_v63 }
 0x6cf   : > { %v4408_v52 = vsub.f32 %v4392_v34, %v11905_v28   ;;  %v4416_v57 = vsub.f32 %v4400_v56, %v4192_v47   ;;  %v6245_v14 = vpop.f32.mrb[22].mxu0  ;;  %v6257_v0 = vpop.f32.mrb[22].mxu1  ;;  %v13355_v28 = vmov %v13348_v15  ;;  %v13363_v29 = vmov %v13347_v7  ;;  %v13377_v56 = vld [vmem:[#allocation156_spill] sm:$0xff] }
 0x6d0   : > { %v4395_v60 = vsub.f32 %v6245_v14, %v11911_v9  ;;  %v4403_v19 = vsub.f32 %v6257_v0, %v6145_v20  ;;  %v4323_v46 = vpop.f32.mrb[23].mxu0  ;;  %v4363_v33 = vpop.f32.mrb[23].mxu1  ;;  %v13352_v9 = vmov %v4417_v53  ;;  %v13360_v24 = vmov %v4409_v49  ;;  %3888 = sbr.rel (!%p11974_p1) target bundleno = 1454 (0x5ae), region = 53 }
 0x6d1   : > { %v4394_v55 = vsub.f32 %v4323_v46, %v11919_v36  ;;  %v4402_v59 = vsub.f32 %v4363_v33, %v4057_v13  ;;  %v13361_v50 = vmov %v4408_v52  ;;  %v13362_v46 = vmov %v13345_v16  ;;  %v13376_v33 = vld [vmem:[#allocation155_spill] sm:$0xff] }
 0x6d2   : > { %v4411_v41 = vsub.f32 %v4395_v60, %v11913_v51   ;;  %v4419_v32 = vsub.f32 %v4403_v19, %v6201_v17   ;;  %v13353_v51 = vmov %v4416_v57  ;;  %v13364_v6 = vmov %v13341_v12 }
 0x6d3   : > { %v4410_v10 = vsub.f32 %v4394_v55, %v11921_v8   ;;  %v4418_v2 = vsub.f32 %v4402_v59, %v4202_v31   ;;  %v13356_v55 = vmov %v13342_v26  ;;  %v13365_v13 = vmov %v13343_v3  ;;  %v13380_v31 = vld [vmem:[#allocation151_spill] sm:$0xff] }
 0x6d4   : > { %v13350_v36 = vmov %v4419_v32  ;;  %v13358_v0 = vmov %v4411_v41  ;;  %v13366_v4 = vmov %v13339_v40  ;;  %v13367_v14 = vmov %v13340_v54 }
 0x6d5   : > { %v13351_v8 = vmov %v4418_v2  ;;  %v13359_v60 = vmov %v4410_v10  ;;  %v13368_v27 = vmov %v13337_v45  ;;  %v13369_v48 = vmov %v13338_v35 }
 0x6d6   : > { %v13371_v62 = vmov %v13336_v18  ;;  %v13383_v37 = vmov (%p11974_p1), %v4417_v53  ;;  %v13384_v1 = vmov (%p11974_p1), %v4416_v57  ;;  %v13385_v34 = vmov (%p11974_p1), %v13346_v22  ;;  %v13400_v22 = vld [vmem:[#allocation155_spill] sm:$0xff] (%p11974_p1) }
 0x6d7   :  { %v13386_v57 = vmov %v13348_v15  ;;  %v13387_v53 = vmov %v13344_v63  ;;  %v13388_v19 = vmov %v4411_v41  ;;  %v13389_v63 = vmov %v4410_v10  ;;  %v13397_v41 = vld [vmem:[#allocation159_spill] sm:$0xff]  ;;  %v13398_v15 = vld [vmem:[#allocation157_spill] sm:$0xff] }
 0x6d8   :  { %v13390_v59 = vmov %v4409_v49  ;;  %v13391_v11 = vmov %v4408_v52  ;;  %v13392_v52 = vmov %v13345_v16  ;;  %v13393_v10 = vmov %v13347_v7  ;;  %v13399_v7 = vld [vmem:[#allocation158_spill] sm:$0xff]  ;;  %v13401_v16 = vld [vmem:[#allocation156_spill] sm:$0xff]  ;;  %v13402_v49 = vld [vmem:[#allocation153_spill] sm:$0xff] }
 0x6d9   :  { %v13394_v47 = vmov %v13341_v12  ;;  %v13395_v20 = vmov %v13339_v40  ;;  %v13396_v17 = vmov %v13340_v54  ;;  %v13403_v12 = vld [vmem:[#allocation154_spill] sm:$0xff]  ;;  %v13404_v54 = vld [vmem:[#allocation151_spill] sm:$0xff]  ;;  %v13405_v40 = vld [vmem:[#allocation152_spill] sm:$0xff] }
 0x6da PF:  { %4420 = vst [vmem:[%s12290_s4] sm:$0xff] %v7946_v40  ;;  %4421 = vst [vmem:[%s12290_s4 + $0x8] sm:$0xff] %v7942_v54  ;;  %v7946_v40 = vphi %v13324_v40, %v13405_v40   ;;  %v7942_v54 = vphi %v13323_v54, %v13404_v54   ;;  %v7938_v12 = vphi %v13322_v12, %v13403_v12   ;;  %v7934_v49 = vphi %v13321_v49, %v13402_v49   ;;  %v7930_v16 = vphi %v13320_v16, %v13401_v16   ;;  %v7926_v22 = vphi %v13319_v22, %v13400_v22   ;;  %v7922_v7 = vphi %v13318_v7, %v13399_v7   ;;  %v7918_v15 = vphi %v13317_v15, %v13398_v15   ;;  %v7914_v41 = vphi %v13316_v41, %v13397_v41   ;;  %v7910_v21 = vphi %v13315_v21, %v13333_v21   ;;  %v7906_v18 = vphi %v13314_v18, %v13336_v18   ;;  %v7902_v23 = vphi %v13313_v23, %v13335_v23   ;;  %v7898_v35 = vphi %v13312_v35, %v13338_v35   ;;  %v7894_v45 = vphi %v13311_v45, %v13337_v45   ;;  %v7890_v17 = vphi %v13310_v17, %v13396_v17   ;;  %v7886_v20 = vphi %v13309_v20, %v13395_v20   ;;  %v7882_v3 = vphi %v13308_v3, %v13343_v3   ;;  %v7878_v47 = vphi %v13307_v47, %v13394_v47   ;;  %v7874_v10 = vphi %v13306_v10, %v13393_v10   ;;  %v7870_v52 = vphi %v13305_v52, %v13392_v52   ;;  %v7866_v11 = vphi %v13304_v11, %v13391_v11   ;;  %v7862_v59 = vphi %v13303_v59, %v13390_v59   ;;  %v7858_v63 = vphi %v13302_v63, %v13389_v63   ;;  %v7854_v19 = vphi %v13301_v19, %v13388_v19   ;;  %v7850_v53 = vphi %v13300_v53, %v13387_v53   ;;  %v7846_v26 = vphi %v13299_v26, %v13342_v26   ;;  %v7842_v57 = vphi %v13298_v57, %v13386_v57   ;;  %v7838_v34 = vphi %v13297_v34, %v13385_v34   ;;  %v7834_v1 = vphi %v13296_v1, %v13384_v1   ;;  %v7830_v37 = vphi %v13295_v37, %v13383_v37   ;;  %v7826_v2 = vphi %v13294_v2, %v4418_v2   ;;  %v7822_v32 = vphi %v13293_v32, %v4419_v32  }
 0x6db   :  { %4422 = vst [vmem:[%s12290_s4 + $0x10] sm:$0xff] %v7938_v12  ;;  %4423 = vst [vmem:[%s12290_s4 + $0x18] sm:$0xff] %v7934_v49 }
 0x6dc   :  { %4424 = vst [vmem:[%s12290_s4 + $0x20] sm:$0xff] %v7930_v16  ;;  %4425 = vst [vmem:[%s12290_s4 + $0x28] sm:$0xff] %v7926_v22 }
 0x6dd   :  { %4426 = vst [vmem:[%s12290_s4 + $0x30] sm:$0xff] %v7922_v7  ;;  %4427 = vst [vmem:[%s12290_s4 + $0x38] sm:$0xff] %v7918_v15 }
 0x6de   :  { %4428 = vst [vmem:[%s12290_s4 + $0x40] sm:$0xff] %v7914_v41  ;;  %4429 = vst [vmem:[%s12290_s4 + $0x48] sm:$0xff] %v7910_v21 }
 0x6df   :  { %4430 = vst [vmem:[%s12290_s4 + $0x50] sm:$0xff] %v7906_v18  ;;  %4431 = vst [vmem:[%s12290_s4 + $0x58] sm:$0xff] %v7902_v23 }
 0x6e0   :  { %4432 = vst [vmem:[%s12290_s4 + $0x60] sm:$0xff] %v7898_v35  ;;  %4433 = vst [vmem:[%s12290_s4 + $0x68] sm:$0xff] %v7894_v45 }
 0x6e1   :  { %4434 = vst [vmem:[%s12290_s4 + $0x70] sm:$0xff] %v7890_v17  ;;  %4435 = vst [vmem:[%s12290_s4 + $0x78] sm:$0xff] %v7886_v20 }
 0x6e2   :  { %4436 = vst [vmem:[%s12291_s5] sm:$0xff] %v7882_v3  ;;  %4437 = vst [vmem:[%s12291_s5 + $0x8] sm:$0xff] %v7878_v47 }
 0x6e3   :  { %4438 = vst [vmem:[%s12291_s5 + $0x10] sm:$0xff] %v7874_v10  ;;  %4439 = vst [vmem:[%s12291_s5 + $0x18] sm:$0xff] %v7870_v52 }
 0x6e4   :  { %4440 = vst [vmem:[%s12291_s5 + $0x20] sm:$0xff] %v7866_v11  ;;  %4441 = vst [vmem:[%s12291_s5 + $0x28] sm:$0xff] %v7862_v59 }
 0x6e5   :  { %4442 = vst [vmem:[%s12291_s5 + $0x30] sm:$0xff] %v7858_v63  ;;  %4443 = vst [vmem:[%s12291_s5 + $0x38] sm:$0xff] %v7854_v19 }
 0x6e6   :  { %4444 = vst [vmem:[%s12291_s5 + $0x40] sm:$0xff] %v7850_v53  ;;  %4445 = vst [vmem:[%s12291_s5 + $0x48] sm:$0xff] %v7846_v26 }
 0x6e7   :  { %4446 = vst [vmem:[%s12291_s5 + $0x50] sm:$0xff] %v7842_v57  ;;  %4447 = vst [vmem:[%s12291_s5 + $0x58] sm:$0xff] %v7838_v34 }
 0x6e8   :  { %4448 = vst [vmem:[%s12291_s5 + $0x60] sm:$0xff] %v7834_v1  ;;  %4449 = vst [vmem:[%s12291_s5 + $0x68] sm:$0xff] %v7830_v37 }
 0x6e9   :  { %4450 = vst [vmem:[%s12291_s5 + $0x70] sm:$0xff] %v7826_v2  ;;  %4451 = vst [vmem:[%s12291_s5 + $0x78] sm:$0xff] %v7822_v32 }

</bundles_post_ra>
